<compile_context>
chip_gen: v7x
topology: tpu7x:2x2x1
jax: 0.10.0
libtpu: 0.0.40
codegen_flags: <defaults>
</compile_context>

<pallas_src>
import functools

import jax
import jax.numpy as jnp
from jax.experimental import pallas as pl
from jax.experimental.pallas import tpu as pltpu

H1, H2, H3 = 512, 256, 128
LANE = 128
MAX_BATCH_TILE = 1024


def _round_up(n, m):
    return ((n + m - 1) // m) * m


def _leaky_relu(x, slope=0.2):
    return jnp.where(x > 0, x, slope * x)


def _num_tensorcores():
    """2 TensorCores per chip on v7x-class parts; 1 on v5e/v6e."""
    try:
        kind = jax.devices()[0].device_kind.lower()
    except Exception:
        return 1
    return 2 if "7" in kind else 1


# --------------------------------------------------------------------------
# Kernel
# --------------------------------------------------------------------------
def _disc_kernel(x_ref,
                 w1_ref, b1_ref,
                 w2_ref, b2_ref,
                 w3_ref, b3_ref,
                 wh_ref, bh_ref,
                 out_ref):
    # Whole MLP on one batch tile; every weight is VMEM-resident.
    # x arrives pre-cast to bf16, so the only in-kernel casts are the cheap
    # f32 -> bf16 ones feeding the MXU between layers.
    h = jnp.dot(x_ref[...], w1_ref[...],
                preferred_element_type=jnp.float32) + b1_ref[...]
    h = _leaky_relu(h)
    # TODO(synk): training-mode dropout (p=0.3) omitted; identity == eval mode.

    h = jnp.dot(h.astype(jnp.bfloat16), w2_ref[...],
                preferred_element_type=jnp.float32) + b2_ref[...]
    h = _leaky_relu(h)

    h = jnp.dot(h.astype(jnp.bfloat16), w3_ref[...],
                preferred_element_type=jnp.float32) + b3_ref[...]
    h = _leaky_relu(h)

    # Fused adv+aux head: one lane-dense [batch_tile, 128] store.
    out = jnp.dot(h.astype(jnp.bfloat16), wh_ref[...],
                  preferred_element_type=jnp.float32) + bh_ref[...]
    out_ref[...] = out.astype(out_ref.dtype)


# --------------------------------------------------------------------------
# One-time parameter packing (keep OFF the hot path)
# --------------------------------------------------------------------------
def prepare_params(params):
    """Cast weights to bf16, fuse adv+aux heads into one 128-lane padded head.

    params: dict of f32 weights ([in, out]) and biases ([1, out]).
    Returns (packed_dict, head_out) where head_out = 1 + num_classes.
    """
    num_classes = params["w_aux"].shape[1]
    head_out = 1 + num_classes
    H_head = max(LANE, _round_up(head_out, LANE))

    wh = jnp.zeros((H3, H_head), jnp.bfloat16)
    wh = wh.at[:, :1].set(params["w_adv"].astype(jnp.bfloat16))
    wh = wh.at[:, 1:head_out].set(params["w_aux"].astype(jnp.bfloat16))
    bh = jnp.zeros((1, H_head), jnp.float32)
    bh = bh.at[:, :1].set(params["b_adv"].astype(jnp.float32))
    bh = bh.at[:, 1:head_out].set(params["b_aux"].astype(jnp.float32))

    packed = dict(
        w1=params["w1"].astype(jnp.bfloat16), b1=params["b1"].astype(jnp.float32),
        w2=params["w2"].astype(jnp.bfloat16), b2=params["b2"].astype(jnp.float32),
        w3=params["w3"].astype(jnp.bfloat16), b3=params["b3"].astype(jnp.float32),
        wh=wh, bh=bh,
    )
    # Materialize device-side once so casting/fusion never re-runs per call.
    packed = jax.tree_util.tree_map(jax.device_put, packed)
    return packed, head_out


# --------------------------------------------------------------------------
# Forward pass (jitted hot path)
# --------------------------------------------------------------------------
@functools.partial(jax.jit, static_argnames=("head_out", "batch_tile"))
def _forward_impl(x, packed, *, head_out, batch_tile=None):
    B, D_in = x.shape
    H_head = packed["wh"].shape[1]

    num_cores = _num_tensorcores()
    if batch_tile is None:
        per_core = pl.cdiv(_round_up(max(B, 8), 8), num_cores)
        batch_tile = min(MAX_BATCH_TILE, _round_up(per_core, 8))
    # Grid length is a multiple of the TensorCore count (exactly num_cores
    # for moderate B): one big step on v5e/v6e, an even "parallel" split on
    # v7x's two TensorCores.
    B_pad = _round_up(max(B, batch_tile), batch_tile * num_cores)
    grid = (B_pad // batch_tile,)

    # bf16 input, NO feature-axis padding (block last dim == full array dim).
    x_p = jnp.zeros((B_pad, D_in), jnp.bfloat16).at[:B, :].set(
        x.astype(jnp.bfloat16))

    # Weight / bias specs: full array, grid-invariant index_map -> resident in
    # VMEM across all grid steps (re-DMA elided by Pallas).
    def full_spec(shape):
        return pl.BlockSpec(shape, lambda i: (0, 0))

    in_specs = [
        pl.BlockSpec((batch_tile, D_in), lambda i: (i, 0)),   # x tile
        full_spec((D_in, H1)), full_spec((1, H1)),
        full_spec((H1, H2)),   full_spec((1, H2)),
        full_spec((H2, H3)),   full_spec((1, H3)),
        full_spec((H3, H_head)), full_spec((1, H_head)),
    ]
    out_specs = pl.BlockSpec((batch_tile, H_head), lambda i: (i, 0))
    out_shape = jax.ShapeDtypeStruct((B_pad, H_head), jnp.float32)

    # Advisory cost estimate for the XLA scheduler.
    weight_bytes = ((D_in * H1 + H1 * H2 + H2 * H3 + H3 * H_head) * 2   # bf16
                    + (H1 + H2 + H3 + H_head) * 4)                      # f32 bias
    flops = 2 * B_pad * (D_in * H1 + H1 * H2 + H2 * H3 + H3 * H_head)
    bytes_accessed = B_pad * D_in * 2 + weight_bytes + B_pad * H_head * 4
    cost = pl.CostEstimate(flops=flops, transcendentals=0,
                           bytes_accessed=bytes_accessed)

    # VMEM accounting: double-buffered x/out tiles + weights, PLUS the f32
    # intermediate activations and their bf16 MXU-feed copies.
    act_bytes = batch_tile * (H1 + H2 + H3) * (4 + 2)
    io_bytes = 2 * (batch_tile * D_in * 2 + batch_tile * H_head * 4)
    vmem_est = io_bytes + 2 * weight_bytes + act_bytes
    compiler_kwargs = dict(dimension_semantics=("parallel",))
    if vmem_est > (24 << 20):
        # Stay well below v7x's 64 MiB physical VMEM per TensorCore.
        compiler_kwargs["vmem_limit_bytes"] = min(vmem_est + (8 << 20), 48 << 20)

    out = pl.pallas_call(
        _disc_kernel,
        out_shape=out_shape,
        grid_spec=pltpu.PrefetchScalarGridSpec(
            num_scalar_prefetch=0,
            grid=grid,
            in_specs=in_specs,
            out_specs=out_specs,
        ),
        compiler_params=pltpu.CompilerParams(**compiler_kwargs),
        cost_estimate=cost,
    )(x_p, packed["w1"], packed["b1"], packed["w2"], packed["b2"],
      packed["w3"], packed["b3"], packed["wh"], packed["bh"])

    validity = out[:B, :1]
    class_logits = out[:B, 1:head_out]
    return validity, class_logits


def discriminator_forward(x, packed, head_out, *, batch_tile=None):
    """x: [..., input_dim + cond_dim] f32.  Returns (validity, class_logits)."""
    D_in = packed["w1"].shape[0]
    x = x.reshape(-1, D_in)          # mimic x.view(-1, self.input_dim)
    return _forward_impl(x, packed, head_out=head_out, batch_tile=batch_tile)


# --------------------------------------------------------------------------
# Init + pure-JAX reference
# --------------------------------------------------------------------------
def init_params(key, input_dim, cond_dim, num_classes):
    """Deterministic init mimicking nn.Linear default U(-1/sqrt(fan_in), +)."""
    D_in = input_dim + cond_dim
    dims = [(D_in, H1), (H1, H2), (H2, H3), (H3, 1), (H3, num_classes)]
    names = ["1", "2", "3", "_adv", "_aux"]
    params = {}
    keys = jax.random.split(key, 2 * len(dims))
    for idx, ((fan_in, fan_out), name) in enumerate(zip(dims, names)):
        bound = 1.0 / jnp.sqrt(jnp.float32(fan_in))
        params["w" + name] = jax.random.uniform(
            keys[2 * idx], (fan_in, fan_out),
            minval=-bound, maxval=bound, dtype=jnp.float32)
        params["b" + name] = jax.random.uniform(
            keys[2 * idx + 1], (1, fan_out),
            minval=-bound, maxval=bound, dtype=jnp.float32)
    return params


def reference_forward(x, params):
    """Pure-JAX reference matching the kernel's bf16-MXU / f32-accumulate math."""
    def mm(a, w):
        return jnp.dot(a.astype(jnp.bfloat16), w.astype(jnp.bfloat16),
                       preferred_element_type=jnp.float32)
    h = _leaky_relu(mm(x, params["w1"]) + params["b1"])
    h = _leaky_relu(mm(h, params["w2"]) + params["b2"])
    h = _leaky_relu(mm(h, params["w3"]) + params["b3"])
    adv = mm(h, params["w_adv"]) + params["b_adv"]
    aux = mm(h, params["w_aux"]) + params["b_aux"]
    return adv, aux


if __name__ == "__main__":
    key = jax.random.PRNGKey(0)
    k_param, k_x = jax.random.split(key)

    input_dim = 24
    cond_dim = 8
    num_classes = 4
    batch = 512

    params = init_params(k_param, input_dim, cond_dim, num_classes)
    x = jax.random.normal(k_x, (batch, input_dim + cond_dim), dtype=jnp.float32)

    packed, head_out = prepare_params(params)           # one-time packing
    validity, class_logits = discriminator_forward(x, packed, head_out)
    validity = jax.block_until_ready(validity)
    class_logits = jax.block_until_ready(class_logits)

    # Sanity check against the pure-JAX reference (bf16 matmul precision).
    ref_v, ref_c = reference_forward(x, params)
    assert validity.shape == (batch, 1)
    assert class_logits.shape == (batch, num_classes)
    assert jnp.allclose(validity, ref_v, atol=2e-2, rtol=2e-2)
    assert jnp.allclose(class_logits, ref_c, atol=2e-2, rtol=2e-2)

    print("KERNEL_OK")
</pallas_src>

<mosaic_0001>
module attributes {stable_mosaic.version = 11 : i64} {
  func.func @_disc_kernel(%arg0: i32, %arg1: memref<512x32xbf16, #tpu.memory_space<vmem>>, %arg2: memref<32x512xbf16, #tpu.memory_space<vmem>>, %arg3: memref<1x512xf32, #tpu.memory_space<vmem>>, %arg4: memref<512x256xbf16, #tpu.memory_space<vmem>>, %arg5: memref<1x256xf32, #tpu.memory_space<vmem>>, %arg6: memref<256x128xbf16, #tpu.memory_space<vmem>>, %arg7: memref<1x128xf32, #tpu.memory_space<vmem>>, %arg8: memref<128x128xbf16, #tpu.memory_space<vmem>>, %arg9: memref<1x128xf32, #tpu.memory_space<vmem>>, %arg10: memref<512x128xf32, #tpu.memory_space<vmem>>) attributes {dimension_semantics = [#tpu.dimension_semantics<parallel>], iteration_bounds = array<i64: 1>, scalar_prefetch = 0 : i64, scratch_operands = 0 : i64, tpu.core_type = #tpu.core_type<tc>, window_params = [{transform_indices = @transform_0, window_bounds = array<i64: 512, 32>}, {pipeline_mode = #tpu.pipeline_mode<synchronous>, transform_indices = @transform_1, window_bounds = array<i64: 32, 512>}, {pipeline_mode = #tpu.pipeline_mode<synchronous>, transform_indices = @transform_2, window_bounds = array<i64: 1, 512>}, {pipeline_mode = #tpu.pipeline_mode<synchronous>, transform_indices = @transform_3, window_bounds = array<i64: 512, 256>}, {pipeline_mode = #tpu.pipeline_mode<synchronous>, transform_indices = @transform_4, window_bounds = array<i64: 1, 256>}, {pipeline_mode = #tpu.pipeline_mode<synchronous>, transform_indices = @transform_5, window_bounds = array<i64: 256, 128>}, {pipeline_mode = #tpu.pipeline_mode<synchronous>, transform_indices = @transform_6, window_bounds = array<i64: 1, 128>}, {pipeline_mode = #tpu.pipeline_mode<synchronous>, transform_indices = @transform_7, window_bounds = array<i64: 128, 128>}, {pipeline_mode = #tpu.pipeline_mode<synchronous>, transform_indices = @transform_8, window_bounds = array<i64: 1, 128>}, {transform_indices = @transform_9, window_bounds = array<i64: 512, 128>}]} {
    %c0 = arith.constant 0 : index
    %c0_0 = arith.constant 0 : index
    %0 = vector.load %arg1[%c0, %c0_0] : memref<512x32xbf16, #tpu.memory_space<vmem>>, vector<512x32xbf16>
    %c0_1 = arith.constant 0 : index
    %c0_2 = arith.constant 0 : index
    %1 = vector.load %arg2[%c0_1, %c0_2] : memref<32x512xbf16, #tpu.memory_space<vmem>>, vector<32x512xbf16>
    %cst = arith.constant dense<0.000000e+00> : vector<512x512xf32>
    %2 = tpu.matmul %0, %1, %cst {dimension_numbers = #tpu.dot_dimension_numbers<[1], [0], [0], [1], [0, 0, 1, 1], [], []>} : vector<512x32xbf16>, vector<32x512xbf16>, vector<512x512xf32> -> vector<512x512xf32>
    %c0_3 = arith.constant 0 : index
    %c0_4 = arith.constant 0 : index
    %3 = vector.load %arg3[%c0_3, %c0_4] : memref<1x512xf32, #tpu.memory_space<vmem>>, vector<1x512xf32>
    %4 = vector.broadcast %3 : vector<1x512xf32> to vector<512x512xf32>
    %5 = arith.addf %2, %4 : vector<512x512xf32>
    %cst_5 = arith.constant 0.000000e+00 : f32
    %6 = vector.broadcast %cst_5 : f32 to vector<512x512xf32>
    %7 = arith.cmpf ogt, %5, %6 : vector<512x512xf32>
    %cst_6 = arith.constant 2.000000e-01 : f32
    %8 = vector.broadcast %cst_6 : f32 to vector<512x512xf32>
    %9 = arith.mulf %8, %5 : vector<512x512xf32>
    %10 = arith.select %7, %5, %9 : vector<512x512xi1>, vector<512x512xf32>
    %11 = arith.truncf %10 : vector<512x512xf32> to vector<512x512xbf16>
    %c0_7 = arith.constant 0 : index
    %c0_8 = arith.constant 0 : index
    %12 = vector.load %arg4[%c0_7, %c0_8] : memref<512x256xbf16, #tpu.memory_space<vmem>>, vector<512x256xbf16>
    %cst_9 = arith.constant dense<0.000000e+00> : vector<512x256xf32>
    %13 = tpu.matmul %11, %12, %cst_9 {dimension_numbers = #tpu.dot_dimension_numbers<[1], [0], [0], [1], [0, 0, 1, 1], [], []>} : vector<512x512xbf16>, vector<512x256xbf16>, vector<512x256xf32> -> vector<512x256xf32>
    %c0_10 = arith.constant 0 : index
    %c0_11 = arith.constant 0 : index
    %14 = vector.load %arg5[%c0_10, %c0_11] : memref<1x256xf32, #tpu.memory_space<vmem>>, vector<1x256xf32>
    %15 = vector.broadcast %14 : vector<1x256xf32> to vector<512x256xf32>
    %16 = arith.addf %13, %15 : vector<512x256xf32>
    %cst_12 = arith.constant 0.000000e+00 : f32
    %17 = vector.broadcast %cst_12 : f32 to vector<512x256xf32>
    %18 = arith.cmpf ogt, %16, %17 : vector<512x256xf32>
    %cst_13 = arith.constant 2.000000e-01 : f32
    %19 = vector.broadcast %cst_13 : f32 to vector<512x256xf32>
    %20 = arith.mulf %19, %16 : vector<512x256xf32>
    %21 = arith.select %18, %16, %20 : vector<512x256xi1>, vector<512x256xf32>
    %22 = arith.truncf %21 : vector<512x256xf32> to vector<512x256xbf16>
    %c0_14 = arith.constant 0 : index
    %c0_15 = arith.constant 0 : index
    %23 = vector.load %arg6[%c0_14, %c0_15] : memref<256x128xbf16, #tpu.memory_space<vmem>>, vector<256x128xbf16>
    %cst_16 = arith.constant dense<0.000000e+00> : vector<512x128xf32>
    %24 = tpu.matmul %22, %23, %cst_16 {dimension_numbers = #tpu.dot_dimension_numbers<[1], [0], [0], [1], [0, 0, 1, 1], [], []>} : vector<512x256xbf16>, vector<256x128xbf16>, vector<512x128xf32> -> vector<512x128xf32>
    %c0_17 = arith.constant 0 : index
    %c0_18 = arith.constant 0 : index
    %25 = vector.load %arg7[%c0_17, %c0_18] : memref<1x128xf32, #tpu.memory_space<vmem>>, vector<1x128xf32>
    %26 = vector.broadcast %25 : vector<1x128xf32> to vector<512x128xf32>
    %27 = arith.addf %24, %26 : vector<512x128xf32>
    %cst_19 = arith.constant 0.000000e+00 : f32
    %28 = vector.broadcast %cst_19 : f32 to vector<512x128xf32>
    %29 = arith.cmpf ogt, %27, %28 : vector<512x128xf32>
    %cst_20 = arith.constant 2.000000e-01 : f32
    %30 = vector.broadcast %cst_20 : f32 to vector<512x128xf32>
    %31 = arith.mulf %30, %27 : vector<512x128xf32>
    %32 = arith.select %29, %27, %31 : vector<512x128xi1>, vector<512x128xf32>
    %33 = arith.truncf %32 : vector<512x128xf32> to vector<512x128xbf16>
    %c0_21 = arith.constant 0 : index
    %c0_22 = arith.constant 0 : index
    %34 = vector.load %arg8[%c0_21, %c0_22] : memref<128x128xbf16, #tpu.memory_space<vmem>>, vector<128x128xbf16>
    %cst_23 = arith.constant dense<0.000000e+00> : vector<512x128xf32>
    %35 = tpu.matmul %33, %34, %cst_23 {dimension_numbers = #tpu.dot_dimension_numbers<[1], [0], [0], [1], [0, 0, 1, 1], [], []>} : vector<512x128xbf16>, vector<128x128xbf16>, vector<512x128xf32> -> vector<512x128xf32>
    %c0_24 = arith.constant 0 : index
    %c0_25 = arith.constant 0 : index
    %36 = vector.load %arg9[%c0_24, %c0_25] : memref<1x128xf32, #tpu.memory_space<vmem>>, vector<1x128xf32>
    %37 = vector.broadcast %36 : vector<1x128xf32> to vector<512x128xf32>
    %38 = arith.addf %35, %37 : vector<512x128xf32>
    %c0_26 = arith.constant 0 : index
    %c0_27 = arith.constant 0 : index
    %39 = vector.load %arg10[%c0_26, %c0_27] : memref<512x128xf32, #tpu.memory_space<vmem>>, vector<512x128xf32>
    tpu.vector_store %arg10[%c0_26, %c0_27], %38 {strides = array<i32>} : memref<512x128xf32, #tpu.memory_space<vmem>>, vector<512x128xf32>,
    return
  }
  func.func @transform_0(%arg0: i32) -> (i32, i32) {
    %c0_i32 = arith.constant 0 : i32
    %c0_i32_0 = arith.constant 0 : i32
    return %arg0, %c0_i32 : i32, i32
  }
  func.func @transform_1(%arg0: i32) -> (i32, i32) {
    %c0_i32 = arith.constant 0 : i32
    %c0_i32_0 = arith.constant 0 : i32
    %c0_i32_1 = arith.constant 0 : i32
    return %c0_i32, %c0_i32_0 : i32, i32
  }
  func.func @transform_2(%arg0: i32) -> (i32, i32) {
    %c0_i32 = arith.constant 0 : i32
    %c0_i32_0 = arith.constant 0 : i32
    %c0_i32_1 = arith.constant 0 : i32
    return %c0_i32, %c0_i32_0 : i32, i32
  }
  func.func @transform_3(%arg0: i32) -> (i32, i32) {
    %c0_i32 = arith.constant 0 : i32
    %c0_i32_0 = arith.constant 0 : i32
    %c0_i32_1 = arith.constant 0 : i32
    return %c0_i32, %c0_i32_0 : i32, i32
  }
  func.func @transform_4(%arg0: i32) -> (i32, i32) {
    %c0_i32 = arith.constant 0 : i32
    %c0_i32_0 = arith.constant 0 : i32
    %c0_i32_1 = arith.constant 0 : i32
    return %c0_i32, %c0_i32_0 : i32, i32
  }
  func.func @transform_5(%arg0: i32) -> (i32, i32) {
    %c0_i32 = arith.constant 0 : i32
    %c0_i32_0 = arith.constant 0 : i32
    %c0_i32_1 = arith.constant 0 : i32
    return %c0_i32, %c0_i32_0 : i32, i32
  }
  func.func @transform_6(%arg0: i32) -> (i32, i32) {
    %c0_i32 = arith.constant 0 : i32
    %c0_i32_0 = arith.constant 0 : i32
    %c0_i32_1 = arith.constant 0 : i32
    return %c0_i32, %c0_i32_0 : i32, i32
  }
  func.func @transform_7(%arg0: i32) -> (i32, i32) {
    %c0_i32 = arith.constant 0 : i32
    %c0_i32_0 = arith.constant 0 : i32
    %c0_i32_1 = arith.constant 0 : i32
    return %c0_i32, %c0_i32_0 : i32, i32
  }
  func.func @transform_8(%arg0: i32) -> (i32, i32) {
    %c0_i32 = arith.constant 0 : i32
    %c0_i32_0 = arith.constant 0 : i32
    %c0_i32_1 = arith.constant 0 : i32
    return %c0_i32, %c0_i32_0 : i32, i32
  }
  func.func @transform_9(%arg0: i32) -> (i32, i32) {
    %c0_i32 = arith.constant 0 : i32
    %c0_i32_0 = arith.constant 0 : i32
    return %arg0, %c0_i32 : i32, i32
  }
}

</mosaic_0001>

<bundles_post_ra>
// kernel: _forward_impl.1
= control target key start
LH: loop header
LB: loop body
LE: loop exit
PB: predicated region body
PF: predicated region fallthrough
CT: control target
= control target key end

     0   :  { %14 = vsyncpa [#allocation3], 0  ;;  %s8171_s0 = inlined_call_operand.vmem [shape: bf16[512,32], index: 0, kind: input, shape index: {}]   ;;  %s8172_s1 = inlined_call_operand.hbm [shape: bf16[32,512], index: 1, kind: input, shape index: {}]   ;;  %s8173_s2 = inlined_call_operand.vmem [shape: f32[1,512], index: 2, kind: input, shape index: {}]   ;;  %s8174_s3 = inlined_call_operand.vmem [shape: bf16[512,256], index: 3, kind: input, shape index: {}]   ;;  %s8175_s4 = inlined_call_operand.vmem [shape: f32[1,256], index: 4, kind: input, shape index: {}]   ;;  %s8176_s5 = inlined_call_operand.hbm [shape: bf16[256,128], index: 5, kind: input, shape index: {}]   ;;  %s8177_s6 = inlined_call_operand.vmem [shape: f32[1,128], index: 6, kind: input, shape index: {}]   ;;  %s8178_s7 = inlined_call_operand.hbm [shape: bf16[128,128], index: 7, kind: input, shape index: {}]   ;;  %s8179_s8 = inlined_call_operand.vmem [shape: f32[1,128], index: 8, kind: input, shape index: {}]   ;;  %s8180_s9 = inlined_call_operand.vmem [shape: f32[512,128], index: 9, kind: output, shape index: {}]  }
   0x1   :  { %15 = vsyncpa [#allocation5], 0  ;;  %s5521_s30 = smov [#allocation4]   ;;  %s5451_s13 = scalar_lea.hbm %s8176_s5, 2048 }
   0x2   :  { %s41_s10 = sshll.u32 %s5521_s30, 4  ;;  %p5452_p0 = scmp.ne.s32.totalorder %s8176_s5, %s5451_s13  ;;  %s42_s10 = int_to_ptr.vmem [resolvable:$true] %s41_s10 }
   0x3   :  { %p5455_p1 = scmp.lt.u32.totalorder %s5451_s13, %s8176_s5 }
   0x5   :  { %p5457_p2 = pnand %p5455_p1, %p5452_p0 }
   0x7   :  { %5460 = shalt.err (!%p5457_p2)
}
   0x8   :  { %s5461_s18 = scalar_lea.vmem %s42_s10, 2048  ;;  %p5466_p4 = scmp.lt.s32.totalorder %s42_s10, %s42_s10 }
   0x9   :  { %p5462_p3 = scmp.ne.s32.totalorder %s42_s10, %s5461_s18  ;;  %p5467_p5 = scmp.lt.s32.totalorder %s5461_s18, %s5461_s18 }
   0xb   :  { %p5468_p6 = por %p5467_p5, %p5466_p4 }
   0xd   :  { %p5469_p7 = pnand %p5468_p6, %p5462_p3 }
   0xf   :  { %5472 = shalt.err (!%p5469_p7)
}
  0x10   :  { %s5522_s19 = smov 64   ;;  %s5523_s20 = smov 4  }
  0x11   :  { %47 = dma.hbm_to_vmem [thread:$0]  %s8176_s5, 2048, %s42_s10, [#allocation5], %s5522_s19, %s5522_s19, %s5523_s20  }
  0x12   :  { %s5524_s23 = smov [#allocation2]   ;;  %s5473_s27 = scalar_lea.hbm %s8172_s1, 1024 }
  0x13   :  { %s23_s24 = sshll.u32 %s5524_s23, 4  ;;  %p5474_p8 = scmp.ne.s32.totalorder %s8172_s1, %s5473_s27  ;;  %s24_s24 = int_to_ptr.vmem [resolvable:$true] %s23_s24 }
  0x14   :  { %p5477_p9 = scmp.lt.u32.totalorder %s5473_s27, %s8172_s1 }
  0x16   :  { %p5479_p10 = pnand %p5477_p9, %p5474_p8 }
  0x18   :  { %5482 = shalt.err (!%p5479_p10)
}
  0x19   :  { %s5483_s12 = scalar_lea.vmem %s24_s24, 1024  ;;  %p5488_p12 = scmp.lt.s32.totalorder %s24_s24, %s24_s24 }
  0x1a   :  { %p5484_p11 = scmp.ne.s32.totalorder %s24_s24, %s5483_s12  ;;  %p5489_p13 = scmp.lt.s32.totalorder %s5483_s12, %s5483_s12 }
  0x1c   :  { %p5490_p0 = por %p5489_p13, %p5488_p12 }
  0x1e   :  { %p5491_p1 = pnand %p5490_p0, %p5484_p11 }
  0x20   :  { %5494 = shalt.err (!%p5491_p1)
}
  0x21   :  { %s5525_s5 = smov 256   ;;  %s5526_s10 = smov 16  }
  0x22   :  { %29 = dma.hbm_to_vmem [thread:$0]  %s8172_s1, 1024, %s24_s24, [#allocation3], %s5525_s5, %s5525_s5, %s5526_s10  }
  0x23   :  { %s5527_s15 = smov [#allocation6]   ;;  %s5495_s21 = scalar_lea.hbm %s8178_s7, 1024 }
  0x24   :  { %s55_s16 = sshll.u32 %s5527_s15, 4  ;;  %p5496_p2 = scmp.ne.s32.totalorder %s8178_s7, %s5495_s21  ;;  %s56_s16 = int_to_ptr.vmem [resolvable:$true] %s55_s16 }
  0x25   :  { %p5499_p3 = scmp.lt.u32.totalorder %s5495_s21, %s8178_s7 }
  0x27   :  { %p5501_p4 = pnand %p5499_p3, %p5496_p2 }
  0x29   :  { %5504 = shalt.err (!%p5501_p4)
}
  0x2a   :  { %s5505_s27 = scalar_lea.vmem %s56_s16, 1024  ;;  %p5510_p6 = scmp.lt.s32.totalorder %s56_s16, %s56_s16 }
  0x2b   :  { %p5506_p5 = scmp.ne.s32.totalorder %s56_s16, %s5505_s27  ;;  %p5511_p7 = scmp.lt.s32.totalorder %s5505_s27, %s5505_s27 }
  0x2d   :  { %p5512_p8 = por %p5511_p7, %p5510_p6 }
  0x2f   :  { %p5513_p9 = pnand %p5512_p8, %p5506_p5 }
  0x31   :  { %5516 = shalt.err (!%p5513_p9)
}
  0x32   :  { %61 = dma.hbm_to_vmem [thread:$0]  %s8178_s7, 1024, %s56_s16, [#allocation5], %s5522_s19, %s5522_s19, %s5523_s20  }
  0x33   :  { %5517 = dma.done.wait [#allocation3], 1024  }
  0x34   :  { %5518 = vsyncadd [#allocation3], 4294966272 }
  0x35   :  { %5519 = dma.done.wait [#allocation5], 3072  }
  0x36   :  { %5520 = vsyncadd [#allocation5], 4294964224  ;;  %v8183_v0 = vmov 0   ;;  %v5277_v1 = vld [vmem:[#allocation2 + $0x4] ss:$16 sps:$4 sm:$0xff]   ;;  %vm368_vm0 = vcmask 261120  }
  0x37   :  { %497 = vmatprep.mubr.bf16.mxu0 %v8183_v0  ;;  %737 = vmatprep.mubr.bf16.mxu1 %v8183_v0  ;;  %v5279_v2 = vld [vmem:[#allocation2] ss:$16 sps:$4 sm:$0xff]   ;;  %v5280_v3 = vld [vmem:[#allocation2 + $0x24] ss:$16 sps:$4 sm:$0xff]   ;;  %v5649_v11 = vld [vmem:[%s8171_s0 + $0x8] sm:$0xff]  }
  0x38   :  { %465 = vmatprep.subr.bf16.mxu0 %v5277_v1  ;;  %5009 = vmatprep.subr.bf16.mxu1 %v5277_v1  ;;  %v5282_v4 = vld [vmem:[#allocation2 + $0x20] ss:$16 sps:$4 sm:$0xff]   ;;  %v5289_v7 = vld [vmem:[%s8174_s3 + $0x4] ss:$8 sps:$4 sm:$0xff]   ;;  %v5294_v9 = vld [vmem:[%s8174_s3 + $0x14] ss:$8 sps:$4 sm:$0xff]  }
  0x39   :  { %466 = vmatpush1.bf16.msra.mxu0 %v5279_v2  ;;  %5011 = vmatpush1.bf16.msra.mxu1 %v5279_v2  ;;  %v5626_v5 = vld [vmem:[%s8171_s0] sm:$0xff]   ;;  %v5292_v8 = vld [vmem:[%s8174_s3 + $0x10] ss:$8 sps:$4 sm:$0xff]   ;;  %v5303_v13 = vld [vmem:[%s8174_s3 + $0x34] ss:$8 sps:$4 sm:$0xff]  }
  0x3a   :  { %467 = vmatprep.subr.bf16.mxu0 %v5280_v3  ;;  %5010 = vmatprep.subr.bf16.mxu1 %v5280_v3  ;;  %v5287_v6 = vld [vmem:[%s8174_s3] ss:$8 sps:$4 sm:$0xff]   ;;  %v5298_v10 = vld [vmem:[%s8174_s3 + $0x24] ss:$8 sps:$4 sm:$0xff]   ;;  %v5301_v14 = vld [vmem:[%s8174_s3 + $0x30] ss:$8 sps:$4 sm:$0xff]  }
  0x3b   :  { %v5296_v12 = vld [vmem:[%s8174_s3 + $0x20] ss:$8 sps:$4 sm:$0xff]   ;;  %v5307_v15 = vld [vmem:[%s8174_s3 + $0x44] ss:$8 sps:$4 sm:$0xff]   ;;  %v5669_v16 = vld [vmem:[%s8171_s0 + $0x10] sm:$0xff]  }
  0x3c   :  { %v5305_v17 = vld [vmem:[%s8174_s3 + $0x40] ss:$8 sps:$4 sm:$0xff]   ;;  %v5312_v18 = vld [vmem:[%s8174_s3 + $0x54] ss:$8 sps:$4 sm:$0xff]   ;;  %v5310_v19 = vld [vmem:[%s8174_s3 + $0x50] ss:$8 sps:$4 sm:$0xff]  }
  0x3d   :  { %468 = vmatpush1.bf16.msra.mxu0 %v5282_v4  ;;  %5012 = vmatpush1.bf16.msra.mxu1 %v5282_v4  ;;  %v5316_v20 = vld [vmem:[%s8174_s3 + $0x64] ss:$8 sps:$4 sm:$0xff]   ;;  %v5689_v21 = vld [vmem:[%s8171_s0 + $0x18] sm:$0xff]   ;;  %v5314_v22 = vld [vmem:[%s8174_s3 + $0x60] ss:$8 sps:$4 sm:$0xff]  }
  0x3e   :  { %2463 = vmatprep.subr.bf16.mxu0 %v5289_v7  ;;  %v5321_v23 = vld [vmem:[%s8174_s3 + $0x74] ss:$8 sps:$4 sm:$0xff]   ;;  %v5319_v24 = vld [vmem:[%s8174_s3 + $0x70] ss:$8 sps:$4 sm:$0xff]   ;;  %v5706_v25 = vld [vmem:[%s8171_s0 + $0x20] sm:$0xff]  }
  0x3f   :  { %v5325_v26 = vld [vmem:[%s8174_s3 + $0x84] ss:$8 sps:$4 sm:$0xff]   ;;  %v5323_v27 = vld [vmem:[%s8174_s3 + $0x80] ss:$8 sps:$4 sm:$0xff]   ;;  %v5330_v28 = vld [vmem:[%s8174_s3 + $0x94] ss:$8 sps:$4 sm:$0xff]  }
  0x40   :  { %4735 = vmatmul.mubr.msk.bf16.vlgmr.msra.gmra.mrb[0].mxu0 %vm368_vm0, %v5626_v5  ;;  %v5328_v29 = vld [vmem:[%s8174_s3 + $0x90] ss:$8 sps:$4 sm:$0xff]   ;;  %v5334_v30 = vld [vmem:[%s8174_s3 + $0xa4] ss:$8 sps:$4 sm:$0xff]   ;;  %v5332_v32 = vld [vmem:[%s8174_s3 + $0xa0] ss:$8 sps:$4 sm:$0xff]  }
  0x41   :  { %507 = vmatprep.mubr.bf16.mxu0 %v8183_v0  ;;  %2464 = vmatpush1.bf16.msra.mxu0 %v5287_v6  ;;  %v5729_v31 = vld [vmem:[%s8171_s0 + $0x28] sm:$0xff]   ;;  %v5339_v33 = vld [vmem:[%s8174_s3 + $0xb4] ss:$8 sps:$4 sm:$0xff]   ;;  %v5337_v34 = vld [vmem:[%s8174_s3 + $0xb0] ss:$8 sps:$4 sm:$0xff]  }
  0x42   :  { %2465 = vmatprep.subr.bf16.mxu0 %v5294_v9  ;;  %v5343_v35 = vld [vmem:[%s8174_s3 + $0xc4] ss:$8 sps:$4 sm:$0xff]   ;;  %v5749_v36 = vld [vmem:[%s8171_s0 + $0x30] sm:$0xff]   ;;  %v5341_v37 = vld [vmem:[%s8174_s3 + $0xc0] ss:$8 sps:$4 sm:$0xff]  }
  0x43   :  { %v5760_v38 = vld [vmem:[%s8171_s0 + $0x38] sm:$0xff]   ;;  %v5349_v41 = vld [vmem:[%s8171_s0 + $0xc0] sm:$0xff]   ;;  %v5353_v47 = vld [vmem:[%s8171_s0 + $0xc8] sm:$0xff]  }
  0x44   :  { %v5346_v39 = vld [vmem:[%s8174_s3 + $0xd0] ss:$8 sps:$4 sm:$0xff]   ;;  %v5348_v40 = vld [vmem:[%s8174_s3 + $0xd4] ss:$8 sps:$4 sm:$0xff]   ;;  %4759 = vmatmul.mubr.msk.bf16.vlgmr.msra.gmra.mrb[0].mxu1 %vm368_vm0, %v5349_v41  ;;  %v5356_v44 = vld [vmem:[%s8174_s3 + $0xe4] ss:$8 sps:$4 sm:$0xff]  }
  0x45   :  { %2466 = vmatpush1.bf16.msra.mxu0 %v5292_v8  ;;  %v5350_v42 = vld [vmem:[#allocation2 + $0x8] ss:$16 sps:$4 sm:$0xff]   ;;  %v5352_v43 = vld [vmem:[#allocation2 + $0xc] ss:$16 sps:$4 sm:$0xff]   ;;  %v5781_v45 = vld [vmem:[%s8171_s0 + $0x40] sm:$0xff]   ;;  %747 = vmatprep.mubr.bf16.mxu1 %v8183_v0 }
  0x46   :  { %2467 = vmatprep.subr.bf16.mxu0 %v5298_v10  ;;  %818 = vmatprep.subr.bf16.mxu1 %v5352_v43  ;;  %v5354_v46 = vld [vmem:[%s8174_s3 + $0xe0] ss:$8 sps:$4 sm:$0xff]   ;;  %v5360_v48 = vld [vmem:[%s8174_s3 + $0xf4] ss:$8 sps:$4 sm:$0xff]   ;;  %v5358_v49 = vld [vmem:[%s8174_s3 + $0xf0] ss:$8 sps:$4 sm:$0xff]  }
  0x47   :  { %819 = vmatpush1.bf16.msra.mxu1 %v5350_v42  ;;  %v5802_v50 = vld [vmem:[%s8171_s0 + $0x48] sm:$0xff]   ;;  %v5357_v51 = vld [vmem:[%s8171_s0 + $0xd0] sm:$0xff]   ;;  %v5361_v53 = vld [vmem:[%s8171_s0 + $0xd8] sm:$0xff]  }
  0x48   :  { %4736 = vmatmul.mubr.msk.bf16.gmra.mrb[4].mxu0 %vm368_vm0, %v5649_v11  ;;  %v5817_v52 = vld [vmem:[%s8171_s0 + $0x50] sm:$0xff]   ;;  %v5829_v54 = vld [vmem:[%s8171_s0 + $0x58] sm:$0xff]   ;;  %v5362_v55 = vld [vmem:[%s8171_s0 + $0xe0] sm:$0xff]  }
  0x49   :  { %517 = vmatprep.mubr.bf16.mxu0 %v8183_v0  ;;  %2468 = vmatpush1.bf16.msra.mxu0 %v5296_v12  ;;  %v5842_v56 = vld [vmem:[%s8171_s0 + $0x60] sm:$0xff]   ;;  %v5366_v58 = vld [vmem:[#allocation2 + $0x28] ss:$16 sps:$4 sm:$0xff]   ;;  %v5368_v59 = vld [vmem:[#allocation2 + $0x2c] ss:$16 sps:$4 sm:$0xff]  }
  0x4a   :  { %2469 = vmatprep.subr.bf16.mxu0 %v5303_v13  ;;  %v5365_v57 = vld [vmem:[%s8174_s3 + $0x104] ss:$8 sps:$4 sm:$0xff]   ;;  %820 = vmatprep.subr.bf16.mxu1 %v5368_v59  ;;  %v5370_v62 = vld [vmem:[%s8171_s0 + $0xf0] sm:$0xff]   ;;  %v5374_v1 = vld [vmem:[%s8171_s0 + $0xf8] sm:$0xff]  }
  0x4b   :  { %v5369_v60 = vld [vmem:[%s8171_s0 + $0xe8] sm:$0xff]   ;;  %821 = vmatpush1.bf16.msra.mxu1 %v5366_v58  ;;  %v5871_v63 = vld [vmem:[%s8171_s0 + $0x70] sm:$0xff]   ;;  %v5884_v2 = vld [vmem:[%s8171_s0 + $0x78] sm:$0xff]  }
  0x4c   :  { %4760 = vmatmul.mubr.msk.bf16.gmra.mrb[4].mxu1 %vm368_vm0, %v5353_v47  ;;  %v5857_v61 = vld [vmem:[%s8171_s0 + $0x68] sm:$0xff]   ;;  %3752 = vmatprep.subr.bf16.mxu1 %v8183_v0  ;;  %v5894_v3 = vld [vmem:[%s8171_s0 + $0x80] sm:$0xff]   ;;  %v5927_v6 = vld [vmem:[%s8171_s0 + $0x98] sm:$0xff]  }
  0x4d   :  { %2470 = vmatpush1.bf16.msra.mxu0 %v5301_v14  ;;  %757 = vmatprep.mubr.bf16.mxu1 %v8183_v0  ;;  %v5905_v4 = vld [vmem:[%s8171_s0 + $0x88] sm:$0xff]   ;;  %v5938_v7 = vld [vmem:[%s8171_s0 + $0xa0] sm:$0xff]   ;;  %v5960_v9 = vld [vmem:[%s8171_s0 + $0xb0] sm:$0xff]  }
  0x4e   :  { %2471 = vmatprep.subr.bf16.mxu0 %v5307_v15  ;;  %v5949_v8 = vld [vmem:[%s8171_s0 + $0xa8] sm:$0xff]   ;;  %v5971_v10 = vld [vmem:[%s8171_s0 + $0xb8] sm:$0xff]   ;;  %v146_v14 = vld [vmem:[%s8173_s2] sm:$0xf] }
  0x4f   :  { %v5373_v42 = vld [vmem:[%s8174_s3 + $0x114] ss:$8 sps:$4 sm:$0xff]  }
  0x50   :  { %4737 = vmatmul.mubr.msk.bf16.gmra.mrb[8].mxu0 %vm368_vm0, %v5669_v16 }
  0x51   :  { %527 = vmatprep.mubr.bf16.mxu0 %v8183_v0  ;;  %2472 = vmatpush1.bf16.msra.mxu0 %v5305_v17 }
  0x52   :  { %2473 = vmatprep.subr.bf16.mxu0 %v5312_v18 }
  0x54   :  { %4761 = vmatmul.mubr.msk.bf16.gmra.mrb[8].mxu1 %vm368_vm0, %v5357_v51  ;;  %v5377_v51 = vld [vmem:[%s8174_s3 + $0x124] ss:$8 sps:$4 sm:$0xff]  }
  0x55   :  { %2474 = vmatpush1.bf16.msra.mxu0 %v5310_v19  ;;  %767 = vmatprep.mubr.bf16.mxu1 %v8183_v0 }
  0x56   :  { %2475 = vmatprep.subr.bf16.mxu0 %v5316_v20 }
  0x58   :  { %4738 = vmatmul.mubr.msk.bf16.gmra.mrb[12].mxu0 %vm368_vm0, %v5689_v21 }
  0x59   :  { %537 = vmatprep.mubr.bf16.mxu0 %v8183_v0  ;;  %2476 = vmatpush1.bf16.msra.mxu0 %v5314_v22 }
  0x5a   :  { %2477 = vmatprep.subr.bf16.mxu0 %v5321_v23 }
  0x5c   :  { %4762 = vmatmul.mubr.msk.bf16.gmra.mrb[12].mxu1 %vm368_vm0, %v5361_v53 }
  0x5d   :  { %2478 = vmatpush1.bf16.msra.mxu0 %v5319_v24  ;;  %777 = vmatprep.mubr.bf16.mxu1 %v8183_v0 }
  0x5e   :  { %2479 = vmatprep.subr.bf16.mxu0 %v5325_v26 }
  0x60   :  { %4739 = vmatmul.mubr.msk.bf16.gmra.mrb[16].mxu0 %vm368_vm0, %v5706_v25 }
  0x61   :  { %547 = vmatprep.mubr.bf16.mxu0 %v8183_v0  ;;  %2480 = vmatpush1.bf16.msra.mxu0 %v5323_v27 }
  0x62   :  { %2481 = vmatprep.subr.bf16.mxu0 %v5330_v28 }
  0x64   :  { %4763 = vmatmul.mubr.msk.bf16.gmra.mrb[16].mxu1 %vm368_vm0, %v5362_v55 }
  0x65   :  { %2482 = vmatpush1.bf16.msra.mxu0 %v5328_v29  ;;  %787 = vmatprep.mubr.bf16.mxu1 %v8183_v0 }
  0x66   :  { %2483 = vmatprep.subr.bf16.mxu0 %v5334_v30 }
  0x68   :  { %4740 = vmatmul.mubr.msk.bf16.gmra.mrb[20].mxu0 %vm368_vm0, %v5729_v31 }
  0x69   :  { %557 = vmatprep.mubr.bf16.mxu0 %v8183_v0  ;;  %2484 = vmatpush1.bf16.msra.mxu0 %v5332_v32 }
  0x6a   :  { %2485 = vmatprep.subr.bf16.mxu0 %v5339_v33 }
  0x6c   :  { %4764 = vmatmul.mubr.msk.bf16.gmra.mrb[20].mxu1 %vm368_vm0, %v5369_v60 }
  0x6d   :  { %2486 = vmatpush1.bf16.msra.mxu0 %v5337_v34  ;;  %797 = vmatprep.mubr.bf16.mxu1 %v8183_v0 }
  0x6e   :  { %2487 = vmatprep.subr.bf16.mxu0 %v5343_v35 }
  0x70   :  { %4741 = vmatmul.mubr.msk.bf16.gmra.mrb[24].mxu0 %vm368_vm0, %v5749_v36 }
  0x71   :  { %567 = vmatprep.mubr.bf16.mxu0 %v8183_v0  ;;  %2488 = vmatpush1.bf16.msra.mxu0 %v5341_v37 }
  0x72   :  { %2489 = vmatprep.subr.bf16.mxu0 %v5348_v40 }
  0x74   :  { %4765 = vmatmul.mubr.msk.bf16.gmra.mrb[24].mxu1 %vm368_vm0, %v5370_v62  ;;  %v5375_v62 = vld [vmem:[%s8174_s3 + $0x120] ss:$8 sps:$4 sm:$0xff]  }
  0x75   :  { %2490 = vmatpush1.bf16.msra.mxu0 %v5346_v39  ;;  %807 = vmatprep.mubr.bf16.mxu1 %v8183_v0  ;;  %v5363_v39 = vld [vmem:[%s8174_s3 + $0x100] ss:$8 sps:$4 sm:$0xff]  }
  0x76   :  { %2491 = vmatprep.subr.bf16.mxu0 %v5356_v44 }
  0x78   :  { %4742 = vmatmul.mubr.msk.bf16.gmra.mrb[28].mxu0 %vm368_vm0, %v5760_v38 }
  0x79   :  { %577 = vmatprep.mubr.bf16.mxu0 %v8183_v0  ;;  %2492 = vmatpush1.bf16.msra.mxu0 %v5354_v46 }
  0x7a   :  { %2493 = vmatprep.subr.bf16.mxu0 %v5360_v48 }
  0x7c   :  { %4766 = vmatmul.mubr.msk.bf16.gmra.mrb[28].mxu1 %vm368_vm0, %v5374_v1 }
  0x7d   :  { %2494 = vmatpush1.bf16.msra.mxu0 %v5358_v49  ;;  %850 = vmatprep.mubr.bf16.mxu1 %v8183_v0  ;;  %v5371_v49 = vld [vmem:[%s8174_s3 + $0x110] ss:$8 sps:$4 sm:$0xff]  }
  0x7e   :  { %2816 = vmatprep.subr.bf16.mxu0 %v5365_v57 }
  0x80   :  { %4743 = vmatmul.mubr.msk.bf16.gmra.mrb[32].mxu0 %vm368_vm0, %v5781_v45 }
  0x81   :  { %587 = vmatprep.mubr.bf16.mxu0 %v8183_v0 }
  0x84   :  { %4767 = vmatmul.mubr.msk.bf16.vlgmr.msra.gmra.mrb[32].mxu1 %vm368_vm0, %v5626_v5  ;;  %v5916_v5 = vld [vmem:[%s8171_s0 + $0x90] sm:$0xff]  }
  0x85   :  { %860 = vmatprep.mubr.bf16.mxu1 %v8183_v0 }
  0x88   :  { %4744 = vmatmul.mubr.msk.bf16.gmra.mrb[36].mxu0 %vm368_vm0, %v5802_v50 }
  0x89   :  { %597 = vmatprep.mubr.bf16.mxu0 %v8183_v0 }
  0x8c   :  { %4768 = vmatmul.mubr.msk.bf16.gmra.mrb[36].mxu1 %vm368_vm0, %v5649_v11  ;;  %v148_v11 = vlaneseq }
  0x8d   :  { %870 = vmatprep.mubr.bf16.mxu1 %v8183_v0 }
  0x8e   :  { %v5984_v12 = vshrl.u32 %v148_v11, 7 }
  0x90   :  { %4745 = vmatmul.mubr.msk.bf16.gmra.mrb[40].mxu0 %vm368_vm0, %v5817_v52  ;;  %8244 = vst [vmem:[#allocation9_spill] sm:$0xff] %v5984_v12  ;;  %v8182_v13 = vsub.s32 0, %v5984_v12  ;;  %v8181_v15 = vsub.s32 1, %v5984_v12 }
  0x91   :  { %607 = vmatprep.mubr.bf16.mxu0 %v8183_v0 }
  0x92   :  { %v6000_v17 = vrot.slane %v146_v14, %v8181_v15 }
  0x94   :  { %4769 = vmatmul.mubr.msk.bf16.gmra.mrb[40].mxu1 %vm368_vm0, %v5669_v16  ;;  %v5996_v16 = vrot.slane %v146_v14, %v8182_v13  ;;  %v5380_v14 = vld [vmem:[%s8174_s3 + $0x134] ss:$8 sps:$4 sm:$0xff]  }
  0x95   :  { %880 = vmatprep.mubr.bf16.mxu1 %v8183_v0 }
  0x98   :  { %4746 = vmatmul.mubr.msk.bf16.gmra.mrb[44].mxu0 %vm368_vm0, %v5829_v54 }
  0x99   :  { %617 = vmatprep.mubr.bf16.mxu0 %v8183_v0 }
  0x9c   :  { %4770 = vmatmul.mubr.msk.bf16.gmra.mrb[44].mxu1 %vm368_vm0, %v5689_v21 }
  0x9d   :  { %890 = vmatprep.mubr.bf16.mxu1 %v8183_v0 }
  0xa0   :  { %4747 = vmatmul.mubr.msk.bf16.gmra.mrb[48].mxu0 %vm368_vm0, %v5842_v56 }
  0xa1   :  { %627 = vmatprep.mubr.bf16.mxu0 %v8183_v0 }
  0xa4   :  { %4771 = vmatmul.mubr.msk.bf16.gmra.mrb[48].mxu1 %vm368_vm0, %v5706_v25 }
  0xa5   :  { %900 = vmatprep.mubr.bf16.mxu1 %v8183_v0 }
  0xa8   :  { %4748 = vmatmul.mubr.msk.bf16.gmra.mrb[52].mxu0 %vm368_vm0, %v5857_v61 }
  0xa9   :  { %637 = vmatprep.mubr.bf16.mxu0 %v8183_v0 }
  0xac   :  { %4772 = vmatmul.mubr.msk.bf16.gmra.mrb[52].mxu1 %vm368_vm0, %v5729_v31 }
  0xad   :  { %910 = vmatprep.mubr.bf16.mxu1 %v8183_v0 }
  0xb0   :  { %4749 = vmatmul.mubr.msk.bf16.gmra.mrb[56].mxu0 %vm368_vm0, %v5871_v63 }
  0xb1   :  { %647 = vmatprep.mubr.bf16.mxu0 %v8183_v0 }
  0xb4   :  { %4773 = vmatmul.mubr.msk.bf16.gmra.mrb[56].mxu1 %vm368_vm0, %v5749_v36 }
  0xb5   :  { %920 = vmatprep.mubr.bf16.mxu1 %v8183_v0 }
  0xb8   :  { %4750 = vmatmul.mubr.msk.bf16.gmra.mrb[60].mxu0 %vm368_vm0, %v5884_v2 }
  0xb9   :  { %657 = vmatprep.mubr.bf16.mxu0 %v8183_v0 }
  0xbc   :  { %4774 = vmatmul.mubr.msk.bf16.gmra.mrb[60].mxu1 %vm368_vm0, %v5760_v38 }
  0xbd   :  { %930 = vmatprep.mubr.bf16.mxu1 %v8183_v0 }
  0xc0   :  { %4751 = vmatmul.mubr.msk.bf16.gmra.mrb[64].mxu0 %vm368_vm0, %v5894_v3 }
  0xc1   :  { %667 = vmatprep.mubr.bf16.mxu0 %v8183_v0 }
  0xc4   :  { %4775 = vmatmul.mubr.msk.bf16.gmra.mrb[64].mxu1 %vm368_vm0, %v5781_v45 }
  0xc5   :  { %940 = vmatprep.mubr.bf16.mxu1 %v8183_v0 }
  0xc8   :  { %4752 = vmatmul.mubr.msk.bf16.gmra.mrb[68].mxu0 %vm368_vm0, %v5905_v4 }
  0xc9   :  { %677 = vmatprep.mubr.bf16.mxu0 %v8183_v0 }
  0xcc   :  { %4776 = vmatmul.mubr.msk.bf16.gmra.mrb[68].mxu1 %vm368_vm0, %v5802_v50 }
  0xcd   :  { %950 = vmatprep.mubr.bf16.mxu1 %v8183_v0 }
  0xd0   :  { %4753 = vmatmul.mubr.msk.bf16.gmra.mrb[72].mxu0 %vm368_vm0, %v5916_v5 }
  0xd1   :  { %687 = vmatprep.mubr.bf16.mxu0 %v8183_v0 }
  0xd4   :  { %4777 = vmatmul.mubr.msk.bf16.gmra.mrb[72].mxu1 %vm368_vm0, %v5817_v52 }
  0xd5   :  { %960 = vmatprep.mubr.bf16.mxu1 %v8183_v0 }
  0xd8   :  { %4754 = vmatmul.mubr.msk.bf16.gmra.mrb[76].mxu0 %vm368_vm0, %v5927_v6 }
  0xd9   :  { %697 = vmatprep.mubr.bf16.mxu0 %v8183_v0 }
  0xdc   :  { %4778 = vmatmul.mubr.msk.bf16.gmra.mrb[76].mxu1 %vm368_vm0, %v5829_v54 }
  0xdd   :  { %970 = vmatprep.mubr.bf16.mxu1 %v8183_v0 }
  0xe0   :  { %4755 = vmatmul.mubr.msk.bf16.gmra.mrb[80].mxu0 %vm368_vm0, %v5938_v7 }
  0xe1   :  { %707 = vmatprep.mubr.bf16.mxu0 %v8183_v0 }
  0xe4   :  { %4779 = vmatmul.mubr.msk.bf16.gmra.mrb[80].mxu1 %vm368_vm0, %v5842_v56 }
  0xe5   :  { %980 = vmatprep.mubr.bf16.mxu1 %v8183_v0 }
  0xe8   :  { %4756 = vmatmul.mubr.msk.bf16.gmra.mrb[84].mxu0 %vm368_vm0, %v5949_v8 }
  0xe9   :  { %717 = vmatprep.mubr.bf16.mxu0 %v8183_v0 }
  0xec   :  { %4780 = vmatmul.mubr.msk.bf16.gmra.mrb[84].mxu1 %vm368_vm0, %v5857_v61 }
  0xed   :  { %990 = vmatprep.mubr.bf16.mxu1 %v8183_v0 }
  0xf0   :  { %4757 = vmatmul.mubr.msk.bf16.gmra.mrb[88].mxu0 %vm368_vm0, %v5960_v9 }
  0xf1   :  { %727 = vmatprep.mubr.bf16.mxu0 %v8183_v0 }
  0xf4   :  { %4781 = vmatmul.mubr.msk.bf16.gmra.mrb[88].mxu1 %vm368_vm0, %v5871_v63 }
  0xf5   :  { %1000 = vmatprep.mubr.bf16.mxu1 %v8183_v0 }
  0xf8   :  { %4758 = vmatmul.mubr.msk.bf16.gmra.mrb[92].mxu0 %vm368_vm0, %v5971_v10 }
  0xfc   :  { %4782 = vmatmul.mubr.msk.bf16.gmra.mrb[92].mxu1 %vm368_vm0, %v5884_v2 }
  0xfd   :  { %1010 = vmatprep.mubr.bf16.mxu1 %v8183_v0 }
 0x104   :  { %4783 = vmatmul.mubr.msk.bf16.gmra.mrb[96].mxu1 %vm368_vm0, %v5894_v3 }
 0x105   :  { %1020 = vmatprep.mubr.bf16.mxu1 %v8183_v0 }
 0x10c   :  { %4784 = vmatmul.mubr.msk.bf16.gmra.mrb[100].mxu1 %vm368_vm0, %v5905_v4 }
 0x10d   :  { %1030 = vmatprep.mubr.bf16.mxu1 %v8183_v0 }
 0x113   :  { %v499_v18 = vpop.f32.mrb[0].mxu0 }
 0x114   :  { %v500_v19 = vadd.f32 %v499_v18, %v5996_v16  ;;  %v501_v20 = vpop.f32.mrb[1].mxu0  ;;  %4785 = vmatmul.mubr.msk.bf16.gmra.mrb[104].mxu1 %vm368_vm0, %v5916_v5 }
 0x115   :  { %v502_v21 = vadd.f32 %v501_v20, %v6000_v17  ;;  %v503_v22 = vpop.f32.mrb[2].mxu0  ;;  %1040 = vmatprep.mubr.bf16.mxu1 %v8183_v0 }
 0x116   :  { %v1427_v23 = vmul.f32 0.2, %v500_v19  ;;  %v504_v24 = vadd.f32 %v503_v22, %v5996_v16  ;;  %v505_v25 = vpop.f32.mrb[3].mxu0  ;;  %vm1171_vm1 = vcmp.gt.f32.partialorder %v500_v19, 0.0 }
 0x117   :  { %v1428_v26 = vmul.f32 0.2, %v502_v21  ;;  %v506_v27 = vadd.f32 %v505_v25, %v6000_v17  ;;  %vm1172_vm2 = vcmp.gt.f32.partialorder %v502_v21, 0.0  ;;  %v5383_v25 = vld [vmem:[%s8174_s3 + $0x144] ss:$8 sps:$4 sm:$0xff]  }
 0x118   :  { %vm1175_vm3 = vcmp.gt.f32.partialorder %v504_v24, 0.0  ;;  %v1431_v28 = vmul.f32 0.2, %v504_v24  ;;  %v1683_v30 = vsel %vm1171_vm1, %v500_v19, %v1427_v23  ;;  %v5378_v23 = vld [vmem:[%s8174_s3 + $0x130] ss:$8 sps:$4 sm:$0xff]  }
 0x119   :  { %vm1176_vm4 = vcmp.gt.f32.partialorder %v506_v27, 0.0  ;;  %v1432_v29 = vmul.f32 0.2, %v506_v27  ;;  %v1684_v34 = vsel %vm1172_vm2, %v502_v21, %v1428_v26 }
 0x11a   :  { %v1687_v31 = vsel %vm1175_vm3, %v504_v24, %v1431_v28 }
 0x11b   :  { %v1939_v32 = vpack.c.bf16 %v1687_v31, %v1683_v30  ;;  %v509_v33 = vpop.f32.mrb[4].mxu0  ;;  %v1688_v35 = vsel %vm1176_vm4, %v506_v27, %v1432_v29 }
 0x11c   :  { %v510_v36 = vadd.f32 %v509_v33, %v5996_v16  ;;  %v511_v37 = vpop.f32.mrb[5].mxu0  ;;  %v1940_v38 = vpack.c.bf16 %v1688_v35, %v1684_v34  ;;  %v5381_v35 = vld [vmem:[%s8174_s3 + $0x140] ss:$8 sps:$4 sm:$0xff]   ;;  %4786 = vmatmul.mubr.msk.bf16.gmra.mrb[108].mxu1 %vm368_vm0, %v5927_v6 }
 0x11d   :  { %v512_v40 = vadd.f32 %v511_v37, %v6000_v17  ;;  %v513_v41 = vpop.f32.mrb[6].mxu0  ;;  %1050 = vmatprep.mubr.bf16.mxu1 %v8183_v0 }
 0x11e   :  { %v1435_v43 = vmul.f32 0.2, %v510_v36  ;;  %v514_v44 = vadd.f32 %v513_v41, %v5996_v16  ;;  %v515_v45 = vpop.f32.mrb[7].mxu0  ;;  %2495 = vmatprep.mubr.bf16.mxu0 %v1940_v38  ;;  %vm1179_vm5 = vcmp.gt.f32.partialorder %v510_v36, 0.0  ;;  %v5386_v38 = vld [vmem:[%s8174_s3 + $0x154] ss:$8 sps:$4 sm:$0xff]  }
 0x11f   :  { %v1436_v46 = vmul.f32 0.2, %v512_v40  ;;  %v516_v47 = vadd.f32 %v515_v45, %v6000_v17  ;;  %2496 = vmatmul.mubr.bf16.vlgmr.msra.gmra.mrb[96].mxu0 %v1939_v32  ;;  %vm1180_vm6 = vcmp.gt.f32.partialorder %v512_v40, 0.0 }
 0x120   :  { %vm1183_vm7 = vcmp.gt.f32.partialorder %v514_v44, 0.0  ;;  %v1439_v48 = vmul.f32 0.2, %v514_v44  ;;  %2817 = vmatpush1.bf16.msra.mxu0 %v5363_v39  ;;  %v1691_v52 = vsel %vm1179_vm5, %v510_v36, %v1435_v43 }
 0x121   :  { %vm1184_vm8 = vcmp.gt.f32.partialorder %v516_v47, 0.0  ;;  %v1440_v50 = vmul.f32 0.2, %v516_v47  ;;  %2818 = vmatprep.subr.bf16.mxu0 %v5373_v42  ;;  %v1692_v55 = vsel %vm1180_vm6, %v512_v40, %v1436_v46  ;;  %v5389_v46 = vld [vmem:[%s8174_s3 + $0x164] ss:$8 sps:$4 sm:$0xff]  }
 0x122   :  { %v1695_v53 = vsel %vm1183_vm7, %v514_v44, %v1439_v48  ;;  %v5384_v44 = vld [vmem:[%s8174_s3 + $0x150] ss:$8 sps:$4 sm:$0xff]  }
 0x123   :  { %v519_v54 = vpop.f32.mrb[8].mxu0  ;;  %v1696_v56 = vsel %vm1184_vm8, %v516_v47, %v1440_v50  ;;  %v1943_v57 = vpack.c.bf16 %v1695_v53, %v1691_v52 }
 0x124   :  { %v520_v58 = vadd.f32 %v519_v54, %v5996_v16  ;;  %v521_v59 = vpop.f32.mrb[9].mxu0  ;;  %v1944_v60 = vpack.c.bf16 %v1696_v56, %v1692_v55  ;;  %2819 = vmatpush1.bf16.msra.mxu0 %v5371_v49  ;;  %v5387_v56 = vld [vmem:[%s8174_s3 + $0x160] ss:$8 sps:$4 sm:$0xff]   ;;  %4787 = vmatmul.mubr.msk.bf16.gmra.mrb[112].mxu1 %vm368_vm0, %v5938_v7 }
 0x125   :  { %v522_v1 = vadd.f32 %v521_v59, %v6000_v17  ;;  %v523_v11 = vpop.f32.mrb[10].mxu0  ;;  %2820 = vmatprep.subr.bf16.mxu0 %v5377_v51  ;;  %v5392_v59 = vld [vmem:[%s8174_s3 + $0x174] ss:$8 sps:$4 sm:$0xff]   ;;  %1060 = vmatprep.mubr.bf16.mxu1 %v8183_v0 }
 0x126   :  { %v1443_v18 = vmul.f32 0.2, %v520_v58  ;;  %v524_v19 = vadd.f32 %v523_v11, %v5996_v16  ;;  %v525_v20 = vpop.f32.mrb[11].mxu0  ;;  %2505 = vmatprep.mubr.bf16.mxu0 %v1944_v60  ;;  %vm1187_vm9 = vcmp.gt.f32.partialorder %v520_v58, 0.0 }
 0x127   :  { %v1444_v21 = vmul.f32 0.2, %v522_v1  ;;  %v526_v22 = vadd.f32 %v525_v20, %v6000_v17  ;;  %2506 = vmatmul.mubr.bf16.gmra.mrb[100].mxu0 %v1943_v57  ;;  %vm1188_vm10 = vcmp.gt.f32.partialorder %v522_v1, 0.0  ;;  %v5395_v20 = vld [vmem:[%s8174_s3 + $0x184] ss:$8 sps:$4 sm:$0xff]  }
 0x128   :  { %vm1191_vm11 = vcmp.gt.f32.partialorder %v524_v19, 0.0  ;;  %v1447_v61 = vmul.f32 0.2, %v524_v19  ;;  %2821 = vmatpush1.bf16.msra.mxu0 %v5375_v62  ;;  %v1699_v26 = vsel %vm1187_vm9, %v520_v58, %v1443_v18  ;;  %v5390_v18 = vld [vmem:[%s8174_s3 + $0x170] ss:$8 sps:$4 sm:$0xff]  }
 0x129   :  { %vm1192_vm12 = vcmp.gt.f32.partialorder %v526_v22, 0.0  ;;  %v1448_v24 = vmul.f32 0.2, %v526_v22  ;;  %2822 = vmatprep.subr.bf16.mxu0 %v5380_v14  ;;  %v1700_v29 = vsel %vm1188_vm10, %v522_v1, %v1444_v21 }
 0x12a   :  { %v1703_v27 = vsel %vm1191_vm11, %v524_v19, %v1447_v61 }
 0x12b   :  { %v529_v28 = vpop.f32.mrb[12].mxu0  ;;  %v1704_v30 = vsel %vm1192_vm12, %v526_v22, %v1448_v24  ;;  %v1947_v31 = vpack.c.bf16 %v1703_v27, %v1699_v26 }
 0x12c   :  { %v530_v32 = vadd.f32 %v529_v28, %v5996_v16  ;;  %v531_v33 = vpop.f32.mrb[13].mxu0  ;;  %v1948_v34 = vpack.c.bf16 %v1704_v30, %v1700_v29  ;;  %2823 = vmatpush1.bf16.msra.mxu0 %v5378_v23  ;;  %v5393_v29 = vld [vmem:[%s8174_s3 + $0x180] ss:$8 sps:$4 sm:$0xff]   ;;  %4788 = vmatmul.mubr.msk.bf16.gmra.mrb[116].mxu1 %vm368_vm0, %v5949_v8 }
 0x12d   :  { %v532_v36 = vadd.f32 %v531_v33, %v6000_v17  ;;  %v533_v37 = vpop.f32.mrb[14].mxu0  ;;  %2824 = vmatprep.subr.bf16.mxu0 %v5383_v25  ;;  %1070 = vmatprep.mubr.bf16.mxu1 %v8183_v0 }
 0x12e   :  { %v1451_v39 = vmul.f32 0.2, %v530_v32  ;;  %v534_v40 = vadd.f32 %v533_v37, %v5996_v16  ;;  %v535_v41 = vpop.f32.mrb[15].mxu0  ;;  %2515 = vmatprep.mubr.bf16.mxu0 %v1948_v34  ;;  %vm1195_vm13 = vcmp.gt.f32.partialorder %v530_v32, 0.0 }
 0x12f   :  { %v1452_v42 = vmul.f32 0.2, %v532_v36  ;;  %v536_v43 = vadd.f32 %v535_v41, %v6000_v17  ;;  %2516 = vmatmul.mubr.bf16.gmra.mrb[104].mxu0 %v1947_v31  ;;  %vm1196_vm14 = vcmp.gt.f32.partialorder %v532_v36, 0.0 }
 0x130   :  { %vm1199_vm15 = vcmp.gt.f32.partialorder %v534_v40, 0.0  ;;  %v1455_v63 = vmul.f32 0.2, %v534_v40  ;;  %2825 = vmatpush1.bf16.msra.mxu0 %v5381_v35  ;;  %v1707_v47 = vsel %vm1195_vm13, %v530_v32, %v1451_v39  ;;  %v5398_v32 = vld [vmem:[%s8174_s3 + $0x194] ss:$8 sps:$4 sm:$0xff]  }
 0x131   :  { %vm1200_vm1 = vcmp.gt.f32.partialorder %v536_v43, 0.0  ;;  %v1456_v45 = vmul.f32 0.2, %v536_v43  ;;  %2826 = vmatprep.subr.bf16.mxu0 %v5386_v38  ;;  %v1708_v50 = vsel %vm1196_vm14, %v532_v36, %v1452_v42  ;;  %v5396_v38 = vld [vmem:[%s8174_s3 + $0x190] ss:$8 sps:$4 sm:$0xff]  }
 0x132   :  { %v1711_v48 = vsel %vm1199_vm15, %v534_v40, %v1455_v63  ;;  %v5401_v42 = vld [vmem:[%s8174_s3 + $0x1a4] ss:$8 sps:$4 sm:$0xff]  }
 0x133   :  { %v539_v49 = vpop.f32.mrb[16].mxu0  ;;  %v1712_v51 = vsel %vm1200_vm1, %v536_v43, %v1456_v45  ;;  %v1951_v52 = vpack.c.bf16 %v1711_v48, %v1707_v47 }
 0x134   :  { %v540_v53 = vadd.f32 %v539_v49, %v5996_v16  ;;  %v541_v54 = vpop.f32.mrb[17].mxu0  ;;  %v1952_v55 = vpack.c.bf16 %v1712_v51, %v1708_v50  ;;  %2827 = vmatpush1.bf16.msra.mxu0 %v5384_v44  ;;  %v5399_v49 = vld [vmem:[%s8174_s3 + $0x1a0] ss:$8 sps:$4 sm:$0xff]   ;;  %4789 = vmatmul.mubr.msk.bf16.gmra.mrb[120].mxu1 %vm368_vm0, %v5960_v9 }
 0x135   :  { %v542_v57 = vadd.f32 %v541_v54, %v6000_v17  ;;  %v543_v58 = vpop.f32.mrb[18].mxu0  ;;  %2828 = vmatprep.subr.bf16.mxu0 %v5389_v46  ;;  %1080 = vmatprep.mubr.bf16.mxu1 %v8183_v0 }
 0x136   :  { %v1459_v60 = vmul.f32 0.2, %v540_v53  ;;  %v544_v62 = vadd.f32 %v543_v58, %v5996_v16  ;;  %v545_v1 = vpop.f32.mrb[19].mxu0  ;;  %2525 = vmatprep.mubr.bf16.mxu0 %v1952_v55  ;;  %vm1203_vm2 = vcmp.gt.f32.partialorder %v540_v53, 0.0 }
 0x137   :  { %v1460_v11 = vmul.f32 0.2, %v542_v57  ;;  %v546_v14 = vadd.f32 %v545_v1, %v6000_v17  ;;  %2526 = vmatmul.mubr.bf16.gmra.mrb[108].mxu0 %v1951_v52  ;;  %vm1204_vm3 = vcmp.gt.f32.partialorder %v542_v57, 0.0 }
 0x138   :  { %vm1207_vm4 = vcmp.gt.f32.partialorder %v544_v62, 0.0  ;;  %v1463_v2 = vmul.f32 0.2, %v544_v62  ;;  %2829 = vmatpush1.bf16.msra.mxu0 %v5387_v56  ;;  %v1715_v21 = vsel %vm1203_vm2, %v540_v53, %v1459_v60 }
 0x139   :  { %vm1208_vm5 = vcmp.gt.f32.partialorder %v546_v14, 0.0  ;;  %v1464_v19 = vmul.f32 0.2, %v546_v14  ;;  %2830 = vmatprep.subr.bf16.mxu0 %v5392_v59  ;;  %v1716_v23 = vsel %vm1204_vm3, %v542_v57, %v1460_v11 }
 0x13a   :  { %v1719_v22 = vsel %vm1207_vm4, %v544_v62, %v1463_v2 }
 0x13b   :  { %v549_v61 = vpop.f32.mrb[20].mxu0  ;;  %v1720_v24 = vsel %vm1208_vm5, %v546_v14, %v1464_v19  ;;  %v1955_v25 = vpack.c.bf16 %v1719_v22, %v1715_v21 }
 0x13c   :  { %v550_v26 = vadd.f32 %v549_v61, %v5996_v16  ;;  %v551_v27 = vpop.f32.mrb[21].mxu0  ;;  %v1956_v28 = vpack.c.bf16 %v1720_v24, %v1716_v23  ;;  %2831 = vmatpush1.bf16.msra.mxu0 %v5390_v18  ;;  %v739_v23 = vpop.f32.mrb[0].mxu1  ;;  %4790 = vmatmul.mubr.msk.bf16.gmra.mrb[124].mxu1 %vm368_vm0, %v5971_v10 }
 0x13d   :  { %v552_v30 = vadd.f32 %v551_v27, %v6000_v17  ;;  %v553_v31 = vpop.f32.mrb[22].mxu0  ;;  %2832 = vmatprep.subr.bf16.mxu0 %v5395_v20  ;;  %1090 = vmatprep.mubr.bf16.mxu1 %v8183_v0 }
 0x13e   :  { %v1467_v33 = vmul.f32 0.2, %v550_v26  ;;  %v554_v34 = vadd.f32 %v553_v31, %v5996_v16  ;;  %v555_v35 = vpop.f32.mrb[23].mxu0  ;;  %2535 = vmatprep.mubr.bf16.mxu0 %v1956_v28  ;;  %vm1211_vm6 = vcmp.gt.f32.partialorder %v550_v26, 0.0  ;;  %v5402_v31 = vld [vmem:[%s8174_s3 + $0x1b0] ss:$8 sps:$4 sm:$0xff]  }
 0x13f   :  { %v1468_v36 = vmul.f32 0.2, %v552_v30  ;;  %v556_v37 = vadd.f32 %v555_v35, %v6000_v17  ;;  %2536 = vmatmul.mubr.bf16.gmra.mrb[112].mxu0 %v1955_v25  ;;  %vm1212_vm7 = vcmp.gt.f32.partialorder %v552_v30, 0.0 }
 0x140   :  { %vm1215_vm8 = vcmp.gt.f32.partialorder %v554_v34, 0.0  ;;  %v1471_v3 = vmul.f32 0.2, %v554_v34  ;;  %2833 = vmatpush1.bf16.msra.mxu0 %v5393_v29  ;;  %v1723_v40 = vsel %vm1211_vm6, %v550_v26, %v1467_v33  ;;  %v741_v26 = vpop.f32.mrb[1].mxu1 }
 0x141   :  { %vm1216_vm9 = vcmp.gt.f32.partialorder %v556_v37, 0.0  ;;  %v1472_v39 = vmul.f32 0.2, %v556_v37  ;;  %2834 = vmatprep.subr.bf16.mxu0 %v5398_v32  ;;  %v1724_v63 = vsel %vm1212_vm7, %v552_v30, %v1468_v36  ;;  %v743_v27 = vpop.f32.mrb[2].mxu1  ;;  %v6123_v30 = vadd.f32 %v739_v23, %v5996_v16 }
 0x142   :  { %v1727_v41 = vsel %vm1215_vm8, %v554_v34, %v1471_v3  ;;  %v745_v32 = vpop.f32.mrb[3].mxu1  ;;  %v5404_v34 = vld [vmem:[%s8174_s3 + $0x1b4] ss:$8 sps:$4 sm:$0xff]   ;;  %v742_v35 = vadd.f32 %v741_v26, %v6000_v17  ;;  %v6133_v36 = vadd.f32 %v743_v27, %v5996_v16 }
 0x143   :  { %v559_v43 = vpop.f32.mrb[24].mxu0  ;;  %v1728_v44 = vsel %vm1216_vm9, %v556_v37, %v1472_v39  ;;  %v1959_v45 = vpack.c.bf16 %v1727_v41, %v1723_v40  ;;  %v746_v37 = vadd.f32 %v745_v32, %v6000_v17  ;;  %v1619_v41 = vmul.f32 0.2, %v6123_v30 }
 0x144   :  { %v560_v46 = vadd.f32 %v559_v43, %v5996_v16  ;;  %v561_v47 = vpop.f32.mrb[25].mxu0  ;;  %v1960_v48 = vpack.c.bf16 %v1728_v44, %v1724_v63  ;;  %2835 = vmatpush1.bf16.msra.mxu0 %v5396_v38  ;;  %v1620_v44 = vmul.f32 0.2, %v742_v35  ;;  %vm1364_vm3 = vcmp.gt.f32.partialorder %v742_v35, 0.0 }
 0x145   :  { %v562_v50 = vadd.f32 %v561_v47, %v6000_v17  ;;  %v563_v51 = vpop.f32.mrb[26].mxu0  ;;  %2836 = vmatprep.subr.bf16.mxu0 %v5401_v42  ;;  %vm1368_vm4 = vcmp.gt.f32.partialorder %v746_v37, 0.0  ;;  %vm1363_vm9 = vcmp.gt.f32.partialorder %v6123_v30, 0.0 }
 0x146   :  { %v1475_v52 = vmul.f32 0.2, %v560_v46  ;;  %v564_v53 = vadd.f32 %v563_v51, %v5996_v16  ;;  %v565_v54 = vpop.f32.mrb[27].mxu0  ;;  %2545 = vmatprep.mubr.bf16.mxu0 %v1960_v48  ;;  %vm1219_vm10 = vcmp.gt.f32.partialorder %v560_v46, 0.0  ;;  %v1624_v48 = vmul.f32 0.2, %v746_v37 }
 0x147   :  { %v1476_v55 = vmul.f32 0.2, %v562_v50  ;;  %v566_v56 = vadd.f32 %v565_v54, %v6000_v17  ;;  %2546 = vmatmul.mubr.bf16.gmra.mrb[116].mxu0 %v1959_v45  ;;  %vm1220_vm11 = vcmp.gt.f32.partialorder %v562_v50, 0.0  ;;  %v6140_v45 = vmul.f32 0.2, %v6133_v36 }
 0x148   :  { %vm1223_vm12 = vcmp.gt.f32.partialorder %v564_v53, 0.0  ;;  %v1479_v57 = vmul.f32 0.2, %v564_v53  ;;  %2837 = vmatpush1.bf16.msra.mxu0 %v5399_v49  ;;  %v1731_v58 = vsel %vm1219_vm10, %v560_v46, %v1475_v52  ;;  %v749_v49 = vpop.f32.mrb[4].mxu1  ;;  %vm1367_vm10 = vcmp.gt.f32.partialorder %v6133_v36, 0.0 }
 0x149   :  { %vm1224_vm13 = vcmp.gt.f32.partialorder %v566_v56, 0.0  ;;  %v1480_v4 = vmul.f32 0.2, %v566_v56  ;;  %v1732_v62 = vsel %vm1220_vm11, %v562_v50, %v1476_v55  ;;  %2838 = vmatprep.subr.bf16.mxu0 %v5404_v34  ;;  %v751_v6 = vpop.f32.mrb[5].mxu1  ;;  %v6191_v34 = vsel %vm1363_vm9, %v6123_v30, %v1619_v41 }
 0x14a   :  { %v1735_v59 = vsel %vm1223_vm12, %v564_v53, %v1479_v57  ;;  %v6148_v53 = vadd.f32 %v749_v49, %v5996_v16  ;;  %v753_v57 = vpop.f32.mrb[6].mxu1 }
 0x14b   :  { %v569_v60 = vpop.f32.mrb[28].mxu0  ;;  %v1736_v1 = vsel %vm1224_vm13, %v566_v56, %v1480_v4  ;;  %v1963_v11 = vpack.c.bf16 %v1735_v59, %v1731_v58  ;;  %v6152_v56 = vadd.f32 %v751_v6, %v6000_v17 }
 0x14c   :  { %v570_v14 = vadd.f32 %v569_v60, %v5996_v16  ;;  %v571_v2 = vpop.f32.mrb[29].mxu0  ;;  %v1964_v18 = vpack.c.bf16 %v1736_v1, %v1732_v62  ;;  %2839 = vmatpush1.bf16.msra.mxu0 %v5402_v31  ;;  %v6155_v59 = vmul.f32 0.2, %v6148_v53  ;;  %v755_v60 = vpop.f32.mrb[7].mxu1 }
 0x14d   :  { %v572_v19 = vadd.f32 %v571_v2, %v6000_v17  ;;  %v573_v20 = vpop.f32.mrb[30].mxu0  ;;  %v6161_v2 = vadd.f32 %v753_v57, %v5996_v16 }
 0x14e   :  { %vm1227_vm14 = vcmp.gt.f32.partialorder %v570_v14, 0.0  ;;  %v1483_v21 = vmul.f32 0.2, %v570_v14  ;;  %v574_v22 = vadd.f32 %v573_v20, %v5996_v16  ;;  %v575_v61 = vpop.f32.mrb[31].mxu0  ;;  %2555 = vmatprep.mubr.bf16.mxu0 %v1964_v18  ;;  %v6164_v18 = vadd.f32 %v755_v60, %v6000_v17  ;;  %v5405_v20 = vld [vmem:[%s8174_s3 + $0x1c0] ss:$8 sps:$4 sm:$0xff]  }
 0x14f   :  { %v1484_v24 = vmul.f32 0.2, %v572_v19  ;;  %v576_v25 = vadd.f32 %v575_v61, %v6000_v17  ;;  %2556 = vmatmul.mubr.bf16.gmra.mrb[120].mxu0 %v1963_v11  ;;  %vm1228_vm15 = vcmp.gt.f32.partialorder %v572_v19, 0.0  ;;  %v6158_v11 = vmul.f32 0.2, %v6152_v56 }
 0x150   :  { %vm1231_vm1 = vcmp.gt.f32.partialorder %v574_v22, 0.0  ;;  %v1487_v5 = vmul.f32 0.2, %v574_v22  ;;  %v1739_v29 = vsel %vm1227_vm14, %v570_v14, %v1483_v21  ;;  %v5407_v21 = vld [vmem:[%s8174_s3 + $0x1c4] ss:$8 sps:$4 sm:$0xff]  }
 0x151   :  { %vm1232_vm2 = vcmp.gt.f32.partialorder %v576_v25, 0.0  ;;  %v1488_v28 = vmul.f32 0.2, %v576_v25  ;;  %v1740_v38 = vsel %vm1228_vm15, %v572_v19, %v1484_v24  ;;  %v6167_v19 = vsel %vm1364_vm3, %v742_v35, %v1620_v44  ;;  %2840 = vmatprep.subr.bf16.mxu0 %v5407_v21 }
 0x152   :  { %v1743_v33 = vsel %vm1231_vm1, %v574_v22, %v1487_v5  ;;  %v6176_v24 = vsel %vm1368_vm4, %v746_v37, %v1624_v48  ;;  %v6181_v27 = vmul.f32 0.2, %v6161_v2  ;;  %2841 = vmatpush1.bf16.msra.mxu0 %v5405_v20  ;;  %vm1372_vm15 = vcmp.gt.f32.partialorder %v6152_v56, 0.0 }
 0x153   :  { %v579_v3 = vpop.f32.mrb[32].mxu0  ;;  %v1744_v39 = vsel %vm1232_vm2, %v576_v25, %v1488_v28  ;;  %v1967_v40 = vpack.c.bf16 %v1743_v33, %v1739_v29  ;;  %v1632_v28 = vmul.f32 0.2, %v6164_v18  ;;  %v759_v33 = vpop.f32.mrb[8].mxu1  ;;  %vm1376_vm1 = vcmp.gt.f32.partialorder %v6164_v18, 0.0 }
 0x154   :  { %v580_v42 = vadd.f32 %v579_v3, %v5996_v16  ;;  %v581_v43 = vpop.f32.mrb[33].mxu0  ;;  %v1968_v63 = vpack.c.bf16 %v1744_v39, %v1740_v38  ;;  %v6196_v3 = vadd.f32 %v759_v33, %v5996_v16  ;;  %v761_v38 = vpop.f32.mrb[9].mxu1  ;;  %vm1371_vm2 = vcmp.gt.f32.partialorder %v6148_v53, 0.0 }
 0x155   :  { %v582_v46 = vadd.f32 %v581_v43, %v6000_v17  ;;  %v583_v47 = vpop.f32.mrb[34].mxu0  ;;  %v6200_v30 = vadd.f32 %v761_v38, %v6000_v17  ;;  %v763_v41 = vpop.f32.mrb[10].mxu1  ;;  %v6242_v8 = vsel %vm1376_vm1, %v6164_v18, %v1632_v28  ;;  %v5408_v18 = vld [vmem:[%s8174_s3 + $0x1d0] ss:$8 sps:$4 sm:$0xff]  }
 0x156   :  { %vm1235_vm5 = vcmp.gt.f32.partialorder %v580_v42, 0.0  ;;  %v1491_v50 = vmul.f32 0.2, %v580_v42  ;;  %v584_v51 = vadd.f32 %v583_v47, %v5996_v16  ;;  %v585_v52 = vpop.f32.mrb[35].mxu0  ;;  %2565 = vmatprep.mubr.bf16.mxu0 %v1968_v63  ;;  %v6203_v63 = vmul.f32 0.2, %v6196_v3 }
 0x157   :  { %vm1236_vm6 = vcmp.gt.f32.partialorder %v582_v46, 0.0  ;;  %v1492_v54 = vmul.f32 0.2, %v582_v46  ;;  %v586_v55 = vadd.f32 %v585_v52, %v6000_v17  ;;  %2566 = vmatmul.mubr.bf16.gmra.mrb[124].mxu0 %v1967_v40  ;;  %v765_v44 = vpop.f32.mrb[11].mxu1  ;;  %v6206_v48 = vmul.f32 0.2, %v6200_v30 }
 0x158   :  { %vm1239_vm7 = vcmp.gt.f32.partialorder %v584_v51, 0.0  ;;  %v1495_v4 = vmul.f32 0.2, %v584_v51  ;;  %v1747_v58 = vsel %vm1235_vm5, %v580_v42, %v1491_v50  ;;  %v6212_v50 = vsel %vm1367_vm10, %v6133_v36, %v6140_v45 }
 0x159   :  { %vm1240_vm8 = vcmp.gt.f32.partialorder %v586_v55, 0.0  ;;  %v1496_v62 = vmul.f32 0.2, %v586_v55  ;;  %v1748_v1 = vsel %vm1236_vm6, %v582_v46, %v1492_v54  ;;  %v6218_v52 = vadd.f32 %v765_v44, %v6000_v17 }
 0x15a   :  { %v1751_v14 = vsel %vm1239_vm7, %v584_v51, %v1495_v4  ;;  %v6215_v51 = vadd.f32 %v763_v41, %v5996_v16  ;;  %vm1375_vm7 = vcmp.gt.f32.partialorder %v6161_v2, 0.0 }
 0x15b   :  { %v589_v22 = vpop.f32.mrb[36].mxu0  ;;  %v1752_v61 = vsel %vm1240_vm8, %v586_v55, %v1496_v62  ;;  %v1971_v23 = vpack.c.bf16 %v1751_v14, %v1747_v58  ;;  %v6228_v45 = vmul.f32 0.2, %v6218_v52  ;;  %v6236_v14 = vsel %vm1372_vm15, %v6152_v56, %v6158_v11 }
 0x15c   :  { %v590_v25 = vadd.f32 %v589_v22, %v5996_v16  ;;  %v591_v26 = vpop.f32.mrb[37].mxu0  ;;  %v1972_v5 = vpack.c.bf16 %v1752_v61, %v1748_v1  ;;  %v6225_v36 = vmul.f32 0.2, %v6215_v51  ;;  %v769_v61 = vpop.f32.mrb[12].mxu1  ;;  %vm1380_vm8 = vcmp.gt.f32.partialorder %v6200_v30, 0.0 }
 0x15d   :  { %v592_v29 = vadd.f32 %v591_v26, %v6000_v17  ;;  %v593_v31 = vpop.f32.mrb[38].mxu0  ;;  %v771_v11 = vpop.f32.mrb[13].mxu1  ;;  %vm1384_vm9 = vcmp.gt.f32.partialorder %v6218_v52, 0.0  ;;  %vm1383_vm15 = vcmp.gt.f32.partialorder %v6215_v51, 0.0 }
 0x15e   :  { %vm1243_vm11 = vcmp.gt.f32.partialorder %v590_v25, 0.0  ;;  %v1499_v35 = vmul.f32 0.2, %v590_v25  ;;  %v594_v7 = vadd.f32 %v593_v31, %v5996_v16  ;;  %v595_v37 = vpop.f32.mrb[39].mxu0  ;;  %2575 = vmatprep.mubr.bf16.mxu0 %v1972_v5  ;;  %v773_v31 = vpop.f32.mrb[14].mxu1 }
 0x15f   :  { %vm1244_vm12 = vcmp.gt.f32.partialorder %v592_v29, 0.0  ;;  %v1500_v39 = vmul.f32 0.2, %v592_v29  ;;  %v596_v40 = vadd.f32 %v595_v37, %v6000_v17  ;;  %2576 = vmatmul.mubr.bf16.gmra.mrb[128].mxu0 %v1971_v23  ;;  %v5410_v37 = vld [vmem:[%s8174_s3 + $0x1d4] ss:$8 sps:$4 sm:$0xff]  }
 0x160   :  { %vm1247_vm13 = vcmp.gt.f32.partialorder %v594_v7, 0.0  ;;  %v1503_v42 = vmul.f32 0.2, %v594_v7  ;;  %v1755_v43 = vsel %vm1243_vm11, %v590_v25, %v1499_v35  ;;  %v6254_v35 = vadd.f32 %v771_v11, %v6000_v17  ;;  %2842 = vmatprep.subr.bf16.mxu0 %v5410_v37 }
 0x161   :  { %vm1248_vm14 = vcmp.gt.f32.partialorder %v596_v40, 0.0  ;;  %v1504_v46 = vmul.f32 0.2, %v596_v40  ;;  %v1756_v47 = vsel %vm1244_vm12, %v592_v29, %v1500_v39  ;;  %v6248_v29 = vadd.f32 %v769_v61, %v5996_v16  ;;  %2843 = vmatpush1.bf16.msra.mxu0 %v5408_v18 }
 0x162   :  { %v1759_v49 = vsel %vm1247_vm13, %v594_v7, %v1503_v42  ;;  %v775_v7 = vpop.f32.mrb[15].mxu1  ;;  %v6270_v44 = vmul.f32 0.2, %v6254_v35  ;;  %v6303_v61 = vsel %vm1380_vm8, %v6200_v30, %v6206_v48 }
 0x163   :  { %v599_v6 = vpop.f32.mrb[40].mxu0  ;;  %v1760_v54 = vsel %vm1248_vm14, %v596_v40, %v1504_v46  ;;  %v1975_v55 = vpack.c.bf16 %v1759_v49, %v1755_v43  ;;  %v6260_v39 = vmul.f32 0.2, %v6248_v29  ;;  %v6267_v40 = vsel %vm1371_vm2, %v6148_v53, %v6155_v59 }
 0x164   :  { %v600_v4 = vadd.f32 %v599_v6, %v5996_v16  ;;  %v601_v58 = vpop.f32.mrb[41].mxu0  ;;  %v1976_v60 = vpack.c.bf16 %v1760_v54, %v1756_v47  ;;  %v6274_v46 = vsel %vm1375_vm7, %v6161_v2, %v6181_v27  ;;  %v6280_v53 = vadd.f32 %v773_v31, %v5996_v16 }
 0x165   :  { %v602_v62 = vadd.f32 %v601_v58, %v6000_v17  ;;  %v603_v1 = vpop.f32.mrb[42].mxu0  ;;  %v6286_v2 = vadd.f32 %v775_v7, %v6000_v17  ;;  %vm1379_vm14 = vcmp.gt.f32.partialorder %v6196_v3, 0.0  ;;  %vm1387_vm7 = vcmp.gt.f32.partialorder %v6248_v29, 0.0 }
 0x166   :  { %vm1251_vm3 = vcmp.gt.f32.partialorder %v600_v4, 0.0  ;;  %v1507_v20 = vmul.f32 0.2, %v600_v4  ;;  %v604_v21 = vadd.f32 %v603_v1, %v5996_v16  ;;  %v605_v22 = vpop.f32.mrb[43].mxu0  ;;  %2585 = vmatprep.mubr.bf16.mxu0 %v1976_v60  ;;  %v6293_v9 = vmul.f32 0.2, %v6280_v53 }
 0x167   :  { %vm1252_vm4 = vcmp.gt.f32.partialorder %v602_v62, 0.0  ;;  %v1508_v23 = vmul.f32 0.2, %v602_v62  ;;  %v606_v25 = vadd.f32 %v605_v22, %v6000_v17  ;;  %2586 = vmatmul.mubr.bf16.gmra.mrb[132].mxu0 %v1975_v55  ;;  %v6297_v1 = vmul.f32 0.2, %v6286_v2 }
 0x168   :  { %vm1255_vm5 = vcmp.gt.f32.partialorder %v604_v21, 0.0  ;;  %v1511_v26 = vmul.f32 0.2, %v604_v21  ;;  %v1763_v5 = vsel %vm1251_vm3, %v600_v4, %v1507_v20  ;;  %v779_v20 = vpop.f32.mrb[16].mxu1  ;;  %vm1391_vm8 = vcmp.gt.f32.partialorder %v6280_v53, 0.0 }
 0x169   :  { %vm1256_vm6 = vcmp.gt.f32.partialorder %v606_v25, 0.0  ;;  %v1512_v28 = vmul.f32 0.2, %v606_v25  ;;  %v1764_v33 = vsel %vm1252_vm4, %v602_v62, %v1508_v23  ;;  %v781_v23 = vpop.f32.mrb[17].mxu1 }
 0x16a   :  { %v1767_v38 = vsel %vm1255_vm5, %v604_v21, %v1511_v26  ;;  %v6309_v26 = vsel %vm1384_vm9, %v6218_v52, %v6228_v45  ;;  %v6317_v30 = vadd.f32 %v781_v23, %v6000_v17  ;;  %vm1388_vm5 = vcmp.gt.f32.partialorder %v6254_v35, 0.0 }
 0x16b   :  { %v609_v41 = vpop.f32.mrb[44].mxu0  ;;  %v1768_v42 = vsel %vm1256_vm6, %v606_v25, %v1512_v28  ;;  %v1979_v43 = vpack.c.bf16 %v1767_v38, %v1763_v5  ;;  %v783_v5 = vpop.f32.mrb[18].mxu1  ;;  %v6314_v28 = vadd.f32 %v779_v20, %v5996_v16  ;;  %vm1392_vm6 = vcmp.gt.f32.partialorder %v6286_v2, 0.0 }
 0x16c   :  { %v610_v47 = vadd.f32 %v609_v41, %v5996_v16  ;;  %v611_v49 = vpop.f32.mrb[45].mxu0  ;;  %v1980_v6 = vpack.c.bf16 %v1768_v42, %v1764_v33  ;;  %v785_v48 = vpop.f32.mrb[19].mxu1  ;;  %v6326_v42 = vmul.f32 0.2, %v6317_v30 }
 0x16d   :  { %v612_v59 = vadd.f32 %v611_v49, %v6000_v17  ;;  %v613_v55 = vpop.f32.mrb[46].mxu0  ;;  %v6323_v41 = vmul.f32 0.2, %v6314_v28  ;;  %v6333_v49 = vsel %vm1379_vm14, %v6196_v3, %v6203_v63 }
 0x16e   :  { %vm1259_vm10 = vcmp.gt.f32.partialorder %v610_v47, 0.0  ;;  %v1515_v27 = vmul.f32 0.2, %v610_v47  ;;  %v614_v4 = vadd.f32 %v613_v55, %v5996_v16  ;;  %v615_v58 = vpop.f32.mrb[47].mxu0  ;;  %2595 = vmatprep.mubr.bf16.mxu0 %v1980_v6  ;;  %v6337_v6 = vsel %vm1383_vm15, %v6215_v51, %v6225_v36  ;;  %v789_v36 = vpop.f32.mrb[20].mxu1 }
 0x16f   :  { %vm1260_vm11 = vcmp.gt.f32.partialorder %v612_v59, 0.0  ;;  %v1516_v60 = vmul.f32 0.2, %v612_v59  ;;  %v616_v62 = vadd.f32 %v615_v58, %v6000_v17  ;;  %2596 = vmatmul.mubr.bf16.gmra.mrb[136].mxu0 %v1979_v43  ;;  %v791_v20 = vpop.f32.mrb[21].mxu1 }
 0x170   :  { %vm1263_vm12 = vcmp.gt.f32.partialorder %v614_v4, 0.0  ;;  %v1519_v21 = vmul.f32 0.2, %v614_v4  ;;  %v1771_v22 = vsel %vm1259_vm10, %v610_v47, %v1515_v27 }
 0x171   :  { %vm1264_vm13 = vcmp.gt.f32.partialorder %v616_v62, 0.0  ;;  %v1520_v25 = vmul.f32 0.2, %v616_v62  ;;  %v1772_v11 = vsel %vm1260_vm11, %v612_v59, %v1516_v60  ;;  %v6340_v59 = vadd.f32 %v783_v5, %v5996_v16 }
 0x172   :  { %v1775_v31 = vsel %vm1263_vm12, %v614_v4, %v1519_v21  ;;  %v5411_v21 = vld [vmem:[%s8174_s3 + $0x1e0] ss:$8 sps:$4 sm:$0xff]  }
 0x173   :  { %v619_v33 = vpop.f32.mrb[48].mxu0  ;;  %v1776_v7 = vsel %vm1264_vm13, %v616_v62, %v1520_v25  ;;  %v1983_v37 = vpack.c.bf16 %v1775_v31, %v1771_v22  ;;  %v6348_v51 = vmul.f32 0.2, %v6340_v59  ;;  %v6351_v62 = vadd.f32 %v785_v48, %v6000_v17  ;;  %v793_v25 = vpop.f32.mrb[22].mxu1 }
 0x174   :  { %v620_v52 = vadd.f32 %v619_v33, %v5996_v16  ;;  %v621_v45 = vpop.f32.mrb[49].mxu0  ;;  %v1984_v38 = vpack.c.bf16 %v1776_v7, %v1772_v11  ;;  %v5414_v11 = vld [vmem:[#allocation4] sm:$0xff]   ;;  %v6363_v48 = vsel %vm1388_vm5, %v6254_v35, %v6270_v44  ;;  %v795_v33 = vpop.f32.mrb[23].mxu1  ;;  %vm1396_vm13 = vcmp.gt.f32.partialorder %v6317_v30, 0.0 }
 0x175   :  { %v622_v43 = vadd.f32 %v621_v45, %v6000_v17  ;;  %v623_v47 = vpop.f32.mrb[50].mxu0  ;;  %v6358_v31 = vmul.f32 0.2, %v6351_v62  ;;  %v5413_v7 = vld [vmem:[%s8174_s3 + $0x1e4] ss:$8 sps:$4 sm:$0xff]   ;;  %3753 = vmatpush1.bf16.msra.mxu1 %v5414_v11  ;;  %v799_v11 = vpop.f32.mrb[24].mxu1 }
 0x176   :  { %vm1267_vm1 = vcmp.gt.f32.partialorder %v620_v52, 0.0  ;;  %v1523_v55 = vmul.f32 0.2, %v620_v52  ;;  %v624_v10 = vadd.f32 %v623_v47, %v5996_v16  ;;  %v625_v27 = vpop.f32.mrb[51].mxu0  ;;  %2605 = vmatprep.mubr.bf16.mxu0 %v1984_v38  ;;  %v6370_v38 = vsel %vm1392_vm6, %v6286_v2, %v6297_v1  ;;  %2844 = vmatprep.subr.bf16.mxu0 %v5413_v7 }
 0x177   :  { %vm1268_vm2 = vcmp.gt.f32.partialorder %v622_v43, 0.0  ;;  %v1524_v3 = vmul.f32 0.2, %v622_v43  ;;  %v626_v63 = vadd.f32 %v625_v27, %v6000_v17  ;;  %2606 = vmatmul.mubr.bf16.gmra.mrb[140].mxu0 %v1983_v37  ;;  %v5441_v27 = vld [vmem:[%s8171_s0 + $0xc0] sm:$0xff]   ;;  %3754 = vmatprep.subr.bf16.mxu1 %v8183_v0  ;;  %vm1400_vm14 = vcmp.gt.f32.partialorder %v6351_v62, 0.0 }
 0x178   :  { %vm1271_vm3 = vcmp.gt.f32.partialorder %v624_v10, 0.0  ;;  %v1527_v58 = vmul.f32 0.2, %v624_v10  ;;  %v1779_v60 = vsel %vm1267_vm1, %v620_v52, %v1523_v55  ;;  %4791 = vmatmul.mubr.msk.bf16.gmra.mrb[128].mxu1 %vm368_vm0, %v5441_v27  ;;  %2845 = vmatpush1.bf16.msra.mxu0 %v5411_v21  ;;  %v6407_v21 = vsel %vm1391_vm8, %v6280_v53, %v6293_v9 }
 0x179   :  { %vm1272_vm4 = vcmp.gt.f32.partialorder %v626_v63, 0.0  ;;  %v1528_v22 = vmul.f32 0.2, %v626_v63  ;;  %v1780_v23 = vsel %vm1268_vm2, %v622_v43, %v1524_v3  ;;  %v6373_v43 = vadd.f32 %v789_v36, %v5996_v16  ;;  %1100 = vmatprep.mubr.bf16.mxu1 %v8183_v0  ;;  %8246 = vst [vmem:[#allocation11_spill] sm:$0xff] %v6407_v21 }
 0x17a   :  { %v1783_v5 = vsel %vm1271_vm3, %v624_v10, %v1527_v58  ;;  %v6379_v10 = vadd.f32 %v791_v20, %v6000_v17  ;;  %vm1399_vm5 = vcmp.gt.f32.partialorder %v6340_v59, 0.0 }
 0x17b   :  { %v629_v37 = vpop.f32.mrb[52].mxu0  ;;  %v1784_v52 = vsel %vm1272_vm4, %v626_v63, %v1528_v22  ;;  %v1987_v45 = vpack.c.bf16 %v1783_v5, %v1779_v60  ;;  %v6387_v3 = vmul.f32 0.2, %v6373_v43  ;;  %vm1395_vm4 = vcmp.gt.f32.partialorder %v6314_v28, 0.0 }
 0x17c   :  { %v630_v47 = vadd.f32 %v629_v37, %v5996_v16  ;;  %v631_v35 = vpop.f32.mrb[53].mxu0  ;;  %v1988_v44 = vpack.c.bf16 %v1784_v52, %v1780_v23  ;;  %v6394_v60 = vmul.f32 0.2, %v6379_v10  ;;  %v6399_v23 = vsel %vm1387_vm7, %v6248_v29, %v6260_v39  ;;  %v801_v37 = vpop.f32.mrb[25].mxu1 }
 0x17d   :  { %v632_v2 = vadd.f32 %v631_v35, %v6000_v17  ;;  %v633_v1 = vpop.f32.mrb[54].mxu0  ;;  %8245 = vst [vmem:[#allocation10_spill] sm:$0xff] %v6399_v23  ;;  %v803_v39 = vpop.f32.mrb[26].mxu1  ;;  %vm1404_vm6 = vcmp.gt.f32.partialorder %v6379_v10, 0.0 }
 0x17e   :  { %vm1275_vm9 = vcmp.gt.f32.partialorder %v630_v47, 0.0  ;;  %v1531_v63 = vmul.f32 0.2, %v630_v47  ;;  %v634_v36 = vadd.f32 %v633_v1, %v5996_v16  ;;  %v635_v58 = vpop.f32.mrb[55].mxu0  ;;  %2615 = vmatprep.mubr.bf16.mxu0 %v1988_v44  ;;  %v6412_v44 = vadd.f32 %v793_v25, %v5996_v16  ;;  %v805_v27 = vpop.f32.mrb[27].mxu1 }
 0x17f   :  { %vm1276_vm10 = vcmp.gt.f32.partialorder %v632_v2, 0.0  ;;  %v1532_v20 = vmul.f32 0.2, %v632_v2  ;;  %v636_v22 = vadd.f32 %v635_v58, %v6000_v17  ;;  %2616 = vmatmul.mubr.bf16.gmra.mrb[144].mxu0 %v1987_v45 }
 0x180   :  { %vm1279_vm11 = vcmp.gt.f32.partialorder %v634_v36, 0.0  ;;  %v1535_v5 = vmul.f32 0.2, %v634_v36  ;;  %v1787_v7 = vsel %vm1275_vm9, %v630_v47, %v1531_v63  ;;  %v6415_v47 = vadd.f32 %v795_v33, %v6000_v17 }
 0x181   :  { %vm1280_vm12 = vcmp.gt.f32.partialorder %v636_v22, 0.0  ;;  %v1536_v52 = vmul.f32 0.2, %v636_v22  ;;  %v1788_v45 = vsel %vm1276_vm10, %v632_v2, %v1532_v20  ;;  %v6421_v2 = vsel %vm1396_vm13, %v6317_v30, %v6326_v42  ;;  %v5442_v20 = vld [vmem:[%s8171_s0 + $0xc8] sm:$0xff]  }
 0x182   :  { %v1791_v35 = vsel %vm1279_vm11, %v634_v36, %v1535_v5  ;;  %8247 = vst [vmem:[#allocation12_spill] sm:$0xff] %v6421_v2  ;;  %v6425_v58 = vmul.f32 0.2, %v6412_v44  ;;  %v6428_v33 = vmul.f32 0.2, %v6415_v47  ;;  %4792 = vmatmul.mubr.msk.bf16.gmra.mrb[132].mxu1 %vm368_vm0, %v5442_v20  ;;  %v6437_v42 = vsel %vm1400_vm14, %v6351_v62, %v6358_v31 }
 0x183   :  { %v639_v53 = vpop.f32.mrb[56].mxu0  ;;  %v1792_v9 = vsel %vm1280_vm12, %v636_v22, %v1536_v52  ;;  %v1991_v1 = vpack.c.bf16 %v1791_v35, %v1787_v7  ;;  %8248 = vst [vmem:[#allocation13_spill] sm:$0xff] %v6437_v42  ;;  %v6440_v5 = vadd.f32 %v799_v11, %v5996_v16  ;;  %v6443_v7 = vadd.f32 %v801_v37, %v6000_v17  ;;  %v809_v37 = vpop.f32.mrb[28].mxu1 }
 0x184   :  { %v640_v63 = vadd.f32 %v639_v53, %v5996_v16  ;;  %v641_v36 = vpop.f32.mrb[57].mxu0  ;;  %v1992_v25 = vpack.c.bf16 %v1792_v9, %v1788_v45  ;;  %1110 = vmatprep.mubr.bf16.mxu1 %v8183_v0  ;;  %v6462_v53 = vsel %vm1395_vm4, %v6314_v28, %v6323_v41  ;;  %v6477_v28 = vsel %vm1399_vm5, %v6340_v59, %v6348_v51 }
 0x185   :  { %v642_v22 = vadd.f32 %v641_v36, %v6000_v17  ;;  %v643_v30 = vpop.f32.mrb[58].mxu0  ;;  %v6451_v11 = vmul.f32 0.2, %v6440_v5  ;;  %v6454_v20 = vmul.f32 0.2, %v6443_v7  ;;  %8249 = vst [vmem:[#allocation14_spill] sm:$0xff] %v6462_v53  ;;  %v6480_v41 = vadd.f32 %v805_v27, %v6000_v17 }
 0x186   :  { %vm1283_vm15 = vcmp.gt.f32.partialorder %v640_v63, 0.0  ;;  %v1539_v52 = vmul.f32 0.2, %v640_v63  ;;  %v644_v45 = vadd.f32 %v643_v30, %v5996_v16  ;;  %v645_v35 = vpop.f32.mrb[59].mxu0  ;;  %2625 = vmatprep.mubr.bf16.mxu0 %v1992_v25  ;;  %v811_v30 = vpop.f32.mrb[29].mxu1  ;;  %8250 = vst [vmem:[#allocation15_spill] sm:$0xff] %v6477_v28 }
 0x187   :  { %vm1284_vm1 = vcmp.gt.f32.partialorder %v642_v22, 0.0  ;;  %v1540_v62 = vmul.f32 0.2, %v642_v22  ;;  %v646_v31 = vadd.f32 %v645_v35, %v6000_v17  ;;  %2626 = vmatmul.mubr.bf16.gmra.mrb[148].mxu0 %v1991_v1  ;;  %v6457_v13 = vpop.f32.mrb[30].mxu1  ;;  %v5418_v35 = vld [vmem:[#allocation4 + $0x8] sm:$0xff]   ;;  %vm1408_vm7 = vcmp.gt.f32.partialorder %v6415_v47, 0.0 }
 0x188   :  { %vm1287_vm2 = vcmp.gt.f32.partialorder %v644_v45, 0.0  ;;  %v1543_v9 = vmul.f32 0.2, %v644_v45  ;;  %v1795_v36 = vsel %vm1283_vm15, %v640_v63, %v1539_v52  ;;  %v6465_v63 = vadd.f32 %v803_v39, %v5996_v16  ;;  %v6467_v52 = vpop.f32.mrb[31].mxu1  ;;  %3755 = vmatpush1.bf16.msra.mxu1 %v5418_v35 }
 0x189   :  { %vm1288_vm3 = vcmp.gt.f32.partialorder %v646_v31, 0.0  ;;  %v1544_v25 = vmul.f32 0.2, %v646_v31  ;;  %v1796_v15 = vsel %vm1284_vm1, %v642_v22, %v1540_v62  ;;  %v5415_v22 = vld [vmem:[%s8174_s3 + $0x1f0] ss:$8 sps:$4 sm:$0xff]   ;;  %3756 = vmatprep.subr.bf16.mxu1 %v8183_v0  ;;  %vm1403_vm12 = vcmp.gt.f32.partialorder %v6373_v43, 0.0 }
 0x18a   :  { %v1799_v1 = vsel %vm1287_vm2, %v644_v45, %v1543_v9  ;;  %v5417_v62 = vld [vmem:[%s8174_s3 + $0x1f4] ss:$8 sps:$4 sm:$0xff]   ;;  %v6486_v54 = vmul.f32 0.2, %v6465_v63  ;;  %v6494_v27 = vmul.f32 0.2, %v6480_v41 }
 0x18b   :  { %v649_v45 = vpop.f32.mrb[60].mxu0  ;;  %v1800_v9 = vsel %vm1288_vm3, %v646_v31, %v1544_v25  ;;  %v1995_v29 = vpack.c.bf16 %v1799_v1, %v1795_v36  ;;  %v5443_v31 = vld [vmem:[%s8171_s0 + $0xd0] sm:$0xff]   ;;  %2846 = vmatprep.subr.bf16.mxu0 %v5417_v62  ;;  %v6510_v62 = vpop.f32.mrb[32].mxu1  ;;  %vm1407_vm13 = vcmp.gt.f32.partialorder %v6412_v44, 0.0  ;;  %vm1412_vm15 = vcmp.gt.f32.partialorder %v6443_v7, 0.0 }
 0x18c   :  { %v650_v39 = vadd.f32 %v649_v45, %v5996_v16  ;;  %v651_v55 = vpop.f32.mrb[61].mxu0  ;;  %v1996_v4 = vpack.c.bf16 %v1800_v9, %v1796_v15  ;;  %4793 = vmatmul.mubr.msk.bf16.gmra.mrb[136].mxu1 %vm368_vm0, %v5443_v31  ;;  %2847 = vmatpush1.bf16.msra.mxu0 %v5415_v22  ;;  %v6508_v22 = vsel %vm1408_vm7, %v6415_v47, %v6428_v33  ;;  %vm1416_vm4 = vcmp.gt.f32.partialorder %v6480_v41, 0.0 }
 0x18d   :  { %v652_v59 = vadd.f32 %v651_v55, %v6000_v17  ;;  %v653_v51 = vpop.f32.mrb[62].mxu0  ;;  %1120 = vmatprep.mubr.bf16.mxu1 %v8183_v0  ;;  %v6502_v55 = vsel %vm1404_vm6, %v6379_v10, %v6394_v60  ;;  %8252 = vst [vmem:[#allocation17_spill] sm:$0xff] %v6508_v22  ;;  %v6514_v60 = vpop.f32.mrb[33].mxu1  ;;  %v6522_v33 = vadd.f32 %v811_v30, %v6000_v17  ;;  %vm1411_vm5 = vcmp.gt.f32.partialorder %v6440_v5, 0.0 }
 0x18e   :  { %vm1291_vm8 = vcmp.gt.f32.partialorder %v650_v39, 0.0  ;;  %v1547_v15 = vmul.f32 0.2, %v650_v39  ;;  %v654_v36 = vadd.f32 %v653_v51, %v5996_v16  ;;  %v655_v25 = vpop.f32.mrb[63].mxu0  ;;  %2635 = vmatprep.mubr.bf16.mxu0 %v1996_v4  ;;  %8251 = vst [vmem:[#allocation16_spill] sm:$0xff] %v6502_v55  ;;  %v6517_v51 = vadd.f32 %v809_v37, %v5996_v16 }
 0x18f   :  { %vm1292_vm9 = vcmp.gt.f32.partialorder %v652_v59, 0.0  ;;  %v1548_v35 = vmul.f32 0.2, %v652_v59  ;;  %v656_v1 = vadd.f32 %v655_v25, %v6000_v17  ;;  %2636 = vmatmul.mubr.bf16.gmra.mrb[152].mxu0 %v1995_v29  ;;  %v6519_v29 = vpop.f32.mrb[34].mxu1  ;;  %v6533_v37 = vsel %vm1403_vm12, %v6373_v43, %v6387_v3 }
 0x190   :  { %vm1295_vm10 = vcmp.gt.f32.partialorder %v654_v36, 0.0  ;;  %v1551_v45 = vmul.f32 0.2, %v654_v36  ;;  %v1803_v4 = vsel %vm1291_vm8, %v650_v39, %v1547_v15  ;;  %v6526_v39 = vpop.f32.mrb[35].mxu1  ;;  %8253 = vst [vmem:[#allocation18_spill] sm:$0xff] %v6533_v37  ;;  %v6541_v18 = vsel %vm1407_vm13, %v6412_v44, %v6425_v58 }
 0x191   :  { %vm1296_vm11 = vcmp.gt.f32.partialorder %v656_v1, 0.0  ;;  %v1552_v9 = vmul.f32 0.2, %v656_v1  ;;  %v1804_v31 = vsel %vm1292_vm9, %v652_v59, %v1548_v35  ;;  %v6529_v59 = vmul.f32 0.2, %v6517_v51  ;;  %8254 = vst [vmem:[#allocation19_spill] sm:$0xff] %v6541_v18 }
 0x192   :  { %v1807_v47 = vsel %vm1295_vm10, %v654_v36, %v1551_v45  ;;  %v6537_v45 = vmul.f32 0.2, %v6522_v33  ;;  %v6556_v44 = vadd.f32 %v6467_v52, %v6000_v17  ;;  %v6565_v52 = vpop.f32.mrb[36].mxu1  ;;  %v6579_v32 = vsel %vm1412_vm15, %v6443_v7, %v6454_v20 }
 0x193   :  { %v659_v15 = vpop.f32.mrb[64].mxu0  ;;  %v1808_v25 = vsel %vm1296_vm11, %v656_v1, %v1552_v9  ;;  %v1999_v10 = vpack.c.bf16 %v1807_v47, %v1803_v4  ;;  %v5444_v1 = vld [vmem:[%s8171_s0 + $0xd8] sm:$0xff]   ;;  %v6552_v9 = vadd.f32 %v6457_v13, %v5996_v16  ;;  %8255 = vst [vmem:[#allocation20_spill] sm:$0xff] %v6579_v32  ;;  %vm1415_vm6 = vcmp.gt.f32.partialorder %v6465_v63, 0.0 }
 0x194   :  { %v660_v36 = vadd.f32 %v659_v15, %v5996_v16  ;;  %v661_v30 = vpop.f32.mrb[65].mxu0  ;;  %v2000_v35 = vpack.c.bf16 %v1808_v25, %v1804_v31  ;;  %4794 = vmatmul.mubr.msk.bf16.gmra.mrb[140].mxu1 %vm368_vm0, %v5444_v1  ;;  %v6568_v4 = vmul.f32 0.2, %v6556_v44  ;;  %vm1420_vm13 = vcmp.gt.f32.partialorder %v6522_v33, 0.0 }
 0x195   :  { %v662_v43 = vadd.f32 %v661_v30, %v6000_v17  ;;  %v663_v3 = vpop.f32.mrb[66].mxu0  ;;  %1130 = vmatprep.mubr.bf16.mxu1 %v8183_v0  ;;  %v6563_v13 = vmul.f32 0.2, %v6552_v9 }
 0x196   :  { %vm1299_vm14 = vcmp.gt.f32.partialorder %v660_v36, 0.0  ;;  %v1555_v58 = vmul.f32 0.2, %v660_v36  ;;  %v664_v31 = vadd.f32 %v663_v3, %v5996_v16  ;;  %v665_v47 = vpop.f32.mrb[67].mxu0  ;;  %2645 = vmatprep.mubr.bf16.mxu0 %v2000_v35  ;;  %v6570_v3 = vpop.f32.mrb[37].mxu1 }
 0x197   :  { %vm1300_vm1 = vcmp.gt.f32.partialorder %v662_v43, 0.0  ;;  %v1556_v15 = vmul.f32 0.2, %v662_v43  ;;  %v666_v25 = vadd.f32 %v665_v47, %v6000_v17  ;;  %2646 = vmatmul.mubr.bf16.gmra.mrb[156].mxu0 %v1999_v10  ;;  %v6573_v47 = vpop.f32.mrb[38].mxu1  ;;  %v5419_v10 = vld [vmem:[#allocation4 + $0x10] sm:$0xff]  }
 0x198   :  { %vm1303_vm2 = vcmp.gt.f32.partialorder %v664_v31, 0.0  ;;  %v1559_v30 = vmul.f32 0.2, %v664_v31  ;;  %v1811_v1 = vsel %vm1299_vm14, %v660_v36, %v1555_v58  ;;  %v6583_v36 = vsel %vm1416_vm4, %v6480_v41, %v6494_v27  ;;  %v6586_v0 = vpop.f32.mrb[39].mxu1  ;;  %3757 = vmatpush1.bf16.msra.mxu1 %v5419_v10  ;;  %v5445_v41 = vld [vmem:[%s8173_s2] sm:$0xf] }
 0x199   :  { %vm1304_vm3 = vcmp.gt.f32.partialorder %v666_v25, 0.0  ;;  %v1560_v35 = vmul.f32 0.2, %v666_v25  ;;  %v1812_v56 = vsel %vm1300_vm1, %v662_v43, %v1556_v15  ;;  %8256 = vst [vmem:[#allocation21_spill] sm:$0xff] %v6583_v36  ;;  %v158_v58 = vsub.s32 2, %v5984_v12 }
 0x19a   :  { %v1815_v57 = vsel %vm1303_vm2, %v664_v31, %v1559_v30  ;;  %v162_v30 = vsub.s32 3, %v5984_v12  ;;  %v6609_v10 = vsel %vm1411_vm5, %v6440_v5, %v6451_v11  ;;  %v6620_v11 = vpop.f32.mrb[40].mxu1  ;;  %vm1424_vm14 = vcmp.gt.f32.partialorder %v6556_v44, 0.0 }
 0x19b   :  { %v669_v43 = vpop.f32.mrb[68].mxu0  ;;  %v1816_v15 = vsel %vm1304_vm3, %v666_v25, %v1560_v35  ;;  %v2003_v37 = vpack.c.bf16 %v1815_v57, %v1811_v1  ;;  %v6595_v27 = vrot.slane %v5445_v41, %v158_v58  ;;  %v5446_v57 = vld [vmem:[%s8171_s0 + $0xe0] sm:$0xff]   ;;  %v8257_v25 = vmov 0   ;;  %8258 = vst [vmem:[#allocation22_spill] sm:$0xff] %v6609_v10 }
 0x19c   :  { %v670_v7 = vadd.f32 %v669_v43, %v5996_v16  ;;  %v671_v20 = vpop.f32.mrb[69].mxu0  ;;  %v2004_v18 = vpack.c.bf16 %v1816_v15, %v1812_v56  ;;  %4795 = vmatmul.mubr.msk.bf16.gmra.mrb[144].mxu1 %vm368_vm0, %v5446_v57  ;;  %3758 = vmatprep.subr.bf16.mxu1 %v8257_v25  ;;  %v6604_v56 = vrot.slane %v5445_v41, %v162_v30  ;;  %vm1419_vm4 = vcmp.gt.f32.partialorder %v6517_v51, 0.0  ;;  %v5421_v10 = vld [vmem:[#allocation4 + $0x20] sm:$0xff]  }
 0x19d   :  { %v672_v1 = vadd.f32 %v671_v20, %v6000_v17  ;;  %v673_v35 = vpop.f32.mrb[70].mxu0  ;;  %1140 = vmatprep.mubr.bf16.mxu1 %v8257_v25  ;;  %v853_v20 = vadd.f32 %v6510_v62, %v6595_v27  ;;  %vm1423_vm5 = vcmp.gt.f32.partialorder %v6552_v9, 0.0 }
 0x19e   :  { %vm1307_vm7 = vcmp.gt.f32.partialorder %v670_v7, 0.0  ;;  %v1563_v58 = vmul.f32 0.2, %v670_v7  ;;  %v674_v43 = vadd.f32 %v673_v35, %v5996_v16  ;;  %v675_v15 = vpop.f32.mrb[71].mxu0  ;;  %2655 = vmatprep.mubr.bf16.mxu0 %v2004_v18  ;;  %v6618_v5 = vadd.f32 %v6514_v60, %v6604_v56  ;;  %v6622_v35 = vpop.f32.mrb[41].mxu1 }
 0x19f   :  { %vm1308_vm8 = vcmp.gt.f32.partialorder %v672_v1, 0.0  ;;  %v1564_v30 = vmul.f32 0.2, %v672_v1  ;;  %v676_v41 = vadd.f32 %v675_v15, %v6000_v17  ;;  %2656 = vmatmul.mubr.bf16.gmra.mrb[160].mxu0 %v2003_v37  ;;  %vm1173_vm10 = vcmp.gt.f32.partialorder %v853_v20, 0.0  ;;  %v6624_v32 = vpop.f32.mrb[42].mxu1 }
 0x1a0   :  { %vm1311_vm9 = vcmp.gt.f32.partialorder %v674_v43, 0.0  ;;  %v1567_v57 = vmul.f32 0.2, %v674_v43  ;;  %v1819_v31 = vsel %vm1307_vm7, %v670_v7, %v1563_v58  ;;  %v1429_v12 = vmul.f32 0.2, %v853_v20  ;;  %v6637_v58 = vpop.f32.mrb[43].mxu1 }
 0x1a1   :  { %vm1312_vm11 = vcmp.gt.f32.partialorder %v676_v41, 0.0  ;;  %v1568_v18 = vmul.f32 0.2, %v676_v41  ;;  %v1820_v62 = vsel %vm1308_vm8, %v672_v1, %v1564_v30  ;;  %v6627_v37 = vmul.f32 0.2, %v6618_v5 }
 0x1a2   :  { %v1823_v15 = vsel %vm1311_vm9, %v674_v43, %v1567_v57  ;;  %v6633_v60 = vsel %vm1415_vm6, %v6465_v63, %v6486_v54  ;;  %v857_v7 = vadd.f32 %v6519_v29, %v6595_v27  ;;  %v6639_v55 = vsel %vm1173_vm10, %v853_v20, %v1429_v12  ;;  %v5447_v63 = vld [vmem:[%s8171_s0 + $0xe8] sm:$0xff]  }
 0x1a3   :  { %8259 = vst [vmem:[#allocation23_spill] sm:$0xff] %v6633_v60  ;;  %v679_v36 = vpop.f32.mrb[72].mxu0  ;;  %v1824_v1 = vsel %vm1312_vm11, %v676_v41, %v1568_v18  ;;  %v2007_v30 = vpack.c.bf16 %v1823_v15, %v1819_v31  ;;  %8260 = vst [vmem:[#allocation24_spill] sm:$0xff] %v6639_v55  ;;  %v6651_v12 = vadd.f32 %v6526_v39, %v6604_v56  ;;  %v6662_v15 = vpop.f32.mrb[44].mxu1  ;;  %vm1174_vm10 = vcmp.gt.f32.partialorder %v6618_v5, 0.0 }
 0x1a4   :  { %v680_v57 = vadd.f32 %v679_v36, %v5996_v16  ;;  %v681_v22 = vpop.f32.mrb[73].mxu0  ;;  %v2008_v53 = vpack.c.bf16 %v1824_v1, %v1820_v62  ;;  %vm1177_vm12 = vcmp.gt.f32.partialorder %v857_v7, 0.0  ;;  %v1433_v54 = vmul.f32 0.2, %v857_v7  ;;  %4796 = vmatmul.mubr.msk.bf16.gmra.mrb[148].mxu1 %vm368_vm0, %v5447_v63 }
 0x1a5   :  { %v682_v29 = vadd.f32 %v681_v22, %v6000_v17  ;;  %v683_v31 = vpop.f32.mrb[74].mxu0  ;;  %1150 = vmatprep.mubr.bf16.mxu1 %v8257_v25  ;;  %v6665_v43 = vmul.f32 0.2, %v6651_v12  ;;  %vm1178_vm11 = vcmp.gt.f32.partialorder %v6651_v12, 0.0 }
 0x1a6   :  { %vm1315_vm15 = vcmp.gt.f32.partialorder %v680_v57, 0.0  ;;  %v1571_v36 = vmul.f32 0.2, %v680_v57  ;;  %v684_v20 = vadd.f32 %v683_v31, %v5996_v16  ;;  %v685_v41 = vpop.f32.mrb[75].mxu0  ;;  %2665 = vmatprep.mubr.bf16.mxu0 %v2008_v53  ;;  %v6657_v18 = vsel %vm1177_vm12, %v857_v7, %v1433_v54  ;;  %v6667_v31 = vpop.f32.mrb[45].mxu1 }
 0x1a7   :  { %8261 = vst [vmem:[#allocation25_spill] sm:$0xff] %v6657_v18  ;;  %vm1316_vm1 = vcmp.gt.f32.partialorder %v682_v29, 0.0  ;;  %v1572_v22 = vmul.f32 0.2, %v682_v29  ;;  %v686_v62 = vadd.f32 %v685_v41, %v6000_v17  ;;  %2666 = vmatmul.mubr.bf16.gmra.mrb[164].mxu0 %v2007_v30  ;;  %v6673_v30 = vsel %vm1420_vm13, %v6522_v33, %v6537_v45  ;;  %v6675_v54 = vpop.f32.mrb[46].mxu1  ;;  %v5420_v41 = vld [vmem:[#allocation4 + $0x18] sm:$0xff]  }
 0x1a8   :  { %vm1319_vm2 = vcmp.gt.f32.partialorder %v684_v20, 0.0  ;;  %v1575_v1 = vmul.f32 0.2, %v684_v20  ;;  %v1827_v63 = vsel %vm1315_vm15, %v680_v57, %v1571_v36  ;;  %8262 = vst [vmem:[#allocation26_spill] sm:$0xff] %v6673_v30  ;;  %v6681_v57 = vsel %vm1424_vm14, %v6556_v44, %v6568_v4  ;;  %v6691_v33 = vpop.f32.mrb[47].mxu1  ;;  %3759 = vmatpush1.bf16.msra.mxu1 %v5420_v41 }
 0x1a9   :  { %vm1320_vm3 = vcmp.gt.f32.partialorder %v686_v62, 0.0  ;;  %v1576_v53 = vmul.f32 0.2, %v686_v62  ;;  %v1828_v7 = vsel %vm1316_vm1, %v682_v29, %v1572_v22  ;;  %8263 = vst [vmem:[#allocation27_spill] sm:$0xff] %v6681_v57  ;;  %v6685_v36 = vadd.f32 %v6565_v52, %v6595_v27  ;;  %3760 = vmatprep.subr.bf16.mxu1 %v8257_v25 }
 0x1aa   :  { %v1831_v39 = vsel %vm1319_vm2, %v684_v20, %v1575_v1  ;;  %v6689_v29 = vadd.f32 %v6570_v3, %v6604_v56  ;;  %v6753_v57 = vsel %vm1178_vm11, %v6651_v12, %v6665_v43  ;;  %v6771_v43 = vadd.f32 %v6624_v32, %v6595_v27 }
 0x1ab   :  { %v689_v45 = vpop.f32.mrb[76].mxu0  ;;  %v1832_v22 = vsel %vm1320_vm3, %v686_v62, %v1576_v53  ;;  %v2011_v55 = vpack.c.bf16 %v1831_v39, %v1827_v63  ;;  %v6698_v1 = vmul.f32 0.2, %v6685_v36  ;;  %v5448_v62 = vld [vmem:[%s8171_s0 + $0xf0] sm:$0xff]   ;;  %v6712_v53 = vsel %vm1419_vm4, %v6517_v51, %v6529_v59  ;;  %8267 = vst [vmem:[#allocation31_spill] sm:$0xff] %v6753_v57 }
 0x1ac   :  { %v690_v4 = vadd.f32 %v689_v45, %v5996_v16  ;;  %v691_v44 = vpop.f32.mrb[77].mxu0  ;;  %v2012_v52 = vpack.c.bf16 %v1832_v22, %v1828_v7  ;;  %v6701_v3 = vmul.f32 0.2, %v6689_v29  ;;  %4797 = vmatmul.mubr.msk.bf16.gmra.mrb[152].mxu1 %vm368_vm0, %v5448_v62  ;;  %8264 = vst [vmem:[#allocation28_spill] sm:$0xff] %v6712_v53  ;;  %v6716_v7 = vadd.f32 %v6573_v47, %v6595_v27  ;;  %v6727_v47 = vpop.f32.mrb[48].mxu1 }
 0x1ad   :  { %v692_v39 = vadd.f32 %v691_v44, %v6000_v17  ;;  %v693_v63 = vpop.f32.mrb[78].mxu0  ;;  %1160 = vmatprep.mubr.bf16.mxu1 %v8257_v25  ;;  %v6722_v44 = vsel %vm1423_vm5, %v6552_v9, %v6563_v13  ;;  %vm1182_vm15 = vcmp.gt.f32.partialorder %v6689_v29, 0.0  ;;  %3761 = vmatpush1.bf16.msra.mxu1 %v5421_v10  ;;  %vm1181_vm2 = vcmp.gt.f32.partialorder %v6685_v36, 0.0 }
 0x1ae   :  { %vm1323_vm6 = vcmp.gt.f32.partialorder %v690_v4, 0.0  ;;  %v1579_v41 = vmul.f32 0.2, %v690_v4  ;;  %v694_v45 = vadd.f32 %v693_v63, %v5996_v16  ;;  %v695_v22 = vpop.f32.mrb[79].mxu0  ;;  %2675 = vmatprep.mubr.bf16.mxu0 %v2012_v52  ;;  %8265 = vst [vmem:[#allocation29_spill] sm:$0xff] %v6722_v44  ;;  %v6732_v52 = vpop.f32.mrb[49].mxu1  ;;  %3762 = vmatprep.subr.bf16.mxu1 %v8257_v25  ;;  %v6824_v10 = vsel %vm1181_vm2, %v6685_v36, %v6698_v1 }
 0x1af   :  { %vm1324_vm7 = vcmp.gt.f32.partialorder %v692_v39, 0.0  ;;  %v1580_v62 = vmul.f32 0.2, %v692_v39  ;;  %v696_v51 = vadd.f32 %v695_v22, %v6000_v17  ;;  %2676 = vmatmul.mubr.bf16.gmra.mrb[168].mxu0 %v2011_v55  ;;  %v6730_v63 = vmul.f32 0.2, %v6716_v7  ;;  %v6736_v55 = vpop.f32.mrb[50].mxu1 }
 0x1b0   :  { %vm1327_vm8 = vcmp.gt.f32.partialorder %v694_v45, 0.0  ;;  %v1583_v20 = vmul.f32 0.2, %v694_v45  ;;  %v1835_v18 = vsel %vm1323_vm6, %v690_v4, %v1579_v41  ;;  %v869_v22 = vadd.f32 %v6586_v0, %v6604_v56  ;;  %v6744_v41 = vpop.f32.mrb[51].mxu1  ;;  %8270 = vst [vmem:[#allocation34_spill] sm:$0xff] %v6824_v10 }
 0x1b1   :  { %vm1328_vm9 = vcmp.gt.f32.partialorder %v696_v51, 0.0  ;;  %v1584_v9 = vmul.f32 0.2, %v696_v51  ;;  %v1836_v13 = vsel %vm1324_vm7, %v692_v39, %v1580_v62  ;;  %v6742_v4 = vadd.f32 %v6620_v11, %v6595_v27  ;;  %v6782_v32 = vpop.f32.mrb[52].mxu1 }
 0x1b2   :  { %v1839_v30 = vsel %vm1327_vm8, %v694_v45, %v1583_v20  ;;  %v1442_v39 = vmul.f32 0.2, %v869_v22  ;;  %v6748_v0 = vsel %vm1174_vm10, %v6618_v5, %v6627_v37  ;;  %vm1186_vm1 = vcmp.gt.f32.partialorder %v869_v22, 0.0 }
 0x1b3   :  { %v699_v59 = vpop.f32.mrb[80].mxu0  ;;  %v1840_v53 = vsel %vm1328_vm9, %v696_v51, %v1584_v9  ;;  %v2015_v44 = vpack.c.bf16 %v1839_v30, %v1835_v18  ;;  %8266 = vst [vmem:[#allocation30_spill] sm:$0xff] %v6748_v0  ;;  %v6756_v11 = vmul.f32 0.2, %v6742_v4  ;;  %v5449_v18 = vld [vmem:[%s8171_s0 + $0xf8] sm:$0xff]   ;;  %v6776_v9 = vadd.f32 %v6637_v58, %v6604_v56 }
 0x1b4   :  { %v700_v20 = vadd.f32 %v699_v59, %v5996_v16  ;;  %v701_v45 = vpop.f32.mrb[81].mxu0  ;;  %v2016_v62 = vpack.c.bf16 %v1840_v53, %v1836_v13  ;;  %4798 = vmatmul.mubr.msk.bf16.gmra.mrb[156].mxu1 %vm368_vm0, %v5449_v18  ;;  %v6767_v53 = vadd.f32 %v6622_v35, %v6604_v56  ;;  %vm1185_vm3 = vcmp.gt.f32.partialorder %v6716_v7, 0.0 }
 0x1b5   :  { %v702_v5 = vadd.f32 %v701_v45, %v6000_v17  ;;  %v703_v37 = vpop.f32.mrb[82].mxu0  ;;  %v6790_v57 = vmul.f32 0.2, %v6776_v9  ;;  %vm1194_vm9 = vcmp.gt.f32.partialorder %v6776_v9, 0.0 }
 0x1b6   :  { %vm1331_vm12 = vcmp.gt.f32.partialorder %v700_v20, 0.0  ;;  %v1587_v12 = vmul.f32 0.2, %v700_v20  ;;  %v704_v51 = vadd.f32 %v703_v37, %v5996_v16  ;;  %v705_v59 = vpop.f32.mrb[83].mxu0  ;;  %2685 = vmatprep.mubr.bf16.mxu0 %v2016_v62  ;;  %v6780_v35 = vmul.f32 0.2, %v6767_v53 }
 0x1b7   :  { %vm1332_vm0 = vcmp.gt.f32.partialorder %v702_v5, 0.0  ;;  %v1588_v13 = vmul.f32 0.2, %v702_v5  ;;  %v706_v45 = vadd.f32 %v705_v59, %v6000_v17  ;;  %2686 = vmatmul.mubr.bf16.gmra.mrb[172].mxu0 %v2015_v44  ;;  %v6785_v37 = vmul.f32 0.2, %v6771_v43  ;;  %v6787_v62 = vpop.f32.mrb[53].mxu1 }
 0x1b8   :  { %vm1335_vm13 = vcmp.gt.f32.partialorder %v704_v51, 0.0  ;;  %v1591_v18 = vmul.f32 0.2, %v704_v51  ;;  %v1843_v30 = vsel %vm1331_vm12, %v700_v20, %v1587_v12  ;;  %v6792_v44 = vpop.f32.mrb[54].mxu1  ;;  %v6797_v20 = vadd.f32 %v6662_v15, %v6595_v27 }
 0x1b9   :  { %vm1336_vm14 = vcmp.gt.f32.partialorder %v706_v45, 0.0  ;;  %v1592_v58 = vmul.f32 0.2, %v706_v45  ;;  %v1844_v0 = vsel %vm1332_vm0, %v702_v5, %v1588_v13  ;;  %v6799_v12 = vpop.f32.mrb[55].mxu1  ;;  %v6803_v5 = vsel %vm1182_vm15, %v6689_v29, %v6701_v3 }
 0x1ba   :  { %v1847_v59 = vsel %vm1335_vm13, %v704_v51, %v1591_v18  ;;  %8268 = vst [vmem:[#allocation32_spill] sm:$0xff] %v6803_v5  ;;  %v6805_v13 = vsel %vm1186_vm1, %v869_v22, %v1442_v39  ;;  %v6811_v23 = vmul.f32 0.2, %v6797_v20  ;;  %v6816_v29 = vadd.f32 %v6667_v31, %v6604_v56 }
 0x1bb   :  { %v709_v60 = vpop.f32.mrb[84].mxu0  ;;  %v1848_v28 = vsel %vm1336_vm14, %v706_v45, %v1592_v58  ;;  %v2019_v2 = vpack.c.bf16 %v1847_v59, %v1843_v30  ;;  %8269 = vst [vmem:[#allocation33_spill] sm:$0xff] %v6805_v13  ;;  %vm1190_vm8 = vcmp.gt.f32.partialorder %v6767_v53, 0.0  ;;  %vm1189_vm13 = vcmp.gt.f32.partialorder %v6742_v4, 0.0 }
 0x1bc   :  { %v710_v51 = vadd.f32 %v709_v60, %v5996_v16  ;;  %v711_v18 = vpop.f32.mrb[85].mxu0  ;;  %v2020_v42 = vpack.c.bf16 %v1848_v28, %v1844_v0  ;;  %v6828_v39 = vmul.f32 0.2, %v6816_v29  ;;  %v6830_v0 = vpop.f32.mrb[56].mxu1  ;;  %vm1193_vm14 = vcmp.gt.f32.partialorder %v6771_v43, 0.0 }
 0x1bd   :  { %v712_v45 = vadd.f32 %v711_v18, %v6000_v17  ;;  %v713_v30 = vpop.f32.mrb[86].mxu0  ;;  %v6838_v36 = vpop.f32.mrb[57].mxu1  ;;  %v6908_v13 = vsel %vm1193_vm14, %v6771_v43, %v6785_v37  ;;  %vm1198_vm15 = vcmp.gt.f32.partialorder %v6816_v29, 0.0 }
 0x1be   :  { %vm1339_vm4 = vcmp.gt.f32.partialorder %v710_v51, 0.0  ;;  %v1595_v28 = vmul.f32 0.2, %v710_v51  ;;  %v714_v60 = vadd.f32 %v713_v30, %v5996_v16  ;;  %v715_v3 = vpop.f32.mrb[87].mxu0  ;;  %2695 = vmatprep.mubr.bf16.mxu0 %v2020_v42  ;;  %v6836_v42 = vsel %vm1185_vm3, %v6716_v7, %v6730_v63  ;;  %v6842_v30 = vpop.f32.mrb[58].mxu1 }
 0x1bf   :  { %vm1340_vm5 = vcmp.gt.f32.partialorder %v712_v45, 0.0  ;;  %v1596_v22 = vmul.f32 0.2, %v712_v45  ;;  %v716_v31 = vadd.f32 %v715_v3, %v6000_v17  ;;  %2696 = vmatmul.mubr.bf16.gmra.mrb[176].mxu0 %v2019_v2  ;;  %8271 = vst [vmem:[#allocation35_spill] sm:$0xff] %v6836_v42  ;;  %v6853_v7 = vpop.f32.mrb[59].mxu1 }
 0x1c0   :  { %vm1343_vm6 = vcmp.gt.f32.partialorder %v714_v60, 0.0  ;;  %v1599_v58 = vmul.f32 0.2, %v714_v60  ;;  %v1851_v59 = vsel %vm1339_vm4, %v710_v51, %v1595_v28  ;;  %v6846_v51 = vadd.f32 %v6675_v54, %v6595_v27 }
 0x1c1   :  { %vm1344_vm7 = vcmp.gt.f32.partialorder %v716_v31, 0.0  ;;  %v1600_v1 = vmul.f32 0.2, %v716_v31  ;;  %v1852_v18 = vsel %vm1340_vm5, %v712_v45, %v1596_v22  ;;  %v6850_v28 = vadd.f32 %v6691_v33, %v6604_v56 }
 0x1c2   :  { %v1855_v3 = vsel %vm1343_vm6, %v714_v60, %v1599_v58  ;;  %v6858_v60 = vsel %vm1190_vm8, %v6767_v53, %v6780_v35  ;;  %v6862_v33 = vmul.f32 0.2, %v6846_v51  ;;  %v6872_v53 = vadd.f32 %v6727_v47, %v6595_v27 }
 0x1c3   :  { %v719_v63 = vpop.f32.mrb[88].mxu0  ;;  %v1856_v45 = vsel %vm1344_vm7, %v716_v31, %v1600_v1  ;;  %v2023_v22 = vpack.c.bf16 %v1855_v3, %v1851_v59  ;;  %8272 = vst [vmem:[#allocation36_spill] sm:$0xff] %v6858_v60  ;;  %v1458_v15 = vmul.f32 0.2, %v6850_v28  ;;  %v6868_v31 = vsel %vm1194_vm9, %v6776_v9, %v6790_v57 }
 0x1c4   :  { %v720_v54 = vadd.f32 %v719_v63, %v5996_v16  ;;  %v721_v58 = vpop.f32.mrb[89].mxu0  ;;  %v2024_v2 = vpack.c.bf16 %v1856_v45, %v1852_v18  ;;  %8273 = vst [vmem:[#allocation37_spill] sm:$0xff] %v6868_v31  ;;  %v6876_v35 = vadd.f32 %v6732_v52, %v6604_v56  ;;  %v6883_v47 = vmul.f32 0.2, %v6872_v53  ;;  %v6885_v63 = vpop.f32.mrb[60].mxu1 }
 0x1c5   :  { %v722_v10 = vadd.f32 %v721_v58, %v6000_v17  ;;  %v723_v42 = vpop.f32.mrb[90].mxu0  ;;  %v6898_v31 = vsel %vm1189_vm13, %v6742_v4, %v6756_v11  ;;  %vm1202_vm1 = vcmp.gt.f32.partialorder %v6850_v28, 0.0  ;;  %vm1197_vm6 = vcmp.gt.f32.partialorder %v6797_v20, 0.0 }
 0x1c6   :  { %vm1347_vm10 = vcmp.gt.f32.partialorder %v720_v54, 0.0  ;;  %v1603_v59 = vmul.f32 0.2, %v720_v54  ;;  %v724_v1 = vadd.f32 %v723_v42, %v5996_v16  ;;  %v725_v18 = vpop.f32.mrb[91].mxu0  ;;  %2705 = vmatprep.mubr.bf16.mxu0 %v2024_v2  ;;  %v6888_v42 = vmul.f32 0.2, %v6876_v35 }
 0x1c7   :  { %vm1348_vm11 = vcmp.gt.f32.partialorder %v722_v10, 0.0  ;;  %v1604_v57 = vmul.f32 0.2, %v722_v10  ;;  %v726_v9 = vadd.f32 %v725_v18, %v6000_v17  ;;  %2706 = vmatmul.mubr.bf16.gmra.mrb[180].mxu0 %v2023_v22  ;;  %v6890_v2 = vpop.f32.mrb[61].mxu1  ;;  %v5422_v22 = vld [vmem:[#allocation4 + $0x28] sm:$0xff]   ;;  %vm1201_vm7 = vcmp.gt.f32.partialorder %v6846_v51, 0.0 }
 0x1c8   :  { %vm1351_vm12 = vcmp.gt.f32.partialorder %v724_v1, 0.0  ;;  %v1607_v52 = vmul.f32 0.2, %v724_v1  ;;  %v1859_v45 = vsel %vm1347_vm10, %v720_v54, %v1603_v59  ;;  %v6893_v18 = vpop.f32.mrb[62].mxu1  ;;  %v6902_v54 = vadd.f32 %v6736_v55, %v6595_v27  ;;  %3763 = vmatpush1.bf16.msra.mxu1 %v5422_v22 }
 0x1c9   :  { %vm1352_vm0 = vcmp.gt.f32.partialorder %v726_v9, 0.0  ;;  %v1608_v58 = vmul.f32 0.2, %v726_v9  ;;  %v1860_v3 = vsel %vm1348_vm11, %v722_v10, %v1604_v57  ;;  %v6904_v59 = vpop.f32.mrb[63].mxu1  ;;  %3764 = vmatprep.subr.bf16.mxu1 %v8257_v25  ;;  %v6929_v22 = vsel %vm1202_vm1, %v6850_v28, %v1458_v15 }
 0x1ca   :  { %v1863_v60 = vsel %vm1351_vm12, %v724_v1, %v1607_v52  ;;  %v899_v1 = vadd.f32 %v6744_v41, %v6604_v56  ;;  %v6916_v21 = vmul.f32 0.2, %v6902_v54  ;;  %v905_v28 = vadd.f32 %v6787_v62, %v6604_v56 }
 0x1cb   :  { %v729_v5 = vpop.f32.mrb[92].mxu0  ;;  %v1864_v10 = vsel %vm1352_vm0, %v726_v9, %v1608_v58  ;;  %v2027_v57 = vpack.c.bf16 %v1863_v60, %v1859_v45  ;;  %v6925_v9 = vsel %vm1198_vm15, %v6816_v29, %v6828_v39  ;;  %v907_v62 = vadd.f32 %v6792_v44, %v6595_v27 }
 0x1cc   :  { %v730_v4 = vadd.f32 %v729_v5, %v5996_v16  ;;  %v731_v11 = vpop.f32.mrb[93].mxu0  ;;  %v2028_v52 = vpack.c.bf16 %v1864_v10, %v1860_v3  ;;  %v1466_v37 = vmul.f32 0.2, %v899_v1  ;;  %v6931_v10 = vpop.f32.mrb[64].mxu1  ;;  %vm1206_vm8 = vcmp.gt.f32.partialorder %v6876_v35, 0.0 }
 0x1cd   :  { %v732_v60 = vadd.f32 %v731_v11, %v6000_v17  ;;  %v733_v43 = vpop.f32.mrb[94].mxu0  ;;  %vm1210_vm9 = vcmp.gt.f32.partialorder %v899_v1, 0.0  ;;  %v913_v44 = vadd.f32 %v6830_v0, %v6595_v27  ;;  %vm1205_vm10 = vcmp.gt.f32.partialorder %v6872_v53, 0.0 }
 0x1ce   :  { %vm1355_vm2 = vcmp.gt.f32.partialorder %v730_v4, 0.0  ;;  %v1611_v41 = vmul.f32 0.2, %v730_v4  ;;  %v734_v5 = vadd.f32 %v733_v43, %v5996_v16  ;;  %v735_v3 = vpop.f32.mrb[95].mxu0  ;;  %2715 = vmatprep.mubr.bf16.mxu0 %v2028_v52  ;;  %v6935_v52 = vpop.f32.mrb[65].mxu1  ;;  %vm1209_vm11 = vcmp.gt.f32.partialorder %v6902_v54, 0.0 }
 0x1cf   :  { %vm1356_vm3 = vcmp.gt.f32.partialorder %v732_v60, 0.0  ;;  %v1612_v45 = vmul.f32 0.2, %v732_v60  ;;  %v736_v58 = vadd.f32 %v735_v3, %v6000_v17  ;;  %2716 = vmatmul.mubr.bf16.gmra.mrb[184].mxu0 %v2027_v57  ;;  %v903_v17 = vadd.f32 %v6782_v32, %v6595_v27  ;;  %v6939_v57 = vpop.f32.mrb[66].mxu1 }
 0x1d0   :  { %vm1359_vm4 = vcmp.gt.f32.partialorder %v734_v5, 0.0  ;;  %v1615_v11 = vmul.f32 0.2, %v734_v5  ;;  %v1867_v55 = vsel %vm1355_vm2, %v730_v4, %v1611_v41  ;;  %v6945_v4 = vpop.f32.mrb[67].mxu1  ;;  %v6981_v0 = vsel %vm1205_vm10, %v6872_v53, %v6883_v47 }
 0x1d1   :  { %vm1360_vm5 = vcmp.gt.f32.partialorder %v736_v58, 0.0  ;;  %v1616_v29 = vmul.f32 0.2, %v736_v58  ;;  %v1868_v39 = vsel %vm1356_vm3, %v732_v60, %v1612_v45  ;;  %v1469_v3 = vmul.f32 0.2, %v903_v17 }
 0x1d2   :  { %v1871_v15 = vsel %vm1359_vm4, %v734_v5, %v1615_v11  ;;  %v6949_v60 = vsel %vm1197_vm6, %v6797_v20, %v6811_v23  ;;  %v1470_v45 = vmul.f32 0.2, %v905_v28  ;;  %v6953_v5 = vsel %vm1201_vm7, %v6846_v51, %v6862_v33 }
 0x1d3   :  { %v1872_v43 = vsel %vm1360_vm5, %v736_v58, %v1616_v29  ;;  %v2031_v41 = vpack.c.bf16 %v1871_v15, %v1867_v55  ;;  %v909_v55 = vadd.f32 %v6799_v12, %v6604_v56  ;;  %v1473_v23 = vmul.f32 0.2, %v907_v62  ;;  %v942_v29 = vpop.f32.mrb[68].mxu1 }
 0x1d4   :  { %v2032_v32 = vpack.c.bf16 %v1872_v43, %v1868_v39  ;;  %v6964_v20 = vsel %vm1206_vm8, %v6876_v35, %v6888_v42  ;;  %v6966_v51 = vsel %vm1210_vm9, %v899_v1, %v1466_v37  ;;  %v915_v12 = vadd.f32 %v6838_v36, %v6604_v56  ;;  %v944_v37 = vpop.f32.mrb[69].mxu1  ;;  %v5423_v39 = vld [vmem:[#allocation4 + $0x30] sm:$0xff]  }
 0x1d5   :  { %v1474_v33 = vmul.f32 0.2, %v909_v55  ;;  %v8274_v35 = vpack.c.bf16 %v6176_v24, %v6167_v19  ;;  %v1477_v42 = vmul.f32 0.2, %v913_v44  ;;  %v917_v1 = vadd.f32 %v6842_v30, %v6595_v27  ;;  %v946_v24 = vpop.f32.mrb[70].mxu1  ;;  %3765 = vmatpush1.bf16.msra.mxu1 %v5423_v39 }
 0x1d6   :  { %2725 = vmatprep.mubr.bf16.mxu0 %v2032_v32  ;;  %v1478_v36 = vmul.f32 0.2, %v915_v12  ;;  %v6987_v15 = vsel %vm1209_vm11, %v6902_v54, %v6916_v21  ;;  %v919_v19 = vadd.f32 %v6853_v7, %v6604_v56  ;;  %vm1214_vm12 = vcmp.gt.f32.partialorder %v905_v28, 0.0  ;;  %v948_v30 = vpop.f32.mrb[71].mxu1  ;;  %3766 = vmatprep.subr.bf16.mxu1 %v8257_v25 }
 0x1d7   :  { %2726 = vmatmul.mubr.bf16.gmra.mrb[188].mxu0 %v2031_v41  ;;  %v1481_v53 = vmul.f32 0.2, %v917_v1  ;;  %vm1218_vm0 = vcmp.gt.f32.partialorder %v909_v55, 0.0  ;;  %v6993_v47 = vsel %vm1214_vm12, %v905_v28, %v1470_v45  ;;  %v923_v21 = vadd.f32 %v6885_v63, %v6595_v27 }
 0x1d8   :  { %2735 = vmatprep.mubr.bf16.mxu0 %v8274_v35  ;;  %v1482_v41 = vmul.f32 0.2, %v919_v19  ;;  %v6995_v32 = vsel %vm1218_vm0, %v909_v55, %v1474_v33  ;;  %v925_v7 = vadd.f32 %v6890_v2, %v6604_v56  ;;  %vm1213_vm13 = vcmp.gt.f32.partialorder %v903_v17, 0.0 }
 0x1d9   :  { %vm1217_vm14 = vcmp.gt.f32.partialorder %v907_v62, 0.0  ;;  %v927_v28 = vadd.f32 %v6893_v18, %v6595_v27  ;;  %v1485_v45 = vmul.f32 0.2, %v923_v21  ;;  %v7006_v55 = vsel %vm1213_vm13, %v903_v17, %v1469_v3 }
 0x1da   :  { %v1486_v35 = vmul.f32 0.2, %v925_v7  ;;  %v7008_v33 = vsel %vm1217_vm14, %v907_v62, %v1473_v23  ;;  %v929_v39 = vadd.f32 %v6904_v59, %v6604_v56  ;;  %vm1222_vm15 = vcmp.gt.f32.partialorder %v915_v12, 0.0  ;;  %v952_v62 = vpop.f32.mrb[72].mxu1 }
 0x1db   :  { %v1489_v2 = vmul.f32 0.2, %v927_v28  ;;  %v8275_v54 = vpack.c.bf16 %v6212_v50, %v6191_v34  ;;  %vm1226_vm1 = vcmp.gt.f32.partialorder %v919_v19, 0.0  ;;  %v7017_v18 = vsel %vm1222_vm15, %v915_v12, %v1478_v36  ;;  %v954_v34 = vpop.f32.mrb[73].mxu1 }
 0x1dc   :  { %v933_v17 = vadd.f32 %v6931_v10, %v6595_v27  ;;  %v935_v3 = vadd.f32 %v6935_v52, %v6604_v56  ;;  %v8276_v23 = vpack.c.bf16 %v6242_v8, %v6236_v14  ;;  %v1490_v59 = vmul.f32 0.2, %v929_v39 }
 0x1dd   :  { %v7026_v63 = vsel %vm1226_vm1, %v919_v19, %v1482_v41  ;;  %vm1221_vm2 = vcmp.gt.f32.partialorder %v913_v44, 0.0  ;;  %vm1225_vm3 = vcmp.gt.f32.partialorder %v917_v1, 0.0  ;;  %v937_v14 = vadd.f32 %v6939_v57, %v6595_v27 }
 0x1de   :  { %v1493_v12 = vmul.f32 0.2, %v933_v17  ;;  %v1494_v36 = vmul.f32 0.2, %v935_v3  ;;  %v7030_v10 = vsel %vm1221_vm2, %v913_v44, %v1477_v42  ;;  %v7032_v52 = vsel %vm1225_vm3, %v917_v1, %v1481_v53 }
 0x1df   :  { %2736 = vmatmul.mubr.bf16.gmra.mrb[192].mxu0 %v8275_v54  ;;  %v956_v54 = vpop.f32.mrb[74].mxu1  ;;  %v939_v8 = vadd.f32 %v6945_v4, %v6604_v56  ;;  %vm1230_vm4 = vcmp.gt.f32.partialorder %v925_v7, 0.0  ;;  %vm1234_vm5 = vcmp.gt.f32.partialorder %v929_v39, 0.0  ;;  %v943_v44 = vadd.f32 %v942_v29, %v6595_v27 }
 0x1e0   :  { %2745 = vmatprep.mubr.bf16.mxu0 %v8276_v23  ;;  %v958_v19 = vpop.f32.mrb[75].mxu1  ;;  %v7040_v23 = vsel %vm1230_vm4, %v925_v7, %v1486_v35  ;;  %v1497_v42 = vmul.f32 0.2, %v937_v14  ;;  %v7043_v1 = vsel %vm1234_vm5, %v929_v39, %v1490_v59  ;;  %v945_v53 = vadd.f32 %v944_v37, %v6604_v56 }
 0x1e1   :  { %v1498_v50 = vmul.f32 0.2, %v939_v8  ;;  %v1501_v4 = vmul.f32 0.2, %v943_v44  ;;  %vm1229_vm6 = vcmp.gt.f32.partialorder %v923_v21, 0.0  ;;  %vm1233_vm7 = vcmp.gt.f32.partialorder %v927_v28, 0.0 }
 0x1e2   :  { %v1502_v43 = vmul.f32 0.2, %v945_v53  ;;  %v7048_v58 = vsel %vm1229_vm6, %v923_v21, %v1485_v45  ;;  %v7050_v41 = vsel %vm1233_vm7, %v927_v28, %v1489_v2  ;;  %v947_v7 = vadd.f32 %v946_v24, %v6595_v27  ;;  %v962_v39 = vpop.f32.mrb[76].mxu1  ;;  %v5424_v2 = vld [vmem:[#allocation4 + $0x38] sm:$0xff]  }
 0x1e3   :  { %v8277_v29 = vpack.c.bf16 %v6274_v46, %v6267_v40  ;;  %v949_v35 = vadd.f32 %v948_v30, %v6604_v56  ;;  %vm1238_vm8 = vcmp.gt.f32.partialorder %v935_v3, 0.0  ;;  %vm1242_vm9 = vcmp.gt.f32.partialorder %v939_v8, 0.0  ;;  %v964_v46 = vpop.f32.mrb[77].mxu1  ;;  %3767 = vmatpush1.bf16.msra.mxu1 %v5424_v2 }
 0x1e4   :  { %v8278_v21 = vpack.c.bf16 %v6309_v26, %v6303_v61  ;;  %v1505_v28 = vmul.f32 0.2, %v947_v7  ;;  %v7062_v45 = vsel %vm1238_vm8, %v935_v3, %v1494_v36  ;;  %v7064_v24 = vsel %vm1242_vm9, %v939_v8, %v1498_v50  ;;  %v966_v37 = vpop.f32.mrb[78].mxu1  ;;  %3768 = vmatprep.subr.bf16.mxu1 %v8257_v25 }
 0x1e5   :  { %v953_v40 = vadd.f32 %v952_v62, %v6595_v27  ;;  %v1506_v59 = vmul.f32 0.2, %v949_v35  ;;  %vm1237_vm10 = vcmp.gt.f32.partialorder %v933_v17, 0.0  ;;  %vm1241_vm11 = vcmp.gt.f32.partialorder %v937_v14, 0.0  ;;  %v968_v3 = vpop.f32.mrb[79].mxu1 }
 0x1e6   :  { %v7070_v61 = vsel %vm1237_vm10, %v933_v17, %v1493_v12  ;;  %v957_v26 = vadd.f32 %v956_v54, %v6595_v27  ;;  %v7073_v62 = vsel %vm1241_vm11, %v937_v14, %v1497_v42  ;;  %v959_v36 = vadd.f32 %v958_v19, %v6604_v56 }
 0x1e7   :  { %2746 = vmatmul.mubr.bf16.gmra.mrb[196].mxu0 %v8277_v29  ;;  %v955_v29 = vadd.f32 %v954_v34, %v6604_v56  ;;  %v1509_v57 = vmul.f32 0.2, %v953_v40  ;;  %vm1246_vm12 = vcmp.gt.f32.partialorder %v945_v53, 0.0  ;;  %vm1250_vm0 = vcmp.gt.f32.partialorder %v949_v35, 0.0 }
 0x1e8   :  { %2755 = vmatprep.mubr.bf16.mxu0 %v8278_v21  ;;  %v1513_v8 = vmul.f32 0.2, %v957_v26  ;;  %v7079_v21 = vsel %vm1246_vm12, %v945_v53, %v1502_v43  ;;  %v1514_v17 = vmul.f32 0.2, %v959_v36  ;;  %v7081_v12 = vsel %vm1250_vm0, %v949_v35, %v1506_v59 }
 0x1e9   :  { %v1510_v50 = vmul.f32 0.2, %v955_v29  ;;  %v963_v54 = vadd.f32 %v962_v39, %v6595_v27  ;;  %v965_v14 = vadd.f32 %v964_v46, %v6604_v56  ;;  %vm1245_vm13 = vcmp.gt.f32.partialorder %v943_v44, 0.0  ;;  %v972_v39 = vpop.f32.mrb[80].mxu1 }
 0x1ea   :  { %vm1249_vm14 = vcmp.gt.f32.partialorder %v947_v7, 0.0  ;;  %v967_v42 = vadd.f32 %v966_v37, %v6595_v27  ;;  %v8279_v2 = vpack.c.bf16 %v6337_v6, %v6333_v49  ;;  %v7091_v34 = vsel %vm1245_vm13, %v943_v44, %v1501_v4  ;;  %v974_v49 = vpop.f32.mrb[81].mxu1 }
 0x1eb   :  { %v1517_v43 = vmul.f32 0.2, %v963_v54  ;;  %v1518_v53 = vmul.f32 0.2, %v965_v14  ;;  %v7093_v35 = vsel %vm1249_vm14, %v947_v7, %v1505_v28  ;;  %v8280_v46 = vpack.c.bf16 %v6370_v38, %v6363_v48  ;;  %v976_v7 = vpop.f32.mrb[82].mxu1 }
 0x1ec   :  { %v1521_v19 = vmul.f32 0.2, %v967_v42  ;;  %v969_v37 = vadd.f32 %v968_v3, %v6604_v56  ;;  %vm1254_vm15 = vcmp.gt.f32.partialorder %v955_v29, 0.0  ;;  %vm1258_vm1 = vcmp.gt.f32.partialorder %v959_v36, 0.0  ;;  %v978_v48 = vpop.f32.mrb[83].mxu1 }
 0x1ed   :  { %v7101_v6 = vsel %vm1254_vm15, %v955_v29, %v1510_v50  ;;  %v973_v44 = vadd.f32 %v972_v39, %v6595_v27  ;;  %v975_v4 = vadd.f32 %v974_v49, %v6604_v56  ;;  %vm1253_vm2 = vcmp.gt.f32.partialorder %v953_v40, 0.0 }
 0x1ee   :  { %v1522_v28 = vmul.f32 0.2, %v969_v37  ;;  %vm1257_vm3 = vcmp.gt.f32.partialorder %v957_v26, 0.0  ;;  %v7109_v59 = vsel %vm1253_vm2, %v953_v40, %v1509_v57  ;;  %v977_v50 = vadd.f32 %v976_v7, %v6595_v27  ;;  %v8281_v57 = vld [vmem:[#allocation11_spill] sm:$0xff]  ;;  %v8282_v40 = vld [vmem:[#allocation10_spill] sm:$0xff]  ;;  %v982_v7 = vpop.f32.mrb[84].mxu1 }
 0x1ef   :  { %2756 = vmatmul.mubr.bf16.gmra.mrb[200].mxu0 %v8279_v2  ;;  %v7105_v2 = vsel %vm1258_vm1, %v959_v36, %v1514_v17  ;;  %v1525_v3 = vmul.f32 0.2, %v973_v44  ;;  %v7111_v29 = vsel %vm1257_vm3, %v957_v26, %v1513_v8  ;;  %v979_v39 = vadd.f32 %v978_v48, %v6604_v56  ;;  %v8295_v8 = vld [vmem:[#allocation17_spill] sm:$0xff] }
 0x1f0   :  { %2765 = vmatprep.mubr.bf16.mxu0 %v8280_v46  ;;  %v1526_v46 = vmul.f32 0.2, %v975_v4  ;;  %vm1262_vm4 = vcmp.gt.f32.partialorder %v965_v14, 0.0  ;;  %vm1266_vm5 = vcmp.gt.f32.partialorder %v969_v37, 0.0  ;;  %vm1261_vm6 = vcmp.gt.f32.partialorder %v963_v54, 0.0 }
 0x1f1   :  { %v7117_v17 = vsel %vm1262_vm4, %v965_v14, %v1518_v53  ;;  %v1529_v49 = vmul.f32 0.2, %v977_v50  ;;  %v1530_v38 = vmul.f32 0.2, %v979_v39  ;;  %v7119_v30 = vsel %vm1266_vm5, %v969_v37, %v1522_v28  ;;  %v8284_v14 = vld [vmem:[#allocation13_spill] sm:$0xff]  ;;  %v8285_v53 = vld [vmem:[#allocation12_spill] sm:$0xff] }
 0x1f2   :  { %vm1265_vm7 = vcmp.gt.f32.partialorder %v967_v42, 0.0  ;;  %v8283_v26 = vpack.c.bf16 %v8281_v57, %v8282_v40  ;;  %v7126_v48 = vsel %vm1261_vm6, %v963_v54, %v1517_v43  ;;  %vm1270_vm8 = vcmp.gt.f32.partialorder %v975_v4, 0.0  ;;  %v984_v28 = vpop.f32.mrb[85].mxu1 }
 0x1f3   :  { %v7128_v36 = vsel %vm1265_vm7, %v967_v42, %v1521_v19  ;;  %v8286_v11 = vpack.c.bf16 %v8284_v14, %v8285_v53  ;;  %v983_v37 = vadd.f32 %v982_v7, %v6595_v27  ;;  %vm1274_vm9 = vcmp.gt.f32.partialorder %v979_v39, 0.0  ;;  %v986_v43 = vpop.f32.mrb[86].mxu1 }
 0x1f4   :  { %v7136_v40 = vsel %vm1270_vm8, %v975_v4, %v1526_v46  ;;  %v985_v54 = vadd.f32 %v984_v28, %v6604_v56  ;;  %v7139_v19 = vsel %vm1274_vm9, %v979_v39, %v1530_v38  ;;  %vm1269_vm10 = vcmp.gt.f32.partialorder %v973_v44, 0.0  ;;  %v988_v14 = vpop.f32.mrb[87].mxu1  ;;  %v8296_v39 = vld [vmem:[#allocation16_spill] sm:$0xff] }
 0x1f5   :  { %vm1273_vm11 = vcmp.gt.f32.partialorder %v977_v50, 0.0  ;;  %v1533_v42 = vmul.f32 0.2, %v983_v37  ;;  %v7144_v53 = vsel %vm1269_vm10, %v973_v44, %v1525_v3  ;;  %v989_v46 = vadd.f32 %v988_v14, %v6604_v56  ;;  %v8290_v3 = vld [vmem:[#allocation15_spill] sm:$0xff] }
 0x1f6   :  { %8287 = vst [vmem:[#allocation11_spill] sm:$0xff] %v7144_v53  ;;  %v1534_v4 = vmul.f32 0.2, %v985_v54  ;;  %v7147_v57 = vsel %vm1273_vm11, %v977_v50, %v1529_v49  ;;  %vm1278_vm12 = vcmp.gt.f32.partialorder %v985_v54, 0.0  ;;  %vm1277_vm13 = vcmp.gt.f32.partialorder %v983_v37, 0.0  ;;  %v992_v50 = vpop.f32.mrb[88].mxu1 }
 0x1f7   :  { %2766 = vmatmul.mubr.bf16.gmra.mrb[204].mxu0 %v8283_v26  ;;  %v5425_v26 = vld [vmem:[#allocation4 + $0x40] sm:$0xff]   ;;  %v1538_v28 = vmul.f32 0.2, %v989_v46  ;;  %vm1282_vm0 = vcmp.gt.f32.partialorder %v989_v46, 0.0  ;;  %v7154_v44 = vsel %vm1277_vm13, %v983_v37, %v1533_v42  ;;  %v8297_v16 = vpack.c.bf16 %v8295_v8, %v8296_v39 }
 0x1f8   :  { %2775 = vmatprep.mubr.bf16.mxu0 %v8286_v11  ;;  %v987_v11 = vadd.f32 %v986_v43, %v6595_v27  ;;  %3769 = vmatpush1.bf16.msra.mxu1 %v5425_v26  ;;  %v7152_v43 = vsel %vm1278_vm12, %v985_v54, %v1534_v4  ;;  %8289 = vst [vmem:[#allocation13_spill] sm:$0xff] %v7154_v44  ;;  %v8291_v26 = vld [vmem:[#allocation14_spill] sm:$0xff]  ;;  %v994_v54 = vpop.f32.mrb[89].mxu1 }
 0x1f9   :  { %3770 = vmatprep.subr.bf16.mxu1 %v8257_v25  ;;  %8288 = vst [vmem:[#allocation10_spill] sm:$0xff] %v7152_v43  ;;  %v8292_v14 = vpack.c.bf16 %v8290_v3, %v8291_v26  ;;  %v7159_v49 = vsel %vm1282_vm0, %v989_v46, %v1538_v28  ;;  %v993_v53 = vadd.f32 %v992_v50, %v6595_v27  ;;  %v996_v3 = vpop.f32.mrb[90].mxu1  ;;  %v8300_v50 = vld [vmem:[#allocation19_spill] sm:$0xff] }
 0x1fa   :  { %v1537_v38 = vmul.f32 0.2, %v987_v11  ;;  %vm1281_vm14 = vcmp.gt.f32.partialorder %v987_v11, 0.0  ;;  %8293 = vst [vmem:[#allocation12_spill] sm:$0xff] %v7159_v49  ;;  %v995_v4 = vadd.f32 %v994_v54, %v6604_v56  ;;  %v8301_v54 = vld [vmem:[#allocation18_spill] sm:$0xff] }
 0x1fb   :  { %v1541_v46 = vmul.f32 0.2, %v993_v53  ;;  %vm1285_vm2 = vcmp.gt.f32.partialorder %v993_v53, 0.0  ;;  %v8302_v42 = vpack.c.bf16 %v8300_v50, %v8301_v54 }
 0x1fc   :  { %v7161_v7 = vsel %vm1281_vm14, %v987_v11, %v1537_v38  ;;  %v997_v11 = vadd.f32 %v996_v3, %v6595_v27  ;;  %v998_v38 = vpop.f32.mrb[91].mxu1  ;;  %v1542_v28 = vmul.f32 0.2, %v995_v4  ;;  %vm1286_vm15 = vcmp.gt.f32.partialorder %v995_v4, 0.0 }
 0x1fd   :  { %8294 = vst [vmem:[#allocation15_spill] sm:$0xff] %v7161_v7  ;;  %v999_v8 = vadd.f32 %v998_v38, %v6604_v56  ;;  %v1002_v37 = vpop.f32.mrb[92].mxu1  ;;  %v8305_v38 = vld [vmem:[#allocation21_spill] sm:$0xff]  ;;  %v8306_v7 = vld [vmem:[#allocation20_spill] sm:$0xff] }
 0x1fe   :  { %v7174_v26 = vsel %vm1286_vm15, %v995_v4, %v1542_v28  ;;  %vm1289_vm3 = vcmp.gt.f32.partialorder %v997_v11, 0.0  ;;  %v8307_v43 = vpack.c.bf16 %v8305_v38, %v8306_v7  ;;  %v1003_v49 = vadd.f32 %v1002_v37, %v6595_v27  ;;  %v1004_v4 = vpop.f32.mrb[93].mxu1  ;;  %v8311_v28 = vld [vmem:[#allocation22_spill] sm:$0xff] }
 0x1ff   :  { %2776 = vmatmul.mubr.bf16.gmra.mrb[208].mxu0 %v8292_v14  ;;  %v1546_v39 = vmul.f32 0.2, %v999_v8  ;;  %vm1290_vm1 = vcmp.gt.f32.partialorder %v999_v8, 0.0  ;;  %8298 = vst [vmem:[#allocation14_spill] sm:$0xff] %v7174_v26  ;;  %v7176_v14 = vsel %vm1285_vm2, %v993_v53, %v1541_v46  ;;  %v5426_v46 = vld [vmem:[#allocation4 + $0x48] sm:$0xff]  }
 0x200   :  { %2785 = vmatprep.mubr.bf16.mxu0 %v8297_v16  ;;  %v1545_v16 = vmul.f32 0.2, %v997_v11  ;;  %8299 = vst [vmem:[#allocation17_spill] sm:$0xff] %v7176_v14  ;;  %3771 = vmatpush1.bf16.msra.mxu1 %v5426_v46  ;;  %vm1293_vm6 = vcmp.gt.f32.partialorder %v1003_v49, 0.0  ;;  %v8315_v14 = vld [vmem:[#allocation27_spill] sm:$0xff] }
 0x201   :  { %v7181_v3 = vsel %vm1290_vm1, %v999_v8, %v1546_v39  ;;  %v1006_v8 = vpop.f32.mrb[94].mxu1  ;;  %v1549_v39 = vmul.f32 0.2, %v1003_v49  ;;  %3772 = vmatprep.subr.bf16.mxu1 %v8257_v25 }
 0x202   :  { %8303 = vst [vmem:[#allocation16_spill] sm:$0xff] %v7181_v3  ;;  %v7183_v44 = vsel %vm1289_vm3, %v997_v11, %v1545_v16  ;;  %v1007_v11 = vadd.f32 %v1006_v8, %v6595_v27  ;;  %v1008_v16 = vpop.f32.mrb[95].mxu1 }
 0x203   :  { %8304 = vst [vmem:[#allocation19_spill] sm:$0xff] %v7183_v44  ;;  %v7199_v38 = vsel %vm1293_vm6, %v1003_v49, %v1549_v39  ;;  %v1012_v46 = vpop.f32.mrb[96].mxu1  ;;  %v8316_v44 = vld [vmem:[#allocation26_spill] sm:$0xff]  ;;  %v8322_v39 = vld [vmem:[#allocation28_spill] sm:$0xff] }
 0x204   :  { %v1553_v37 = vmul.f32 0.2, %v1007_v11  ;;  %vm1297_vm7 = vcmp.gt.f32.partialorder %v1007_v11, 0.0  ;;  %8309 = vst [vmem:[#allocation21_spill] sm:$0xff] %v7199_v38  ;;  %v8317_v26 = vpack.c.bf16 %v8315_v14, %v8316_v44  ;;  %v1013_v3 = vadd.f32 %v1012_v46, %v6595_v27 }
 0x206   :  { %vm1301_vm8 = vcmp.gt.f32.partialorder %v1013_v3, 0.0 }
 0x207   :  { %2786 = vmatmul.mubr.bf16.gmra.mrb[212].mxu0 %v8302_v42  ;;  %v1005_v42 = vadd.f32 %v1004_v4, %v6604_v56  ;;  %v8310_v4 = vld [vmem:[#allocation23_spill] sm:$0xff] }
 0x208   :  { %2795 = vmatprep.mubr.bf16.mxu0 %v8307_v43  ;;  %v1009_v43 = vadd.f32 %v1008_v16, %v6604_v56  ;;  %v8312_v8 = vpack.c.bf16 %v8310_v4, %v8311_v28  ;;  %v7206_v16 = vsel %vm1297_vm7, %v1007_v11, %v1553_v37 }
 0x209   :  { %v1550_v7 = vmul.f32 0.2, %v1005_v42  ;;  %vm1294_vm4 = vcmp.gt.f32.partialorder %v1005_v42, 0.0  ;;  %8314 = vst [vmem:[#allocation23_spill] sm:$0xff] %v7206_v16  ;;  %v8325_v16 = vld [vmem:[#allocation31_spill] sm:$0xff] }
 0x20a   :  { %v1554_v50 = vmul.f32 0.2, %v1009_v43  ;;  %vm1298_vm5 = vcmp.gt.f32.partialorder %v1009_v43, 0.0 }
 0x20b   :  { %v7197_v54 = vsel %vm1294_vm4, %v1005_v42, %v1550_v7  ;;  %v1014_v42 = vpop.f32.mrb[97].mxu1 }
 0x20c   :  { %8308 = vst [vmem:[#allocation18_spill] sm:$0xff] %v7197_v54  ;;  %v7204_v53 = vsel %vm1298_vm5, %v1009_v43, %v1554_v50  ;;  %v1015_v28 = vadd.f32 %v1014_v42, %v6604_v56  ;;  %v1016_v7 = vpop.f32.mrb[98].mxu1  ;;  %v1557_v43 = vmul.f32 0.2, %v1013_v3  ;;  %v8321_v42 = vld [vmem:[#allocation29_spill] sm:$0xff]  ;;  %v8326_v54 = vld [vmem:[#allocation30_spill] sm:$0xff] }
 0x20d   :  { %8313 = vst [vmem:[#allocation20_spill] sm:$0xff] %v7204_v53  ;;  %v1017_v11 = vadd.f32 %v1016_v7, %v6595_v27  ;;  %v1018_v37 = vpop.f32.mrb[99].mxu1  ;;  %v8323_v49 = vpack.c.bf16 %v8321_v42, %v8322_v39  ;;  %v8327_v53 = vpack.c.bf16 %v8325_v16, %v8326_v54 }
 0x20e   :  { %vm1302_vm9 = vcmp.gt.f32.partialorder %v1015_v28, 0.0  ;;  %v1558_v44 = vmul.f32 0.2, %v1015_v28  ;;  %v1022_v7 = vpop.f32.mrb[100].mxu1 }
 0x20f   :  { %2796 = vmatmul.mubr.bf16.gmra.mrb[216].mxu0 %v8312_v8  ;;  %vm1305_vm10 = vcmp.gt.f32.partialorder %v1017_v11, 0.0  ;;  %v1561_v14 = vmul.f32 0.2, %v1017_v11  ;;  %v7221_v8 = vsel %vm1301_vm8, %v1013_v3, %v1557_v43  ;;  %v1024_v3 = vpop.f32.mrb[101].mxu1 }
 0x210   :  { %2805 = vmatprep.mubr.bf16.mxu0 %v8317_v26  ;;  %v1019_v26 = vadd.f32 %v1018_v37, %v6604_v56  ;;  %v7219_v4 = vsel %vm1302_vm9, %v1015_v28, %v1558_v44  ;;  %8319 = vst [vmem:[#allocation27_spill] sm:$0xff] %v7221_v8  ;;  %v1023_v28 = vadd.f32 %v1022_v7, %v6595_v27  ;;  %v8332_v37 = vld [vmem:[#allocation24_spill] sm:$0xff] }
 0x211   :  { %8318 = vst [vmem:[#allocation22_spill] sm:$0xff] %v7219_v4  ;;  %v7223_v46 = vsel %vm1305_vm10, %v1017_v11, %v1561_v14  ;;  %v5427_v11 = vld [vmem:[#allocation4 + $0x50] sm:$0xff]   ;;  %v1025_v39 = vadd.f32 %v1024_v3, %v6604_v56  ;;  %v8336_v4 = vld [vmem:[#allocation32_spill] sm:$0xff] }
 0x212   :  { %vm1306_vm11 = vcmp.gt.f32.partialorder %v1019_v26, 0.0  ;;  %v1562_v50 = vmul.f32 0.2, %v1019_v26  ;;  %8320 = vst [vmem:[#allocation26_spill] sm:$0xff] %v7223_v46  ;;  %v1565_v44 = vmul.f32 0.2, %v1023_v28  ;;  %3773 = vmatpush1.bf16.msra.mxu1 %v5427_v11 }
 0x213   :  { %vm1309_vm12 = vcmp.gt.f32.partialorder %v1023_v28, 0.0  ;;  %vm1310_vm0 = vcmp.gt.f32.partialorder %v1025_v39, 0.0  ;;  %3774 = vmatprep.subr.bf16.mxu1 %v8257_v25  ;;  %v8335_v46 = vld [vmem:[#allocation33_spill] sm:$0xff] }
 0x214   :  { %v7228_v38 = vsel %vm1306_vm11, %v1019_v26, %v1562_v50  ;;  %v1566_v50 = vmul.f32 0.2, %v1025_v39  ;;  %v7244_v7 = vsel %vm1309_vm12, %v1023_v28, %v1565_v44 }
 0x215   :  { %8324 = vst [vmem:[#allocation29_spill] sm:$0xff] %v7228_v38  ;;  %8329 = vst [vmem:[#allocation31_spill] sm:$0xff] %v7244_v7  ;;  %v8337_v38 = vpack.c.bf16 %v8335_v46, %v8336_v4 }
 0x216   :  { %v7242_v42 = vsel %vm1310_vm0, %v1025_v39, %v1566_v50 }
 0x217   :  { %2806 = vmatmul.mubr.bf16.gmra.mrb[220].mxu0 %v8323_v49  ;;  %v1026_v49 = vpop.f32.mrb[102].mxu1  ;;  %8328 = vst [vmem:[#allocation28_spill] sm:$0xff] %v7242_v42  ;;  %v8342_v42 = vld [vmem:[#allocation36_spill] sm:$0xff] }
 0x218   :  { %2848 = vmatprep.mubr.bf16.mxu0 %v8327_v53  ;;  %v1027_v26 = vadd.f32 %v1026_v49, %v6595_v27  ;;  %v1028_v14 = vpop.f32.mrb[103].mxu1  ;;  %v8331_v49 = vld [vmem:[#allocation25_spill] sm:$0xff] }
 0x219   :  { %v1029_v53 = vadd.f32 %v1028_v14, %v6604_v56  ;;  %v8333_v11 = vpack.c.bf16 %v8331_v49, %v8332_v37  ;;  %v1032_v43 = vpop.f32.mrb[104].mxu1  ;;  %v8339_v14 = vld [vmem:[#allocation34_spill] sm:$0xff] }
 0x21a   :  { %vm1313_vm13 = vcmp.gt.f32.partialorder %v1027_v26, 0.0  ;;  %v1569_v54 = vmul.f32 0.2, %v1027_v26  ;;  %v1033_v39 = vadd.f32 %v1032_v43, %v6595_v27  ;;  %v1034_v28 = vpop.f32.mrb[105].mxu1 }
 0x21b   :  { %vm1314_vm14 = vcmp.gt.f32.partialorder %v1029_v53, 0.0  ;;  %v1570_v16 = vmul.f32 0.2, %v1029_v53  ;;  %v1036_v37 = vpop.f32.mrb[106].mxu1 }
 0x21c   :  { %v7246_v3 = vsel %vm1313_vm13, %v1027_v26, %v1569_v54  ;;  %v1035_v26 = vadd.f32 %v1034_v28, %v6604_v56  ;;  %v1573_v50 = vmul.f32 0.2, %v1033_v39  ;;  %v1038_v54 = vpop.f32.mrb[107].mxu1  ;;  %vm1317_vm15 = vcmp.gt.f32.partialorder %v1033_v39, 0.0  ;;  %v8338_v28 = vld [vmem:[#allocation35_spill] sm:$0xff] }
 0x21d   :  { %8330 = vst [vmem:[#allocation30_spill] sm:$0xff] %v7246_v3  ;;  %v7251_v8 = vsel %vm1314_vm14, %v1029_v53, %v1570_v16  ;;  %v1037_v53 = vadd.f32 %v1036_v37, %v6595_v27  ;;  %v1039_v49 = vadd.f32 %v1038_v54, %v6604_v56  ;;  %v8340_v44 = vpack.c.bf16 %v8338_v28, %v8339_v14  ;;  %v1042_v37 = vpop.f32.mrb[108].mxu1  ;;  %v8341_v3 = vld [vmem:[#allocation37_spill] sm:$0xff] }
 0x21e   :  { %8334 = vst [vmem:[#allocation25_spill] sm:$0xff] %v7251_v8  ;;  %vm1318_vm1 = vcmp.gt.f32.partialorder %v1035_v26, 0.0  ;;  %v1574_v16 = vmul.f32 0.2, %v1035_v26  ;;  %v7266_v43 = vsel %vm1317_vm15, %v1033_v39, %v1573_v50  ;;  %v8343_v8 = vpack.c.bf16 %v8341_v3, %v8342_v42  ;;  %v1044_v39 = vpop.f32.mrb[109].mxu1 }
 0x21f   :  { %2849 = vmatmul.mubr.bf16.vlgmr.msra.gmra.mrb[96].mxu0 %v8333_v11  ;;  %vm1321_vm2 = vcmp.gt.f32.partialorder %v1037_v53, 0.0  ;;  %vm1322_vm3 = vcmp.gt.f32.partialorder %v1039_v49, 0.0  ;;  %v1578_v4 = vmul.f32 0.2, %v1039_v49  ;;  %v1045_v14 = vadd.f32 %v1044_v39, %v6604_v56 }
 0x220   :  { %2858 = vmatprep.mubr.bf16.mxu0 %v8337_v38  ;;  %v1577_v38 = vmul.f32 0.2, %v1037_v53  ;;  %v7264_v46 = vsel %vm1318_vm1, %v1035_v26, %v1574_v16  ;;  %v1043_v26 = vadd.f32 %v1042_v37, %v6595_v27  ;;  %v8345_v50 = vpack.c.bf16 %v6929_v22, %v6925_v9 }
 0x221   :  { %v7273_v7 = vsel %vm1322_vm3, %v1039_v49, %v1578_v4  ;;  %vm1326_vm5 = vcmp.gt.f32.partialorder %v1045_v14, 0.0  ;;  %v1582_v4 = vmul.f32 0.2, %v1045_v14 }
 0x222   :  { %v7268_v11 = vsel %vm1321_vm2, %v1037_v53, %v1577_v38  ;;  %v5428_v53 = vld [vmem:[#allocation4 + $0x58] sm:$0xff]   ;;  %v1581_v16 = vmul.f32 0.2, %v1043_v26  ;;  %vm1325_vm4 = vcmp.gt.f32.partialorder %v1043_v26, 0.0 }
 0x223   :  { %3775 = vmatpush1.bf16.msra.mxu1 %v5428_v53  ;;  %v7287_v28 = vsel %vm1326_vm5, %v1045_v14, %v1582_v4  ;;  %v8344_v53 = vpack.c.bf16 %v6908_v13, %v6898_v31 }
 0x224   :  { %3776 = vmatprep.subr.bf16.mxu1 %v8257_v25  ;;  %v7289_v37 = vsel %vm1325_vm4, %v1043_v26, %v1581_v16  ;;  %v8347_v16 = vpack.c.bf16 %v6966_v51, %v6964_v20 }
 0x227   :  { %2859 = vmatmul.mubr.bf16.gmra.mrb[100].mxu0 %v8340_v44  ;;  %v1046_v44 = vpop.f32.mrb[110].mxu1 }
 0x228   :  { %2868 = vmatprep.mubr.bf16.mxu0 %v8343_v8  ;;  %v1047_v49 = vadd.f32 %v1046_v44, %v6595_v27  ;;  %v1048_v38 = vpop.f32.mrb[111].mxu1 }
 0x229   :  { %v1049_v8 = vadd.f32 %v1048_v38, %v6604_v56  ;;  %v1052_v44 = vpop.f32.mrb[112].mxu1 }
 0x22a   :  { %vm1329_vm6 = vcmp.gt.f32.partialorder %v1047_v49, 0.0  ;;  %v1585_v42 = vmul.f32 0.2, %v1047_v49  ;;  %v1053_v14 = vadd.f32 %v1052_v44, %v6595_v27  ;;  %v1054_v26 = vpop.f32.mrb[113].mxu1 }
 0x22b   :  { %vm1330_vm7 = vcmp.gt.f32.partialorder %v1049_v8, 0.0  ;;  %v1586_v3 = vmul.f32 0.2, %v1049_v8  ;;  %v1056_v13 = vpop.f32.mrb[114].mxu1 }
 0x22c   :  { %v7291_v39 = vsel %vm1329_vm6, %v1047_v49, %v1585_v42  ;;  %v1055_v49 = vadd.f32 %v1054_v26, %v6604_v56  ;;  %v1589_v31 = vmul.f32 0.2, %v1053_v14  ;;  %v1057_v4 = vadd.f32 %v1056_v13, %v6595_v27 }
 0x22d   :  { %v7296_v54 = vsel %vm1330_vm7, %v1049_v8, %v1586_v3  ;;  %v1058_v8 = vpop.f32.mrb[115].mxu1  ;;  %vm1333_vm8 = vcmp.gt.f32.partialorder %v1053_v14, 0.0  ;;  %v8346_v26 = vpack.c.bf16 %v6953_v5, %v6949_v60 }
 0x22e   :  { %vm1334_vm9 = vcmp.gt.f32.partialorder %v1055_v49, 0.0  ;;  %v1590_v42 = vmul.f32 0.2, %v1055_v49  ;;  %v1059_v3 = vadd.f32 %v1058_v8, %v6604_v56  ;;  %vm1337_vm10 = vcmp.gt.f32.partialorder %v1057_v4, 0.0  ;;  %v1062_v13 = vpop.f32.mrb[116].mxu1 }
 0x22f   :  { %2869 = vmatmul.mubr.bf16.gmra.mrb[104].mxu0 %v8344_v53  ;;  %v1593_v9 = vmul.f32 0.2, %v1057_v4  ;;  %v7311_v53 = vsel %vm1333_vm8, %v1053_v14, %v1589_v31  ;;  %v1064_v14 = vpop.f32.mrb[117].mxu1  ;;  %v8349_v31 = vpack.c.bf16 %v6995_v32, %v6993_v47 }
 0x230   :  { %2878 = vmatprep.mubr.bf16.mxu0 %v8345_v50  ;;  %vm1338_vm11 = vcmp.gt.f32.partialorder %v1059_v3, 0.0  ;;  %v1594_v22 = vmul.f32 0.2, %v1059_v3  ;;  %v7309_v50 = vsel %vm1334_vm9, %v1055_v49, %v1590_v42  ;;  %v1063_v49 = vadd.f32 %v1062_v13, %v6595_v27  ;;  %v1066_v5 = vpop.f32.mrb[118].mxu1 }
 0x231   :  { %v7313_v44 = vsel %vm1337_vm10, %v1057_v4, %v1593_v9  ;;  %v5429_v4 = vld [vmem:[#allocation4 + $0x60] sm:$0xff]   ;;  %v1065_v60 = vadd.f32 %v1064_v14, %v6604_v56  ;;  %v1068_v9 = vpop.f32.mrb[119].mxu1 }
 0x232   :  { %v7318_v38 = vsel %vm1338_vm11, %v1059_v3, %v1594_v22  ;;  %v1597_v42 = vmul.f32 0.2, %v1063_v49  ;;  %v1067_v3 = vadd.f32 %v1066_v5, %v6595_v27  ;;  %3777 = vmatpush1.bf16.msra.mxu1 %v5429_v4  ;;  %vm1341_vm12 = vcmp.gt.f32.partialorder %v1063_v49, 0.0  ;;  %v1072_v5 = vpop.f32.mrb[120].mxu1 }
 0x233   :  { %vm1342_vm0 = vcmp.gt.f32.partialorder %v1065_v60, 0.0  ;;  %v1598_v22 = vmul.f32 0.2, %v1065_v60  ;;  %v1069_v20 = vadd.f32 %v1068_v9, %v6604_v56  ;;  %3778 = vmatprep.subr.bf16.mxu1 %v8257_v25  ;;  %v8348_v4 = vpack.c.bf16 %v6987_v15, %v6981_v0 }
 0x234   :  { %vm1345_vm13 = vcmp.gt.f32.partialorder %v1067_v3, 0.0  ;;  %v1601_v51 = vmul.f32 0.2, %v1067_v3  ;;  %v7334_v13 = vsel %vm1341_vm12, %v1063_v49, %v1597_v42  ;;  %v1074_v49 = vpop.f32.mrb[121].mxu1  ;;  %v8351_v42 = vpack.c.bf16 %v7026_v63, %v7017_v18 }
 0x235   :  { %vm1346_vm14 = vcmp.gt.f32.partialorder %v1069_v20, 0.0  ;;  %v1076_v0 = vpop.f32.mrb[122].mxu1 }
 0x236   :  { %v7336_v14 = vsel %vm1345_vm13, %v1067_v3, %v1601_v51  ;;  %v1075_v3 = vadd.f32 %v1074_v49, %v6604_v56  ;;  %v8350_v49 = vpack.c.bf16 %v7008_v33, %v7006_v55 }
 0x237   :  { %2879 = vmatmul.mubr.bf16.gmra.mrb[108].mxu0 %v8346_v26  ;;  %v7332_v26 = vsel %vm1342_vm0, %v1065_v60, %v1598_v22  ;;  %v1073_v60 = vadd.f32 %v1072_v5, %v6595_v27  ;;  %v1077_v22 = vadd.f32 %v1076_v0, %v6595_v27 }
 0x238   :  { %2888 = vmatprep.mubr.bf16.mxu0 %v8347_v16  ;;  %v1602_v16 = vmul.f32 0.2, %v1069_v20  ;;  %vm1350_vm1 = vcmp.gt.f32.partialorder %v1075_v3, 0.0  ;;  %v1606_v51 = vmul.f32 0.2, %v1075_v3 }
 0x239   :  { %v1605_v15 = vmul.f32 0.2, %v1073_v60  ;;  %vm1349_vm15 = vcmp.gt.f32.partialorder %v1073_v60, 0.0  ;;  %vm1353_vm2 = vcmp.gt.f32.partialorder %v1077_v22, 0.0  ;;  %v1609_v47 = vmul.f32 0.2, %v1077_v22 }
 0x23a   :  { %v7341_v8 = vsel %vm1346_vm14, %v1069_v20, %v1602_v16  ;;  %v1078_v20 = vpop.f32.mrb[123].mxu1 }
 0x23b   :  { %v1079_v16 = vadd.f32 %v1078_v20, %v6604_v56  ;;  %v7358_v5 = vsel %vm1353_vm2, %v1077_v22, %v1609_v47  ;;  %v1082_v0 = vpop.f32.mrb[124].mxu1  ;;  %v5430_v22 = vld [vmem:[#allocation4 + $0x68] sm:$0xff]  }
 0x23c   :  { %3779 = vmatpush1.bf16.msra.mxu1 %v5430_v22  ;;  %v8352_v22 = vpack.c.bf16 %v7032_v52, %v7030_v10 }
 0x23d   :  { %vm1354_vm3 = vcmp.gt.f32.partialorder %v1079_v16, 0.0  ;;  %v1610_v32 = vmul.f32 0.2, %v1079_v16  ;;  %3780 = vmatprep.subr.bf16.mxu1 %v8257_v25 }
 0x23f   :  { %2889 = vmatmul.mubr.bf16.gmra.mrb[112].mxu0 %v8348_v4  ;;  %v7356_v4 = vsel %vm1349_vm15, %v1073_v60, %v1605_v15  ;;  %v7363_v9 = vsel %vm1354_vm3, %v1079_v16, %v1610_v32  ;;  %v1084_v60 = vpop.f32.mrb[125].mxu1  ;;  %v8353_v15 = vpack.c.bf16 %v7043_v1, %v7040_v23 }
 0x240   :  { %2898 = vmatprep.mubr.bf16.mxu0 %v8349_v31  ;;  %v7354_v31 = vsel %vm1350_vm1, %v1075_v3, %v1606_v51  ;;  %v1083_v3 = vadd.f32 %v1082_v0, %v6595_v27  ;;  %v1085_v55 = vadd.f32 %v1084_v60, %v6604_v56  ;;  %v1086_v33 = vpop.f32.mrb[126].mxu1 }
 0x241   :  { %v1087_v16 = vadd.f32 %v1086_v33, %v6595_v27  ;;  %v1088_v47 = vpop.f32.mrb[127].mxu1 }
 0x242   :  { %v1613_v51 = vmul.f32 0.2, %v1083_v3  ;;  %vm1357_vm4 = vcmp.gt.f32.partialorder %v1083_v3, 0.0  ;;  %vm1358_vm5 = vcmp.gt.f32.partialorder %v1085_v55, 0.0  ;;  %v1614_v32 = vmul.f32 0.2, %v1085_v55 }
 0x243   :  { %v1089_v63 = vadd.f32 %v1088_v47, %v6604_v56  ;;  %vm1361_vm6 = vcmp.gt.f32.partialorder %v1087_v16, 0.0  ;;  %v1617_v18 = vmul.f32 0.2, %v1087_v16 }
 0x244   :  { %v7379_v0 = vsel %vm1357_vm4, %v1083_v3, %v1613_v51  ;;  %v8355_v51 = vpack.c.bf16 %v7064_v24, %v7062_v45 }
 0x245   :  { %vm1362_vm7 = vcmp.gt.f32.partialorder %v1089_v63, 0.0  ;;  %v7381_v60 = vsel %vm1361_vm6, %v1087_v16, %v1617_v18 }
 0x247   :  { %2899 = vmatmul.mubr.bf16.gmra.mrb[116].mxu0 %v8350_v49  ;;  %v7377_v49 = vsel %vm1358_vm5, %v1085_v55, %v1614_v32 }
 0x248   :  { %2908 = vmatprep.mubr.bf16.mxu0 %v8351_v42  ;;  %v1618_v42 = vmul.f32 0.2, %v1089_v63 }
 0x24a   :  { %v7386_v20 = vsel %vm1362_vm7, %v1089_v63, %v1618_v42 }
 0x24b   :  { %v1092_v33 = vpop.f32.mrb[128].mxu1 }
 0x24c   :  { %v1093_v55 = vadd.f32 %v1092_v33, %v6595_v27  ;;  %v1094_v3 = vpop.f32.mrb[129].mxu1 }
 0x24d   :  { %v1095_v16 = vadd.f32 %v1094_v3, %v6604_v56  ;;  %v1096_v10 = vpop.f32.mrb[130].mxu1  ;;  %v8354_v3 = vpack.c.bf16 %v7050_v41, %v7048_v58 }
 0x24e   :  { %v1621_v52 = vmul.f32 0.2, %v1093_v55  ;;  %v1097_v32 = vadd.f32 %v1096_v10, %v6595_v27  ;;  %v1098_v63 = vpop.f32.mrb[131].mxu1  ;;  %vm1365_vm8 = vcmp.gt.f32.partialorder %v1093_v55, 0.0 }
 0x24f   :  { %2909 = vmatmul.mubr.bf16.gmra.mrb[120].mxu0 %v8352_v22  ;;  %vm1366_vm9 = vcmp.gt.f32.partialorder %v1095_v16, 0.0  ;;  %v1622_v18 = vmul.f32 0.2, %v1095_v16  ;;  %v1099_v42 = vadd.f32 %v1098_v63, %v6604_v56 }
 0x250   :  { %2918 = vmatprep.mubr.bf16.mxu0 %v8353_v15  ;;  %vm1369_vm10 = vcmp.gt.f32.partialorder %v1097_v32, 0.0  ;;  %v1625_v23 = vmul.f32 0.2, %v1097_v32  ;;  %v7401_v22 = vsel %vm1365_vm8, %v1093_v55, %v1621_v52  ;;  %v8373_v52 = vld [vmem:[#allocation10_spill] sm:$0xff] }
 0x251   :  { %vm1370_vm11 = vcmp.gt.f32.partialorder %v1099_v42, 0.0  ;;  %v1626_v1 = vmul.f32 0.2, %v1099_v42  ;;  %v7399_v15 = vsel %vm1366_vm9, %v1095_v16, %v1622_v18 }
 0x252   :  { %v7403_v33 = vsel %vm1369_vm10, %v1097_v32, %v1625_v23  ;;  %v5431_v32 = vld [vmem:[#allocation4 + $0x70] sm:$0xff]  }
 0x253   :  { %v7408_v47 = vsel %vm1370_vm11, %v1099_v42, %v1626_v1  ;;  %3781 = vmatpush1.bf16.msra.mxu1 %v5431_v32  ;;  %v8356_v32 = vpack.c.bf16 %v7073_v62, %v7070_v61 }
 0x254   :  { %3782 = vmatprep.subr.bf16.mxu1 %v8257_v25 }
 0x255   :  { %v1102_v10 = vpop.f32.mrb[132].mxu1 }
 0x256   :  { %v1103_v16 = vadd.f32 %v1102_v10, %v6595_v27  ;;  %v1104_v55 = vpop.f32.mrb[133].mxu1 }
 0x257   :  { %2919 = vmatmul.mubr.bf16.gmra.mrb[124].mxu0 %v8354_v3  ;;  %v1105_v58 = vadd.f32 %v1104_v55, %v6604_v56  ;;  %v1106_v41 = vpop.f32.mrb[134].mxu1 }
 0x258   :  { %2928 = vmatprep.mubr.bf16.mxu0 %v8355_v51  ;;  %v1629_v18 = vmul.f32 0.2, %v1103_v16  ;;  %v1107_v42 = vadd.f32 %v1106_v41, %v6595_v27  ;;  %v1108_v23 = vpop.f32.mrb[135].mxu1  ;;  %vm1373_vm12 = vcmp.gt.f32.partialorder %v1103_v16, 0.0 }
 0x259   :  { %vm1374_vm0 = vcmp.gt.f32.partialorder %v1105_v58, 0.0  ;;  %v1630_v1 = vmul.f32 0.2, %v1105_v58  ;;  %v1109_v45 = vadd.f32 %v1108_v23, %v6604_v56  ;;  %v8357_v23 = vpack.c.bf16 %v7081_v12, %v7079_v21 }
 0x25a   :  { %vm1377_vm13 = vcmp.gt.f32.partialorder %v1107_v42, 0.0  ;;  %v1633_v24 = vmul.f32 0.2, %v1107_v42  ;;  %v7424_v10 = vsel %vm1373_vm12, %v1103_v16, %v1629_v18  ;;  %v8359_v18 = vpack.c.bf16 %v7105_v2, %v7101_v6 }
 0x25b   :  { %vm1378_vm14 = vcmp.gt.f32.partialorder %v1109_v45, 0.0  ;;  %v1634_v51 = vmul.f32 0.2, %v1109_v45  ;;  %v7422_v3 = vsel %vm1374_vm0, %v1105_v58, %v1630_v1 }
 0x25c   :  { %v7426_v55 = vsel %vm1377_vm13, %v1107_v42, %v1633_v24 }
 0x25d   :  { %v7431_v63 = vsel %vm1378_vm14, %v1109_v45, %v1634_v51 }
 0x25f   :  { %2929 = vmatmul.mubr.bf16.gmra.mrb[128].mxu0 %v8356_v32  ;;  %v1112_v41 = vpop.f32.mrb[136].mxu1 }
 0x260   :  { %2938 = vmatprep.mubr.bf16.mxu0 %v8357_v23  ;;  %v1113_v58 = vadd.f32 %v1112_v41, %v6595_v27  ;;  %v1114_v16 = vpop.f32.mrb[137].mxu1 }
 0x261   :  { %v1115_v42 = vadd.f32 %v1114_v16, %v6604_v56  ;;  %v1116_v61 = vpop.f32.mrb[138].mxu1  ;;  %v8358_v16 = vpack.c.bf16 %v7093_v35, %v7091_v34 }
 0x262   :  { %v1637_v62 = vmul.f32 0.2, %v1113_v58  ;;  %v1117_v1 = vadd.f32 %v1116_v61, %v6595_v27  ;;  %v1118_v45 = vpop.f32.mrb[139].mxu1  ;;  %vm1381_vm15 = vcmp.gt.f32.partialorder %v1113_v58, 0.0 }
 0x263   :  { %vm1382_vm1 = vcmp.gt.f32.partialorder %v1115_v42, 0.0  ;;  %v1638_v24 = vmul.f32 0.2, %v1115_v42  ;;  %v1119_v51 = vadd.f32 %v1118_v45, %v6604_v56 }
 0x264   :  { %vm1385_vm2 = vcmp.gt.f32.partialorder %v1117_v1, 0.0  ;;  %v1641_v21 = vmul.f32 0.2, %v1117_v1  ;;  %v7446_v41 = vsel %vm1381_vm15, %v1113_v58, %v1637_v62  ;;  %v8361_v62 = vpack.c.bf16 %v7119_v30, %v7117_v17 }
 0x265   :  { %vm1386_vm3 = vcmp.gt.f32.partialorder %v1119_v51, 0.0  ;;  %v1642_v12 = vmul.f32 0.2, %v1119_v51  ;;  %v7444_v32 = vsel %vm1382_vm1, %v1115_v42, %v1638_v24 }
 0x266   :  { %v7448_v23 = vsel %vm1385_vm2, %v1117_v1, %v1641_v21  ;;  %v5432_v1 = vld [vmem:[#allocation4 + $0x78] sm:$0xff]  }
 0x267   :  { %2939 = vmatmul.mubr.bf16.gmra.mrb[132].mxu0 %v8358_v16  ;;  %v1122_v61 = vpop.f32.mrb[140].mxu1  ;;  %v7453_v25 = vsel %vm1386_vm3, %v1119_v51, %v1642_v12  ;;  %3783 = vmatpush1.bf16.msra.mxu1 %v5432_v1 }
 0x268   :  { %2948 = vmatprep.mubr.bf16.mxu0 %v8359_v18  ;;  %v1123_v42 = vadd.f32 %v1122_v61, %v6595_v27  ;;  %v1124_v58 = vpop.f32.mrb[141].mxu1 }
 0x269   :  { %v1125_v34 = vadd.f32 %v1124_v58, %v6604_v56  ;;  %v1126_v35 = vpop.f32.mrb[142].mxu1 }
 0x26a   :  { %v1645_v24 = vmul.f32 0.2, %v1123_v42  ;;  %v1127_v51 = vadd.f32 %v1126_v35, %v6595_v27  ;;  %v1128_v21 = vpop.f32.mrb[143].mxu1  ;;  %vm1389_vm4 = vcmp.gt.f32.partialorder %v1123_v42, 0.0  ;;  %v8360_v35 = vpack.c.bf16 %v7111_v29, %v7109_v59 }
 0x26b   :  { %vm1390_vm5 = vcmp.gt.f32.partialorder %v1125_v34, 0.0  ;;  %v1646_v12 = vmul.f32 0.2, %v1125_v34  ;;  %v1129_v6 = vadd.f32 %v1128_v21, %v6604_v56 }
 0x26c   :  { %vm1393_vm6 = vcmp.gt.f32.partialorder %v1127_v51, 0.0  ;;  %v1649_v2 = vmul.f32 0.2, %v1127_v51  ;;  %v7468_v61 = vsel %vm1389_vm4, %v1123_v42, %v1645_v24  ;;  %v8366_v24 = vpack.c.bf16 %v7139_v19, %v7136_v40 }
 0x26d   :  { %vm1394_vm7 = vcmp.gt.f32.partialorder %v1129_v6, 0.0  ;;  %v1650_v18 = vmul.f32 0.2, %v1129_v6  ;;  %v7466_v16 = vsel %vm1390_vm5, %v1125_v34, %v1646_v12 }
 0x26e   :  { %v7470_v58 = vsel %vm1393_vm6, %v1127_v51, %v1649_v2 }
 0x26f   :  { %2949 = vmatmul.mubr.bf16.gmra.mrb[136].mxu0 %v8360_v35  ;;  %v1132_v1 = vpop.f32.mrb[144].mxu1  ;;  %v7475_v45 = vsel %vm1394_vm7, %v1129_v6, %v1650_v18 }
 0x270   :  { %2958 = vmatprep.mubr.bf16.mxu0 %v8361_v62  ;;  %v1133_v34 = vadd.f32 %v1132_v1, %v6595_v27  ;;  %v1134_v42 = vpop.f32.mrb[145].mxu1 }
 0x271   :  { %v1135_v51 = vadd.f32 %v1134_v42, %v6604_v56  ;;  %v1136_v59 = vpop.f32.mrb[146].mxu1  ;;  %v8365_v42 = vpack.c.bf16 %v7128_v36, %v7126_v48 }
 0x272   :  { %v1653_v29 = vmul.f32 0.2, %v1133_v34  ;;  %v1137_v12 = vadd.f32 %v1136_v59, %v6595_v27  ;;  %v1138_v6 = vpop.f32.mrb[147].mxu1  ;;  %vm1397_vm8 = vcmp.gt.f32.partialorder %v1133_v34, 0.0 }
 0x273   :  { %vm1398_vm9 = vcmp.gt.f32.partialorder %v1135_v51, 0.0  ;;  %v1654_v2 = vmul.f32 0.2, %v1135_v51  ;;  %v1139_v18 = vadd.f32 %v1138_v6, %v6604_v56 }
 0x274   :  { %vm1401_vm10 = vcmp.gt.f32.partialorder %v1137_v12, 0.0  ;;  %v1657_v30 = vmul.f32 0.2, %v1137_v12  ;;  %v7490_v35 = vsel %vm1397_vm8, %v1133_v34, %v1653_v29  ;;  %v8372_v34 = vld [vmem:[#allocation12_spill] sm:$0xff] }
 0x275   :  { %vm1402_vm11 = vcmp.gt.f32.partialorder %v1139_v18, 0.0  ;;  %v1658_v17 = vmul.f32 0.2, %v1139_v18  ;;  %v7488_v62 = vsel %vm1398_vm9, %v1135_v51, %v1654_v2  ;;  %8363 = vst [vmem:[#allocation33_spill] sm:$0xff] %v7490_v35  ;;  %v8374_v35 = vpack.c.bf16 %v8372_v34, %v8373_v52 }
 0x276   :  { %8362 = vst [vmem:[#allocation24_spill] sm:$0xff] %v7488_v62  ;;  %v7492_v1 = vsel %vm1401_vm10, %v1137_v12, %v1657_v30 }
 0x277   :  { %8364 = vst [vmem:[#allocation32_spill] sm:$0xff] %v7492_v1  ;;  %2959 = vmatmul.mubr.bf16.gmra.mrb[140].mxu0 %v8365_v42  ;;  %v1142_v59 = vpop.f32.mrb[148].mxu1  ;;  %v7497_v21 = vsel %vm1402_vm11, %v1139_v18, %v1658_v17 }
 0x278   :  { %2968 = vmatprep.mubr.bf16.mxu0 %v8366_v24  ;;  %v1144_v51 = vpop.f32.mrb[149].mxu1  ;;  %v1143_v12 = vadd.f32 %v1142_v59, %v6595_v27  ;;  %v8369_v59 = vld [vmem:[#allocation11_spill] sm:$0xff] }
 0x279   :  { %v1146_v29 = vpop.f32.mrb[150].mxu1  ;;  %v1145_v36 = vadd.f32 %v1144_v51, %v6604_v56  ;;  %v8370_v51 = vpack.c.bf16 %v7147_v57, %v8369_v59 }
 0x27a   :  { %v1147_v48 = vadd.f32 %v1146_v29, %v6595_v27  ;;  %v1148_v2 = vpop.f32.mrb[151].mxu1  ;;  %vm1405_vm12 = vcmp.gt.f32.partialorder %v1143_v12, 0.0  ;;  %v1661_v30 = vmul.f32 0.2, %v1143_v12 }
 0x27b   :  { %v1149_v18 = vadd.f32 %v1148_v2, %v6604_v56  ;;  %vm1406_vm0 = vcmp.gt.f32.partialorder %v1145_v36, 0.0  ;;  %v1662_v17 = vmul.f32 0.2, %v1145_v36 }
 0x27c   :  { %vm1409_vm13 = vcmp.gt.f32.partialorder %v1147_v48, 0.0  ;;  %v1665_v40 = vmul.f32 0.2, %v1147_v48  ;;  %v7512_v42 = vsel %vm1405_vm12, %v1143_v12, %v1661_v30 }
 0x27d   :  { %vm1410_vm14 = vcmp.gt.f32.partialorder %v1149_v18, 0.0  ;;  %v1666_v19 = vmul.f32 0.2, %v1149_v18  ;;  %v7510_v24 = vsel %vm1406_vm0, %v1145_v36, %v1662_v17  ;;  %8368 = vst [vmem:[#allocation34_spill] sm:$0xff] %v7512_v42  ;;  %v8379_v42 = vld [vmem:[#allocation16_spill] sm:$0xff] }
 0x27e   :  { %8367 = vst [vmem:[#allocation35_spill] sm:$0xff] %v7510_v24  ;;  %v7519_v2 = vsel %vm1409_vm13, %v1147_v48, %v1665_v40 }
 0x27f   :  { %2969 = vmatmul.mubr.bf16.gmra.mrb[144].mxu0 %v8370_v51  ;;  %v1152_v29 = vpop.f32.mrb[152].mxu1  ;;  %v7517_v6 = vsel %vm1410_vm14, %v1149_v18, %v1666_v19  ;;  %8371 = vst [vmem:[#allocation37_spill] sm:$0xff] %v7519_v2  ;;  %v8380_v2 = vld [vmem:[#allocation14_spill] sm:$0xff] }
 0x280   :  { %2978 = vmatprep.mubr.bf16.mxu0 %v8374_v35  ;;  %v1153_v1 = vadd.f32 %v1152_v29, %v6595_v27  ;;  %v1154_v62 = vpop.f32.mrb[153].mxu1  ;;  %v8377_v29 = vld [vmem:[#allocation13_spill] sm:$0xff]  ;;  %v8381_v24 = vpack.c.bf16 %v8379_v42, %v8380_v2 }
 0x281   :  { %v1155_v57 = vadd.f32 %v1154_v62, %v6604_v56  ;;  %v1156_v30 = vpop.f32.mrb[154].mxu1  ;;  %v8376_v62 = vld [vmem:[#allocation15_spill] sm:$0xff] }
 0x282   :  { %v1669_v18 = vmul.f32 0.2, %v1153_v1  ;;  %v1157_v48 = vadd.f32 %v1156_v30, %v6595_v27  ;;  %v1158_v17 = vpop.f32.mrb[155].mxu1  ;;  %vm1413_vm15 = vcmp.gt.f32.partialorder %v1153_v1, 0.0  ;;  %v8378_v36 = vpack.c.bf16 %v8376_v62, %v8377_v29 }
 0x283   :  { %vm1414_vm1 = vcmp.gt.f32.partialorder %v1155_v57, 0.0  ;;  %v1670_v52 = vmul.f32 0.2, %v1155_v57  ;;  %v1159_v35 = vadd.f32 %v1158_v17, %v6604_v56  ;;  %v8384_v17 = vld [vmem:[#allocation17_spill] sm:$0xff] }
 0x284   :  { %vm1417_vm2 = vcmp.gt.f32.partialorder %v1157_v48, 0.0  ;;  %v1673_v34 = vmul.f32 0.2, %v1157_v48  ;;  %v7534_v59 = vsel %vm1413_vm15, %v1153_v1, %v1669_v18 }
 0x285   :  { %vm1418_vm3 = vcmp.gt.f32.partialorder %v1159_v35, 0.0  ;;  %v1674_v40 = vmul.f32 0.2, %v1159_v35  ;;  %v7532_v19 = vsel %vm1414_vm1, %v1155_v57, %v1670_v52  ;;  %8375 = vst [vmem:[#allocation36_spill] sm:$0xff] %v7534_v59 }
 0x286   :  { %v7536_v51 = vsel %vm1417_vm2, %v1157_v48, %v1673_v34 }
 0x287   :  { %2979 = vmatmul.mubr.bf16.gmra.mrb[148].mxu0 %v8378_v36  ;;  %v1162_v30 = vpop.f32.mrb[156].mxu1  ;;  %v7541_v12 = vsel %vm1418_vm3, %v1159_v35, %v1674_v40 }
 0x288   :  { %2988 = vmatprep.mubr.bf16.mxu0 %v8381_v24  ;;  %v1163_v57 = vadd.f32 %v1162_v30, %v6595_v27  ;;  %v1164_v1 = vpop.f32.mrb[157].mxu1 }
 0x289   :  { %v1165_v48 = vadd.f32 %v1164_v1, %v6604_v56  ;;  %v1166_v52 = vpop.f32.mrb[158].mxu1  ;;  %v8383_v1 = vld [vmem:[#allocation19_spill] sm:$0xff] }
 0x28a   :  { %v1677_v36 = vmul.f32 0.2, %v1163_v57  ;;  %v1167_v35 = vadd.f32 %v1166_v52, %v6595_v27  ;;  %v1168_v34 = vpop.f32.mrb[159].mxu1  ;;  %vm1421_vm4 = vcmp.gt.f32.partialorder %v1163_v57, 0.0  ;;  %v8385_v18 = vpack.c.bf16 %v8383_v1, %v8384_v17  ;;  %v8398_v1 = vld [vmem:[#allocation25_spill] sm:$0xff]  ;;  %v8399_v52 = vld [vmem:[#allocation28_spill] sm:$0xff] }
 0x28b   :  { %vm1422_vm5 = vcmp.gt.f32.partialorder %v1165_v48, 0.0  ;;  %v1678_v40 = vmul.f32 0.2, %v1165_v48  ;;  %v1169_v62 = vadd.f32 %v1168_v34, %v6604_v56  ;;  %v8386_v56 = vld [vmem:[#allocation20_spill] sm:$0xff]  ;;  %v8387_v34 = vld [vmem:[#allocation18_spill] sm:$0xff] }
 0x28c   :  { %vm1425_vm6 = vcmp.gt.f32.partialorder %v1167_v35, 0.0  ;;  %v1681_v24 = vmul.f32 0.2, %v1167_v35  ;;  %v7556_v29 = vsel %vm1421_vm4, %v1163_v57, %v1677_v36  ;;  %v8388_v59 = vpack.c.bf16 %v8386_v56, %v8387_v34  ;;  %v8389_v57 = vld [vmem:[#allocation23_spill] sm:$0xff]  ;;  %v8390_v36 = vld [vmem:[#allocation21_spill] sm:$0xff] }
 0x28d   :  { %vm1426_vm7 = vcmp.gt.f32.partialorder %v1169_v62, 0.0  ;;  %v1682_v42 = vmul.f32 0.2, %v1169_v62  ;;  %v7554_v2 = vsel %vm1422_vm5, %v1165_v48, %v1678_v40  ;;  %8382 = vst [vmem:[#allocation11_spill] sm:$0xff] %v7556_v29  ;;  %v8392_v40 = vld [vmem:[#allocation29_spill] sm:$0xff]  ;;  %v8400_v29 = vpack.c.bf16 %v8398_v1, %v8399_v52  ;;  %v8402_v56 = vld [vmem:[#allocation31_spill] sm:$0xff] }
 0x28e   :  { %v7558_v30 = vsel %vm1425_vm6, %v1167_v35, %v1681_v24  ;;  %v8391_v35 = vpack.c.bf16 %v8389_v57, %v8390_v36  ;;  %v8393_v24 = vld [vmem:[#allocation22_spill] sm:$0xff]  ;;  %v8404_v57 = vpack.c.bf16 %v7273_v7, %v7264_v46  ;;  %v8405_v36 = vpack.c.bf16 %v7268_v11, %v7266_v43 }
 0x28f   :  { %2989 = vmatmul.mubr.bf16.gmra.mrb[152].mxu0 %v8385_v18  ;;  %v7563_v27 = vsel %vm1426_vm7, %v1169_v62, %v1682_v42  ;;  %v8394_v17 = vpack.c.bf16 %v8392_v40, %v8393_v24  ;;  %v8395_v18 = vld [vmem:[#allocation26_spill] sm:$0xff]  ;;  %v8396_v62 = vld [vmem:[#allocation27_spill] sm:$0xff]  ;;  %v8407_v52 = vpack.c.bf16 %v7291_v39, %v7289_v37  ;;  %v8409_v7 = vpack.c.bf16 %v7313_v44, %v7311_v53 }
 0x290   :  { %2998 = vmatprep.mubr.bf16.mxu0 %v8388_v59  ;;  %v2066_v48 = vpack.c.bf16 %v7563_v27, %v7554_v2  ;;  %v8397_v42 = vpack.c.bf16 %v8395_v18, %v8396_v62  ;;  %v8401_v59 = vld [vmem:[#allocation30_spill] sm:$0xff]  ;;  %v8410_v46 = vpack.c.bf16 %v7341_v8, %v7332_v26  ;;  %v8411_v43 = vpack.c.bf16 %v7336_v14, %v7334_v13  ;;  %v2131_v26 = vld [vmem:[%s8175_s4] sm:$0x3] }
 0x291   :  { %v8403_v34 = vpack.c.bf16 %v8401_v59, %v8402_v56  ;;  %v8412_v11 = vpack.c.bf16 %v7363_v9, %v7354_v31  ;;  %v8415_v37 = vpack.c.bf16 %v7381_v60, %v7379_v0  ;;  %v8416_v39 = vpack.c.bf16 %v7408_v47, %v7399_v15  ;;  %v8422_v14 = vld [vmem:[#allocation9_spill] sm:$0xff] }
 0x292   :  { %v8418_v53 = vpack.c.bf16 %v7431_v63, %v7422_v3  ;;  %v8419_v44 = vpack.c.bf16 %v7426_v55, %v7424_v10  ;;  %v8420_v8 = vpack.c.bf16 %v7453_v25, %v7444_v32  ;;  %v8421_v13 = vpack.c.bf16 %v7448_v23, %v7446_v41  ;;  %v8427_v41 = vld [vmem:[#allocation24_spill] sm:$0xff] }
 0x293   :  { %v8423_v9 = vsub.s32 0, %v8422_v14  ;;  %v8426_v25 = vpack.c.bf16 %v7470_v58, %v7468_v61  ;;  %v8428_v23 = vpack.c.bf16 %v7497_v21, %v8427_v41  ;;  %v5434_v21 = vld [vmem:[#allocation6 + $0x8] sm:$0xff]  }
 0x295   :  { %v7646_v31 = vrot.slane %v2131_v26, %v8423_v9 }
 0x297   :  { %2999 = vmatmul.mubr.bf16.gmra.mrb[156].mxu0 %v8391_v35  ;;  %v8406_v35 = vpack.c.bf16 %v7296_v54, %v7287_v28  ;;  %v8413_v54 = vpack.c.bf16 %v7358_v5, %v7356_v4  ;;  %v8414_v28 = vpack.c.bf16 %v7386_v20, %v7377_v49  ;;  %v8424_v4 = vpack.c.bf16 %v7475_v45, %v7466_v16 }
 0x298   :  { %3008 = vmatprep.mubr.bf16.mxu0 %v8394_v17  ;;  %v8425_v5 = vsub.s32 1, %v8422_v14 }
 0x29a   :  { %v7653_v20 = vrot.slane %v2131_v26, %v8425_v5 }
 0x29f   :  { %3009 = vmatmul.mubr.bf16.gmra.mrb[160].mxu0 %v8397_v42 }
 0x2a0   :  { %3018 = vmatprep.mubr.bf16.mxu0 %v8400_v29  ;;  %v8408_v29 = vpack.c.bf16 %v7318_v38, %v7309_v50  ;;  %v5433_v38 = vld [vmem:[#allocation6] sm:$0xff]   ;;  %v8417_v50 = vpack.c.bf16 %v7403_v33, %v7401_v22 }
 0x2a1   :  { %4929 = vmatprep.subr.bf16.mxu1 %v5433_v38 }
 0x2a7   :  { %3019 = vmatmul.mubr.bf16.gmra.mrb[164].mxu0 %v8403_v34 }
 0x2a8   :  { %3028 = vmatprep.mubr.bf16.mxu0 %v8404_v57 }
 0x2af   :  { %3029 = vmatmul.mubr.bf16.gmra.mrb[168].mxu0 %v8405_v36 }
 0x2b0   :  { %3038 = vmatprep.mubr.bf16.mxu0 %v8406_v35 }
 0x2b7   :  { %3039 = vmatmul.mubr.bf16.gmra.mrb[172].mxu0 %v8407_v52  ;;  %v8429_v52 = vld [vmem:[#allocation32_spill] sm:$0xff] }
 0x2b8   :  { %3048 = vmatprep.mubr.bf16.mxu0 %v8408_v29  ;;  %v8430_v29 = vld [vmem:[#allocation33_spill] sm:$0xff] }
 0x2bf   :  { %3049 = vmatmul.mubr.bf16.gmra.mrb[176].mxu0 %v8409_v7  ;;  %v8431_v7 = vpack.c.bf16 %v8429_v52, %v8430_v29 }
 0x2c0   :  { %3058 = vmatprep.mubr.bf16.mxu0 %v8410_v46 }
 0x2c7   :  { %3059 = vmatmul.mubr.bf16.gmra.mrb[180].mxu0 %v8411_v43  ;;  %v8432_v43 = vld [vmem:[#allocation35_spill] sm:$0xff] }
 0x2c8   :  { %3068 = vmatprep.mubr.bf16.mxu0 %v8412_v11  ;;  %v8433_v11 = vpack.c.bf16 %v7517_v6, %v8432_v43  ;;  %v8440_v43 = vld [vmem:[#allocation11_spill] sm:$0xff] }
 0x2cf   :  { %3069 = vmatmul.mubr.bf16.gmra.mrb[184].mxu0 %v8413_v54 }
 0x2d0   :  { %3078 = vmatprep.mubr.bf16.mxu0 %v8414_v28 }
 0x2d7   :  { %3079 = vmatmul.mubr.bf16.gmra.mrb[188].mxu0 %v8415_v37 }
 0x2d8   :  { %3088 = vmatprep.mubr.bf16.mxu0 %v8416_v39 }
 0x2df   :  { %3089 = vmatmul.mubr.bf16.gmra.mrb[192].mxu0 %v8417_v50 }
 0x2e0   :  { %3098 = vmatprep.mubr.bf16.mxu0 %v8418_v53 }
 0x2e7   :  { %3099 = vmatmul.mubr.bf16.gmra.mrb[196].mxu0 %v8419_v44 }
 0x2e8   :  { %3108 = vmatprep.mubr.bf16.mxu0 %v8420_v8 }
 0x2ef   :  { %3109 = vmatmul.mubr.bf16.gmra.mrb[200].mxu0 %v8421_v13 }
 0x2f0   :  { %3118 = vmatprep.mubr.bf16.mxu0 %v8424_v4 }
 0x2f2   :  { %v2850_v49 = vpop.f32.mrb[96].mxu0 }
 0x2f3   :  { %v5013_v0 = vadd.f32 %v2850_v49, %v7646_v31  ;;  %v2852_v60 = vpop.f32.mrb[97].mxu0 }
 0x2f4   :  { %v5014_v47 = vadd.f32 %v2852_v60, %v7653_v20  ;;  %v2854_v15 = vpop.f32.mrb[98].mxu0  ;;  %v8435_v60 = vld [vmem:[#allocation34_spill] sm:$0xff] }
 0x2f5   :  { %v3297_v22 = vmul.f32 0.2, %v5013_v0  ;;  %v5015_v33 = vadd.f32 %v2854_v15, %v7646_v31  ;;  %v2856_v63 = vpop.f32.mrb[99].mxu0  ;;  %vm3169_vm8 = vcmp.gt.f32.partialorder %v5013_v0, 0.0 }
 0x2f6   :  { %v3298_v3 = vmul.f32 0.2, %v5014_v47  ;;  %v5016_v10 = vadd.f32 %v2856_v63, %v7653_v20  ;;  %vm3170_vm9 = vcmp.gt.f32.partialorder %v5014_v47, 0.0 }
 0x2f7   :  { %vm3171_vm10 = vcmp.gt.f32.partialorder %v5015_v33, 0.0  ;;  %v3299_v55 = vmul.f32 0.2, %v5015_v33  ;;  %3119 = vmatmul.mubr.bf16.gmra.mrb[204].mxu0 %v8426_v25  ;;  %v3425_v45 = vsel %vm3169_vm8, %v5013_v0, %v3297_v22  ;;  %v8434_v0 = vld [vmem:[#allocation37_spill] sm:$0xff]  ;;  %v8437_v22 = vpack.c.bf16 %v7541_v12, %v7532_v19 }
 0x2f8   :  { %vm3172_vm11 = vcmp.gt.f32.partialorder %v5016_v10, 0.0  ;;  %v3300_v32 = vmul.f32 0.2, %v5016_v10  ;;  %3128 = vmatprep.mubr.bf16.mxu0 %v8428_v23  ;;  %v3426_v17 = vsel %vm3170_vm9, %v5014_v47, %v3298_v3  ;;  %v8436_v47 = vpack.c.bf16 %v8434_v0, %v8435_v60 }
 0x2f9   :  { %v3427_v16 = vsel %vm3171_vm10, %v5015_v33, %v3299_v55 }
 0x2fa   :  { %v3553_v40 = vpack.c.bf16 %v3427_v16, %v3425_v45  ;;  %v2860_v24 = vpop.f32.mrb[100].mxu0  ;;  %v3428_v18 = vsel %vm3172_vm11, %v5016_v10, %v3300_v32 }
 0x2fb   :  { %v5017_v62 = vadd.f32 %v2860_v24, %v7646_v31  ;;  %v2862_v42 = vpop.f32.mrb[101].mxu0  ;;  %v3554_v1 = vpack.c.bf16 %v3428_v18, %v3426_v17 }
 0x2fc   :  { %v5018_v59 = vadd.f32 %v2862_v42, %v7653_v20  ;;  %v2864_v61 = vpop.f32.mrb[102].mxu0 }
 0x2fd   :  { %v3301_v58 = vmul.f32 0.2, %v5017_v62  ;;  %v5019_v56 = vadd.f32 %v2864_v61, %v7646_v31  ;;  %v2866_v34 = vpop.f32.mrb[103].mxu0  ;;  %3784 = vmatprep.mubr.bf16.mxu1 %v3554_v1  ;;  %vm3173_vm12 = vcmp.gt.f32.partialorder %v5017_v62, 0.0 }
 0x2fe   :  { %v3302_v57 = vmul.f32 0.2, %v5018_v59  ;;  %v5020_v36 = vadd.f32 %v2866_v34, %v7653_v20  ;;  %3785 = vmatmul.mubr.bf16.vlgmr.msra.gmra.mrb[160].mxu1 %v3553_v40  ;;  %vm3174_vm0 = vcmp.gt.f32.partialorder %v5018_v59, 0.0 }
 0x2ff   :  { %vm3175_vm13 = vcmp.gt.f32.partialorder %v5019_v56, 0.0  ;;  %v3303_v35 = vmul.f32 0.2, %v5019_v56  ;;  %3129 = vmatmul.mubr.bf16.gmra.mrb[208].mxu0 %v8431_v7  ;;  %4930 = vmatpush3.bf16.msra.mxu1 %v5433_v38  ;;  %v3429_v54 = vsel %vm3173_vm12, %v5017_v62, %v3301_v58  ;;  %v8438_v62 = vld [vmem:[#allocation36_spill] sm:$0xff] }
 0x300   :  { %vm3176_vm14 = vcmp.gt.f32.partialorder %v5020_v36, 0.0  ;;  %v3304_v46 = vmul.f32 0.2, %v5020_v36  ;;  %3138 = vmatprep.mubr.bf16.mxu0 %v8433_v11  ;;  %4931 = vmatprep.subr.bf16.mxu1 %v5434_v21  ;;  %v3430_v39 = vsel %vm3174_vm0, %v5018_v59, %v3302_v57  ;;  %v8439_v42 = vpack.c.bf16 %v7536_v51, %v8438_v62 }
 0x301   :  { %v3431_v28 = vsel %vm3175_vm13, %v5019_v56, %v3303_v35  ;;  %v8441_v11 = vpack.c.bf16 %v7558_v30, %v8440_v43 }
 0x302   :  { %v2870_v37 = vpop.f32.mrb[104].mxu0  ;;  %v3432_v50 = vsel %vm3176_vm14, %v5020_v36, %v3304_v46  ;;  %v3555_v53 = vpack.c.bf16 %v3431_v28, %v3429_v54 }
 0x303   :  { %v5021_v44 = vadd.f32 %v2870_v37, %v7646_v31  ;;  %v2872_v8 = vpop.f32.mrb[105].mxu0  ;;  %v3556_v26 = vpack.c.bf16 %v3432_v50, %v3430_v39  ;;  %4932 = vmatpush3.bf16.msra.mxu1 %v5434_v21 }
 0x304   :  { %v5022_v38 = vadd.f32 %v2872_v8, %v7653_v20  ;;  %v2874_v13 = vpop.f32.mrb[106].mxu0 }
 0x305   :  { %v3305_v14 = vmul.f32 0.2, %v5021_v44  ;;  %v5023_v9 = vadd.f32 %v2874_v13, %v7646_v31  ;;  %v2876_v6 = vpop.f32.mrb[107].mxu0  ;;  %3792 = vmatprep.mubr.bf16.mxu1 %v3556_v26  ;;  %vm3177_vm15 = vcmp.gt.f32.partialorder %v5021_v44, 0.0 }
 0x306   :  { %v3306_v4 = vmul.f32 0.2, %v5022_v38  ;;  %v5024_v5 = vadd.f32 %v2876_v6, %v7653_v20  ;;  %3793 = vmatmul.mubr.bf16.gmra.mrb[164].mxu1 %v3555_v53  ;;  %vm3178_vm1 = vcmp.gt.f32.partialorder %v5022_v38, 0.0 }
 0x307   :  { %vm3179_vm2 = vcmp.gt.f32.partialorder %v5023_v9, 0.0  ;;  %v3307_v49 = vmul.f32 0.2, %v5023_v9  ;;  %3139 = vmatmul.mubr.bf16.gmra.mrb[212].mxu0 %v8436_v47  ;;  %v3433_v33 = vsel %vm3177_vm15, %v5021_v44, %v3305_v14 }
 0x308   :  { %vm3180_vm3 = vcmp.gt.f32.partialorder %v5024_v5, 0.0  ;;  %v3308_v15 = vmul.f32 0.2, %v5024_v5  ;;  %3148 = vmatprep.mubr.bf16.mxu0 %v8437_v22  ;;  %v3434_v10 = vsel %vm3178_vm1, %v5022_v38, %v3306_v4  ;;  %v5435_v4 = vld [vmem:[#allocation6 + $0x10] sm:$0xff]  }
 0x309   :  { %v3435_v63 = vsel %vm3179_vm2, %v5023_v9, %v3307_v49  ;;  %4933 = vmatprep.subr.bf16.mxu1 %v5435_v4 }
 0x30a   :  { %v2880_v3 = vpop.f32.mrb[108].mxu0  ;;  %v3436_v55 = vsel %vm3180_vm3, %v5024_v5, %v3308_v15  ;;  %v3557_v25 = vpack.c.bf16 %v3435_v63, %v3433_v33  ;;  %4934 = vmatpush3.bf16.msra.mxu1 %v5435_v4 }
 0x30b   :  { %v5025_v32 = vadd.f32 %v2880_v3, %v7646_v31  ;;  %v2882_v41 = vpop.f32.mrb[109].mxu0  ;;  %v3558_v23 = vpack.c.bf16 %v3436_v55, %v3434_v10 }
 0x30c   :  { %v5026_v45 = vadd.f32 %v2882_v41, %v7653_v20  ;;  %v2884_v16 = vpop.f32.mrb[110].mxu0 }
 0x30d   :  { %v3309_v40 = vmul.f32 0.2, %v5025_v32  ;;  %v5027_v24 = vadd.f32 %v2884_v16, %v7646_v31  ;;  %v2886_v17 = vpop.f32.mrb[111].mxu0  ;;  %3800 = vmatprep.mubr.bf16.mxu1 %v3558_v23  ;;  %vm3181_vm4 = vcmp.gt.f32.partialorder %v5025_v32, 0.0 }
 0x30e   :  { %v3310_v12 = vmul.f32 0.2, %v5026_v45  ;;  %v5028_v19 = vadd.f32 %v2886_v17, %v7653_v20  ;;  %3801 = vmatmul.mubr.bf16.gmra.mrb[168].mxu1 %v3557_v25  ;;  %vm3182_vm5 = vcmp.gt.f32.partialorder %v5026_v45, 0.0 }
 0x30f   :  { %vm3183_vm6 = vcmp.gt.f32.partialorder %v5027_v24, 0.0  ;;  %v3311_v18 = vmul.f32 0.2, %v5027_v24  ;;  %3149 = vmatmul.mubr.bf16.gmra.mrb[216].mxu0 %v8439_v42  ;;  %v3437_v59 = vsel %vm3181_vm4, %v5025_v32, %v3309_v40 }
 0x310   :  { %vm3184_vm7 = vcmp.gt.f32.partialorder %v5028_v19, 0.0  ;;  %v3312_v1 = vmul.f32 0.2, %v5028_v19  ;;  %3158 = vmatprep.mubr.bf16.mxu0 %v2066_v48  ;;  %v3438_v56 = vsel %vm3182_vm5, %v5026_v45, %v3310_v12 }
 0x311   :  { %v3439_v61 = vsel %vm3183_vm6, %v5027_v24, %v3311_v18 }
 0x312   :  { %v2890_v58 = vpop.f32.mrb[112].mxu0  ;;  %v3440_v34 = vsel %vm3184_vm7, %v5028_v19, %v3312_v1  ;;  %v3559_v21 = vpack.c.bf16 %v3439_v61, %v3437_v59 }
 0x313   :  { %v5029_v57 = vadd.f32 %v2890_v58, %v7646_v31  ;;  %v2892_v36 = vpop.f32.mrb[113].mxu0  ;;  %v3560_v35 = vpack.c.bf16 %v3440_v34, %v3438_v56 }
 0x314   :  { %v5030_v52 = vadd.f32 %v2892_v36, %v7653_v20  ;;  %v2894_v51 = vpop.f32.mrb[114].mxu0 }
 0x315   :  { %v3313_v29 = vmul.f32 0.2, %v5029_v57  ;;  %v5031_v7 = vadd.f32 %v2894_v51, %v7646_v31  ;;  %v2896_v46 = vpop.f32.mrb[115].mxu0  ;;  %3808 = vmatprep.mubr.bf16.mxu1 %v3560_v35  ;;  %vm3185_vm8 = vcmp.gt.f32.partialorder %v5029_v57, 0.0 }
 0x316   :  { %v3314_v2 = vmul.f32 0.2, %v5030_v52  ;;  %v5032_v27 = vadd.f32 %v2896_v46, %v7653_v20  ;;  %3809 = vmatmul.mubr.bf16.gmra.mrb[172].mxu1 %v3559_v21  ;;  %vm3186_vm9 = vcmp.gt.f32.partialorder %v5030_v52, 0.0 }
 0x317   :  { %vm3187_vm10 = vcmp.gt.f32.partialorder %v5031_v7, 0.0  ;;  %v3315_v48 = vmul.f32 0.2, %v5031_v7  ;;  %3159 = vmatmul.mubr.bf16.gmra.mrb[220].mxu0 %v8441_v11  ;;  %v3441_v28 = vsel %vm3185_vm8, %v5029_v57, %v3313_v29 }
 0x318   :  { %vm3188_vm11 = vcmp.gt.f32.partialorder %v5032_v27, 0.0  ;;  %v3316_v54 = vmul.f32 0.2, %v5032_v27  ;;  %v3442_v50 = vsel %vm3186_vm9, %v5030_v52, %v3314_v2 }
 0x319   :  { %v3443_v37 = vsel %vm3187_vm10, %v5031_v7, %v3315_v48 }
 0x31a   :  { %v2900_v39 = vpop.f32.mrb[116].mxu0  ;;  %v3444_v53 = vsel %vm3188_vm11, %v5032_v27, %v3316_v54  ;;  %v3561_v44 = vpack.c.bf16 %v3443_v37, %v3441_v28 }
 0x31b   :  { %v5033_v8 = vadd.f32 %v2900_v39, %v7646_v31  ;;  %v2902_v26 = vpop.f32.mrb[117].mxu0  ;;  %v3562_v38 = vpack.c.bf16 %v3444_v53, %v3442_v50 }
 0x31c   :  { %v5034_v13 = vadd.f32 %v2902_v26, %v7653_v20  ;;  %v2904_v14 = vpop.f32.mrb[118].mxu0 }
 0x31d   :  { %v3317_v9 = vmul.f32 0.2, %v5033_v8  ;;  %v5035_v6 = vadd.f32 %v2904_v14, %v7646_v31  ;;  %v2906_v30 = vpop.f32.mrb[119].mxu0  ;;  %3816 = vmatprep.mubr.bf16.mxu1 %v3562_v38  ;;  %vm3189_vm12 = vcmp.gt.f32.partialorder %v5033_v8, 0.0 }
 0x31e   :  { %v3318_v5 = vmul.f32 0.2, %v5034_v13  ;;  %v5036_v49 = vadd.f32 %v2906_v30, %v7653_v20  ;;  %3817 = vmatmul.mubr.bf16.gmra.mrb[176].mxu1 %v3561_v44  ;;  %vm3190_vm0 = vcmp.gt.f32.partialorder %v5034_v13, 0.0 }
 0x31f   :  { %vm3191_vm13 = vcmp.gt.f32.partialorder %v5035_v6, 0.0  ;;  %v3319_v0 = vmul.f32 0.2, %v5035_v6  ;;  %v3445_v47 = vsel %vm3189_vm12, %v5033_v8, %v3317_v9 }
 0x320   :  { %vm3192_vm14 = vcmp.gt.f32.partialorder %v5036_v49, 0.0  ;;  %v3320_v60 = vmul.f32 0.2, %v5036_v49  ;;  %v3446_v33 = vsel %vm3190_vm0, %v5034_v13, %v3318_v5 }
 0x321   :  { %v3447_v15 = vsel %vm3191_vm13, %v5035_v6, %v3319_v0 }
 0x322   :  { %v2910_v22 = vpop.f32.mrb[120].mxu0  ;;  %v3448_v63 = vsel %vm3192_vm14, %v5036_v49, %v3320_v60  ;;  %v3563_v3 = vpack.c.bf16 %v3447_v15, %v3445_v47 }
 0x323   :  { %v5037_v10 = vadd.f32 %v2910_v22, %v7646_v31  ;;  %v2912_v55 = vpop.f32.mrb[121].mxu0  ;;  %v3564_v25 = vpack.c.bf16 %v3448_v63, %v3446_v33 }
 0x324   :  { %v5038_v32 = vadd.f32 %v2912_v55, %v7653_v20  ;;  %v2914_v41 = vpop.f32.mrb[122].mxu0 }
 0x325   :  { %v3321_v23 = vmul.f32 0.2, %v5037_v10  ;;  %v5039_v45 = vadd.f32 %v2914_v41, %v7646_v31  ;;  %v2916_v16 = vpop.f32.mrb[123].mxu0  ;;  %3824 = vmatprep.mubr.bf16.mxu1 %v3564_v25  ;;  %vm3193_vm15 = vcmp.gt.f32.partialorder %v5037_v10, 0.0 }
 0x326   :  { %v3322_v40 = vmul.f32 0.2, %v5038_v32  ;;  %v5040_v24 = vadd.f32 %v2916_v16, %v7653_v20  ;;  %3825 = vmatmul.mubr.bf16.gmra.mrb[180].mxu1 %v3563_v3  ;;  %vm3194_vm1 = vcmp.gt.f32.partialorder %v5038_v32, 0.0 }
 0x327   :  { %vm3195_vm2 = vcmp.gt.f32.partialorder %v5039_v45, 0.0  ;;  %v3323_v17 = vmul.f32 0.2, %v5039_v45  ;;  %v3449_v19 = vsel %vm3193_vm15, %v5037_v10, %v3321_v23 }
 0x328   :  { %vm3196_vm3 = vcmp.gt.f32.partialorder %v5040_v24, 0.0  ;;  %v3324_v12 = vmul.f32 0.2, %v5040_v24  ;;  %v3450_v42 = vsel %vm3194_vm1, %v5038_v32, %v3322_v40  ;;  %v5436_v32 = vld [vmem:[#allocation6 + $0x18] sm:$0xff]  }
 0x329   :  { %v3451_v18 = vsel %vm3195_vm2, %v5039_v45, %v3323_v17  ;;  %4935 = vmatprep.subr.bf16.mxu1 %v5436_v32 }
 0x32a   :  { %v2920_v62 = vpop.f32.mrb[124].mxu0  ;;  %v3452_v1 = vsel %vm3196_vm3, %v5040_v24, %v3324_v12  ;;  %v3565_v59 = vpack.c.bf16 %v3451_v18, %v3449_v19  ;;  %4936 = vmatpush3.bf16.msra.mxu1 %v5436_v32 }
 0x32b   :  { %v5041_v61 = vadd.f32 %v2920_v62, %v7646_v31  ;;  %v2922_v58 = vpop.f32.mrb[125].mxu0  ;;  %v3566_v56 = vpack.c.bf16 %v3452_v1, %v3450_v42 }
 0x32c   :  { %v5042_v34 = vadd.f32 %v2922_v58, %v7653_v20  ;;  %v2924_v21 = vpop.f32.mrb[126].mxu0 }
 0x32d   :  { %v3325_v57 = vmul.f32 0.2, %v5041_v61  ;;  %v5043_v36 = vadd.f32 %v2924_v21, %v7646_v31  ;;  %v2926_v35 = vpop.f32.mrb[127].mxu0  ;;  %3832 = vmatprep.mubr.bf16.mxu1 %v3566_v56  ;;  %vm3197_vm4 = vcmp.gt.f32.partialorder %v5041_v61, 0.0 }
 0x32e   :  { %v3326_v52 = vmul.f32 0.2, %v5042_v34  ;;  %v5044_v51 = vadd.f32 %v2926_v35, %v7653_v20  ;;  %3833 = vmatmul.mubr.bf16.gmra.mrb[184].mxu1 %v3565_v59  ;;  %vm3198_vm5 = vcmp.gt.f32.partialorder %v5042_v34, 0.0 }
 0x32f   :  { %vm3199_vm6 = vcmp.gt.f32.partialorder %v5043_v36, 0.0  ;;  %v3327_v29 = vmul.f32 0.2, %v5043_v36  ;;  %v3453_v46 = vsel %vm3197_vm4, %v5041_v61, %v3325_v57 }
 0x330   :  { %vm3200_vm7 = vcmp.gt.f32.partialorder %v5044_v51, 0.0  ;;  %v3328_v7 = vmul.f32 0.2, %v5044_v51  ;;  %v3454_v48 = vsel %vm3198_vm5, %v5042_v34, %v3326_v52 }
 0x331   :  { %v3455_v2 = vsel %vm3199_vm6, %v5043_v36, %v3327_v29 }
 0x332   :  { %v2930_v27 = vpop.f32.mrb[128].mxu0  ;;  %v3456_v43 = vsel %vm3200_vm7, %v5044_v51, %v3328_v7  ;;  %v3567_v11 = vpack.c.bf16 %v3455_v2, %v3453_v46 }
 0x333   :  { %v5045_v54 = vadd.f32 %v2930_v27, %v7646_v31  ;;  %v2932_v28 = vpop.f32.mrb[129].mxu0  ;;  %v3568_v37 = vpack.c.bf16 %v3456_v43, %v3454_v48 }
 0x334   :  { %v5046_v39 = vadd.f32 %v2932_v28, %v7653_v20  ;;  %v2934_v50 = vpop.f32.mrb[130].mxu0 }
 0x335   :  { %v3329_v53 = vmul.f32 0.2, %v5045_v54  ;;  %v5047_v44 = vadd.f32 %v2934_v50, %v7646_v31  ;;  %v2936_v8 = vpop.f32.mrb[131].mxu0  ;;  %3840 = vmatprep.mubr.bf16.mxu1 %v3568_v37  ;;  %vm3201_vm8 = vcmp.gt.f32.partialorder %v5045_v54, 0.0 }
 0x336   :  { %v3330_v26 = vmul.f32 0.2, %v5046_v39  ;;  %v5048_v38 = vadd.f32 %v2936_v8, %v7653_v20  ;;  %3841 = vmatmul.mubr.bf16.gmra.mrb[188].mxu1 %v3567_v11  ;;  %vm3202_vm9 = vcmp.gt.f32.partialorder %v5046_v39, 0.0 }
 0x337   :  { %vm3203_vm10 = vcmp.gt.f32.partialorder %v5047_v44, 0.0  ;;  %v3331_v13 = vmul.f32 0.2, %v5047_v44  ;;  %v3457_v9 = vsel %vm3201_vm8, %v5045_v54, %v3329_v53 }
 0x338   :  { %vm3204_vm11 = vcmp.gt.f32.partialorder %v5048_v38, 0.0  ;;  %v3332_v14 = vmul.f32 0.2, %v5048_v38  ;;  %v3458_v4 = vsel %vm3202_vm9, %v5046_v39, %v3330_v26 }
 0x339   :  { %v3459_v6 = vsel %vm3203_vm10, %v5047_v44, %v3331_v13 }
 0x33a   :  { %v2940_v30 = vpop.f32.mrb[132].mxu0  ;;  %v3460_v5 = vsel %vm3204_vm11, %v5048_v38, %v3332_v14  ;;  %v3569_v49 = vpack.c.bf16 %v3459_v6, %v3457_v9 }
 0x33b   :  { %v5049_v0 = vadd.f32 %v2940_v30, %v7646_v31  ;;  %v2942_v60 = vpop.f32.mrb[133].mxu0  ;;  %v3570_v47 = vpack.c.bf16 %v3460_v5, %v3458_v4 }
 0x33c   :  { %v5050_v15 = vadd.f32 %v2942_v60, %v7653_v20  ;;  %v2944_v22 = vpop.f32.mrb[134].mxu0 }
 0x33d   :  { %v3333_v33 = vmul.f32 0.2, %v5049_v0  ;;  %v5051_v63 = vadd.f32 %v2944_v22, %v7646_v31  ;;  %v2946_v3 = vpop.f32.mrb[135].mxu0  ;;  %3848 = vmatprep.mubr.bf16.mxu1 %v3570_v47  ;;  %vm3205_vm12 = vcmp.gt.f32.partialorder %v5049_v0, 0.0 }
 0x33e   :  { %v3334_v10 = vmul.f32 0.2, %v5050_v15  ;;  %v5052_v55 = vadd.f32 %v2946_v3, %v7653_v20  ;;  %3849 = vmatmul.mubr.bf16.gmra.mrb[192].mxu1 %v3569_v49  ;;  %vm3206_vm0 = vcmp.gt.f32.partialorder %v5050_v15, 0.0 }
 0x33f   :  { %vm3207_vm13 = vcmp.gt.f32.partialorder %v5051_v63, 0.0  ;;  %v3335_v25 = vmul.f32 0.2, %v5051_v63  ;;  %v3461_v23 = vsel %vm3205_vm12, %v5049_v0, %v3333_v33 }
 0x340   :  { %vm3208_vm14 = vcmp.gt.f32.partialorder %v5052_v55, 0.0  ;;  %v3336_v41 = vmul.f32 0.2, %v5052_v55  ;;  %v3462_v40 = vsel %vm3206_vm0, %v5050_v15, %v3334_v10 }
 0x341   :  { %v3463_v45 = vsel %vm3207_vm13, %v5051_v63, %v3335_v25 }
 0x342   :  { %v2950_v16 = vpop.f32.mrb[136].mxu0  ;;  %v3464_v24 = vsel %vm3208_vm14, %v5052_v55, %v3336_v41  ;;  %v3571_v17 = vpack.c.bf16 %v3463_v45, %v3461_v23 }
 0x343   :  { %v5053_v12 = vadd.f32 %v2950_v16, %v7646_v31  ;;  %v2952_v19 = vpop.f32.mrb[137].mxu0  ;;  %v3572_v18 = vpack.c.bf16 %v3464_v24, %v3462_v40 }
 0x344   :  { %v5054_v62 = vadd.f32 %v2952_v19, %v7653_v20  ;;  %v2954_v42 = vpop.f32.mrb[138].mxu0 }
 0x345   :  { %v3337_v1 = vmul.f32 0.2, %v5053_v12  ;;  %v5055_v59 = vadd.f32 %v2954_v42, %v7646_v31  ;;  %v2956_v61 = vpop.f32.mrb[139].mxu0  ;;  %3856 = vmatprep.mubr.bf16.mxu1 %v3572_v18  ;;  %vm3209_vm15 = vcmp.gt.f32.partialorder %v5053_v12, 0.0 }
 0x346   :  { %v3338_v58 = vmul.f32 0.2, %v5054_v62  ;;  %v5056_v56 = vadd.f32 %v2956_v61, %v7653_v20  ;;  %3857 = vmatmul.mubr.bf16.gmra.mrb[196].mxu1 %v3571_v17  ;;  %vm3210_vm1 = vcmp.gt.f32.partialorder %v5054_v62, 0.0 }
 0x347   :  { %vm3211_vm2 = vcmp.gt.f32.partialorder %v5055_v59, 0.0  ;;  %v3339_v34 = vmul.f32 0.2, %v5055_v59  ;;  %v3465_v57 = vsel %vm3209_vm15, %v5053_v12, %v3337_v1 }
 0x348   :  { %vm3212_vm3 = vcmp.gt.f32.partialorder %v5056_v56, 0.0  ;;  %v3340_v21 = vmul.f32 0.2, %v5056_v56  ;;  %v3466_v52 = vsel %vm3210_vm1, %v5054_v62, %v3338_v58  ;;  %v5437_v62 = vld [vmem:[#allocation6 + $0x20] sm:$0xff]  }
 0x349   :  { %v3467_v36 = vsel %vm3211_vm2, %v5055_v59, %v3339_v34  ;;  %4937 = vmatprep.subr.bf16.mxu1 %v5437_v62 }
 0x34a   :  { %v2960_v35 = vpop.f32.mrb[140].mxu0  ;;  %v3468_v51 = vsel %vm3212_vm3, %v5056_v56, %v3340_v21  ;;  %v3573_v29 = vpack.c.bf16 %v3467_v36, %v3465_v57  ;;  %4938 = vmatpush3.bf16.msra.mxu1 %v5437_v62 }
 0x34b   :  { %v5057_v7 = vadd.f32 %v2960_v35, %v7646_v31  ;;  %v2962_v46 = vpop.f32.mrb[141].mxu0  ;;  %v3574_v2 = vpack.c.bf16 %v3468_v51, %v3466_v52 }
 0x34c   :  { %v5058_v27 = vadd.f32 %v2962_v46, %v7653_v20  ;;  %v2964_v48 = vpop.f32.mrb[142].mxu0 }
 0x34d   :  { %v3341_v43 = vmul.f32 0.2, %v5057_v7  ;;  %v5059_v11 = vadd.f32 %v2964_v48, %v7646_v31  ;;  %v2966_v54 = vpop.f32.mrb[143].mxu0  ;;  %3864 = vmatprep.mubr.bf16.mxu1 %v3574_v2  ;;  %vm3213_vm4 = vcmp.gt.f32.partialorder %v5057_v7, 0.0 }
 0x34e   :  { %v3342_v28 = vmul.f32 0.2, %v5058_v27  ;;  %v5060_v37 = vadd.f32 %v2966_v54, %v7653_v20  ;;  %3865 = vmatmul.mubr.bf16.gmra.mrb[200].mxu1 %v3573_v29  ;;  %vm3214_vm5 = vcmp.gt.f32.partialorder %v5058_v27, 0.0 }
 0x34f   :  { %vm3215_vm6 = vcmp.gt.f32.partialorder %v5059_v11, 0.0  ;;  %v3343_v39 = vmul.f32 0.2, %v5059_v11  ;;  %v3469_v53 = vsel %vm3213_vm4, %v5057_v7, %v3341_v43 }
 0x350   :  { %vm3216_vm7 = vcmp.gt.f32.partialorder %v5060_v37, 0.0  ;;  %v3344_v50 = vmul.f32 0.2, %v5060_v37  ;;  %v3470_v26 = vsel %vm3214_vm5, %v5058_v27, %v3342_v28 }
 0x351   :  { %v3471_v44 = vsel %vm3215_vm6, %v5059_v11, %v3343_v39 }
 0x352   :  { %v2970_v8 = vpop.f32.mrb[144].mxu0  ;;  %v3472_v38 = vsel %vm3216_vm7, %v5060_v37, %v3344_v50  ;;  %v3575_v13 = vpack.c.bf16 %v3471_v44, %v3469_v53 }
 0x353   :  { %v5061_v14 = vadd.f32 %v2970_v8, %v7646_v31  ;;  %v2972_v9 = vpop.f32.mrb[145].mxu0  ;;  %v3576_v6 = vpack.c.bf16 %v3472_v38, %v3470_v26 }
 0x354   :  { %v5062_v30 = vadd.f32 %v2972_v9, %v7653_v20  ;;  %v2974_v4 = vpop.f32.mrb[146].mxu0 }
 0x355   :  { %v3345_v5 = vmul.f32 0.2, %v5061_v14  ;;  %v5063_v49 = vadd.f32 %v2974_v4, %v7646_v31  ;;  %v2976_v0 = vpop.f32.mrb[147].mxu0  ;;  %3872 = vmatprep.mubr.bf16.mxu1 %v3576_v6  ;;  %vm3217_vm8 = vcmp.gt.f32.partialorder %v5061_v14, 0.0 }
 0x356   :  { %v3346_v60 = vmul.f32 0.2, %v5062_v30  ;;  %v5064_v47 = vadd.f32 %v2976_v0, %v7653_v20  ;;  %3873 = vmatmul.mubr.bf16.gmra.mrb[204].mxu1 %v3575_v13  ;;  %vm3218_vm9 = vcmp.gt.f32.partialorder %v5062_v30, 0.0 }
 0x357   :  { %vm3219_vm10 = vcmp.gt.f32.partialorder %v5063_v49, 0.0  ;;  %v3347_v15 = vmul.f32 0.2, %v5063_v49  ;;  %v3473_v33 = vsel %vm3217_vm8, %v5061_v14, %v3345_v5 }
 0x358   :  { %vm3220_vm11 = vcmp.gt.f32.partialorder %v5064_v47, 0.0  ;;  %v3348_v22 = vmul.f32 0.2, %v5064_v47  ;;  %v3474_v10 = vsel %vm3218_vm9, %v5062_v30, %v3346_v60 }
 0x359   :  { %v3475_v63 = vsel %vm3219_vm10, %v5063_v49, %v3347_v15 }
 0x35a   :  { %v2980_v3 = vpop.f32.mrb[148].mxu0  ;;  %v3476_v55 = vsel %vm3220_vm11, %v5064_v47, %v3348_v22  ;;  %v3577_v25 = vpack.c.bf16 %v3475_v63, %v3473_v33 }
 0x35b   :  { %v5065_v32 = vadd.f32 %v2980_v3, %v7646_v31  ;;  %v2982_v41 = vpop.f32.mrb[149].mxu0  ;;  %v3578_v23 = vpack.c.bf16 %v3476_v55, %v3474_v10  ;;  %v5438_v55 = vld [vmem:[#allocation6 + $0x28] sm:$0xff]  }
 0x35c   :  { %v5066_v45 = vadd.f32 %v2982_v41, %v7653_v20  ;;  %v2984_v16 = vpop.f32.mrb[150].mxu0  ;;  %4939 = vmatprep.subr.bf16.mxu1 %v5438_v55 }
 0x35d   :  { %v3349_v40 = vmul.f32 0.2, %v5065_v32  ;;  %v5067_v24 = vadd.f32 %v2984_v16, %v7646_v31  ;;  %v2986_v17 = vpop.f32.mrb[151].mxu0  ;;  %3880 = vmatprep.mubr.bf16.mxu1 %v3578_v23  ;;  %vm3221_vm12 = vcmp.gt.f32.partialorder %v5065_v32, 0.0  ;;  %4940 = vmatpush3.bf16.msra.mxu1 %v5438_v55 }
 0x35e   :  { %v3350_v12 = vmul.f32 0.2, %v5066_v45  ;;  %v5068_v19 = vadd.f32 %v2986_v17, %v7653_v20  ;;  %3881 = vmatmul.mubr.bf16.gmra.mrb[208].mxu1 %v3577_v25  ;;  %vm3222_vm0 = vcmp.gt.f32.partialorder %v5066_v45, 0.0 }
 0x35f   :  { %vm3223_vm13 = vcmp.gt.f32.partialorder %v5067_v24, 0.0  ;;  %v3351_v18 = vmul.f32 0.2, %v5067_v24  ;;  %v3477_v1 = vsel %vm3221_vm12, %v5065_v32, %v3349_v40 }
 0x360   :  { %vm3224_vm14 = vcmp.gt.f32.partialorder %v5068_v19, 0.0  ;;  %v3352_v42 = vmul.f32 0.2, %v5068_v19  ;;  %v3478_v58 = vsel %vm3222_vm0, %v5066_v45, %v3350_v12 }
 0x361   :  { %v3479_v59 = vsel %vm3223_vm13, %v5067_v24, %v3351_v18 }
 0x362   :  { %v2990_v61 = vpop.f32.mrb[152].mxu0  ;;  %v3480_v56 = vsel %vm3224_vm14, %v5068_v19, %v3352_v42  ;;  %v3579_v34 = vpack.c.bf16 %v3479_v59, %v3477_v1  ;;  %v5439_v42 = vld [vmem:[#allocation6 + $0x30] sm:$0xff]  }
 0x363   :  { %v5069_v21 = vadd.f32 %v2990_v61, %v7646_v31  ;;  %v2992_v57 = vpop.f32.mrb[153].mxu0  ;;  %v3580_v36 = vpack.c.bf16 %v3480_v56, %v3478_v58  ;;  %4941 = vmatprep.subr.bf16.mxu1 %v5439_v42 }
 0x364   :  { %v5070_v35 = vadd.f32 %v2992_v57, %v7653_v20  ;;  %v2994_v52 = vpop.f32.mrb[154].mxu0  ;;  %4942 = vmatpush3.bf16.msra.mxu1 %v5439_v42 }
 0x365   :  { %v3353_v51 = vmul.f32 0.2, %v5069_v21  ;;  %v5071_v29 = vadd.f32 %v2994_v52, %v7646_v31  ;;  %v2996_v7 = vpop.f32.mrb[155].mxu0  ;;  %3888 = vmatprep.mubr.bf16.mxu1 %v3580_v36  ;;  %vm3225_vm15 = vcmp.gt.f32.partialorder %v5069_v21, 0.0  ;;  %v5440_v52 = vld [vmem:[#allocation6 + $0x38] sm:$0xff]  }
 0x366   :  { %v3354_v46 = vmul.f32 0.2, %v5070_v35  ;;  %v5072_v2 = vadd.f32 %v2996_v7, %v7653_v20  ;;  %3889 = vmatmul.mubr.bf16.gmra.mrb[212].mxu1 %v3579_v34  ;;  %vm3226_vm1 = vcmp.gt.f32.partialorder %v5070_v35, 0.0  ;;  %4943 = vmatprep.subr.bf16.mxu1 %v5440_v52 }
 0x367   :  { %vm3227_vm2 = vcmp.gt.f32.partialorder %v5071_v29, 0.0  ;;  %v3355_v27 = vmul.f32 0.2, %v5071_v29  ;;  %v3481_v43 = vsel %vm3225_vm15, %v5069_v21, %v3353_v51 }
 0x368   :  { %vm3228_vm3 = vcmp.gt.f32.partialorder %v5072_v2, 0.0  ;;  %v3356_v48 = vmul.f32 0.2, %v5072_v2  ;;  %v3482_v28 = vsel %vm3226_vm1, %v5070_v35, %v3354_v46  ;;  %4944 = vmatpush3.bf16.msra.mxu1 %v5440_v52 }
 0x369   :  { %v3483_v11 = vsel %vm3227_vm2, %v5071_v29, %v3355_v27 }
 0x36a   :  { %v3000_v54 = vpop.f32.mrb[156].mxu0  ;;  %v3484_v37 = vsel %vm3228_vm3, %v5072_v2, %v3356_v48  ;;  %v3581_v39 = vpack.c.bf16 %v3483_v11, %v3481_v43 }
 0x36b   :  { %v5073_v50 = vadd.f32 %v3000_v54, %v7646_v31  ;;  %v3002_v53 = vpop.f32.mrb[157].mxu0  ;;  %v3582_v44 = vpack.c.bf16 %v3484_v37, %v3482_v28 }
 0x36c   :  { %v5074_v8 = vadd.f32 %v3002_v53, %v7653_v20  ;;  %v3004_v26 = vpop.f32.mrb[158].mxu0 }
 0x36d   :  { %v3357_v38 = vmul.f32 0.2, %v5073_v50  ;;  %v5075_v13 = vadd.f32 %v3004_v26, %v7646_v31  ;;  %v3006_v14 = vpop.f32.mrb[159].mxu0  ;;  %3896 = vmatprep.mubr.bf16.mxu1 %v3582_v44  ;;  %vm3229_vm4 = vcmp.gt.f32.partialorder %v5073_v50, 0.0 }
 0x36e   :  { %v3358_v9 = vmul.f32 0.2, %v5074_v8  ;;  %v5076_v6 = vadd.f32 %v3006_v14, %v7653_v20  ;;  %3897 = vmatmul.mubr.bf16.gmra.mrb[216].mxu1 %v3581_v39  ;;  %vm3230_vm5 = vcmp.gt.f32.partialorder %v5074_v8, 0.0 }
 0x36f   :  { %vm3231_vm6 = vcmp.gt.f32.partialorder %v5075_v13, 0.0  ;;  %v3359_v30 = vmul.f32 0.2, %v5075_v13  ;;  %v3485_v5 = vsel %vm3229_vm4, %v5073_v50, %v3357_v38 }
 0x370   :  { %vm3232_vm7 = vcmp.gt.f32.partialorder %v5076_v6, 0.0  ;;  %v3360_v4 = vmul.f32 0.2, %v5076_v6  ;;  %v3486_v60 = vsel %vm3230_vm5, %v5074_v8, %v3358_v9 }
 0x371   :  { %v3487_v49 = vsel %vm3231_vm6, %v5075_v13, %v3359_v30 }
 0x372   :  { %v3010_v0 = vpop.f32.mrb[160].mxu0  ;;  %v3488_v47 = vsel %vm3232_vm7, %v5076_v6, %v3360_v4  ;;  %v3583_v15 = vpack.c.bf16 %v3487_v49, %v3485_v5 }
 0x373   :  { %v5077_v22 = vadd.f32 %v3010_v0, %v7646_v31  ;;  %v3012_v33 = vpop.f32.mrb[161].mxu0  ;;  %v3584_v63 = vpack.c.bf16 %v3488_v47, %v3486_v60 }
 0x374   :  { %v5078_v3 = vadd.f32 %v3012_v33, %v7653_v20  ;;  %v3014_v10 = vpop.f32.mrb[162].mxu0 }
 0x375   :  { %v3361_v25 = vmul.f32 0.2, %v5077_v22  ;;  %v5079_v32 = vadd.f32 %v3014_v10, %v7646_v31  ;;  %v3016_v41 = vpop.f32.mrb[163].mxu0  ;;  %3904 = vmatprep.mubr.bf16.mxu1 %v3584_v63  ;;  %vm3233_vm8 = vcmp.gt.f32.partialorder %v5077_v22, 0.0 }
 0x376   :  { %v3362_v23 = vmul.f32 0.2, %v5078_v3  ;;  %v5080_v45 = vadd.f32 %v3016_v41, %v7653_v20  ;;  %3905 = vmatmul.mubr.bf16.gmra.mrb[220].mxu1 %v3583_v15  ;;  %vm3234_vm9 = vcmp.gt.f32.partialorder %v5078_v3, 0.0 }
 0x377   :  { %vm3235_vm10 = vcmp.gt.f32.partialorder %v5079_v32, 0.0  ;;  %v3363_v16 = vmul.f32 0.2, %v5079_v32  ;;  %v3489_v24 = vsel %vm3233_vm8, %v5077_v22, %v3361_v25 }
 0x378   :  { %vm3236_vm11 = vcmp.gt.f32.partialorder %v5080_v45, 0.0  ;;  %v3364_v40 = vmul.f32 0.2, %v5080_v45  ;;  %v3490_v19 = vsel %vm3234_vm9, %v5078_v3, %v3362_v23 }
 0x379   :  { %v3491_v17 = vsel %vm3235_vm10, %v5079_v32, %v3363_v16 }
 0x37a   :  { %v3020_v12 = vpop.f32.mrb[164].mxu0  ;;  %v3492_v18 = vsel %vm3236_vm11, %v5080_v45, %v3364_v40  ;;  %v3585_v62 = vpack.c.bf16 %v3491_v17, %v3489_v24 }
 0x37b   :  { %v5081_v1 = vadd.f32 %v3020_v12, %v7646_v31  ;;  %v3022_v59 = vpop.f32.mrb[165].mxu0  ;;  %v3586_v61 = vpack.c.bf16 %v3492_v18, %v3490_v19 }
 0x37c   :  { %v5082_v58 = vadd.f32 %v3022_v59, %v7653_v20  ;;  %v3024_v56 = vpop.f32.mrb[166].mxu0 }
 0x37d   :  { %v3365_v34 = vmul.f32 0.2, %v5081_v1  ;;  %v5083_v21 = vadd.f32 %v3024_v56, %v7646_v31  ;;  %v3026_v57 = vpop.f32.mrb[167].mxu0  ;;  %3912 = vmatprep.mubr.bf16.mxu1 %v3586_v61  ;;  %vm3237_vm12 = vcmp.gt.f32.partialorder %v5081_v1, 0.0 }
 0x37e   :  { %v3366_v36 = vmul.f32 0.2, %v5082_v58  ;;  %v5084_v35 = vadd.f32 %v3026_v57, %v7653_v20  ;;  %3913 = vmatmul.mubr.bf16.gmra.mrb[224].mxu1 %v3585_v62  ;;  %vm3238_vm0 = vcmp.gt.f32.partialorder %v5082_v58, 0.0 }
 0x37f   :  { %vm3239_vm13 = vcmp.gt.f32.partialorder %v5083_v21, 0.0  ;;  %v3367_v51 = vmul.f32 0.2, %v5083_v21  ;;  %v3493_v7 = vsel %vm3237_vm12, %v5081_v1, %v3365_v34 }
 0x380   :  { %vm3240_vm14 = vcmp.gt.f32.partialorder %v5084_v35, 0.0  ;;  %v3368_v29 = vmul.f32 0.2, %v5084_v35  ;;  %v3494_v27 = vsel %vm3238_vm0, %v5082_v58, %v3366_v36 }
 0x381   :  { %v3495_v46 = vsel %vm3239_vm13, %v5083_v21, %v3367_v51 }
 0x382   :  { %v3030_v2 = vpop.f32.mrb[168].mxu0  ;;  %v3496_v48 = vsel %vm3240_vm14, %v5084_v35, %v3368_v29  ;;  %v3587_v43 = vpack.c.bf16 %v3495_v46, %v3493_v7 }
 0x383   :  { %v5085_v11 = vadd.f32 %v3030_v2, %v7646_v31  ;;  %v3032_v54 = vpop.f32.mrb[169].mxu0  ;;  %v3588_v28 = vpack.c.bf16 %v3496_v48, %v3494_v27 }
 0x384   :  { %v5086_v37 = vadd.f32 %v3032_v54, %v7653_v20  ;;  %v3034_v39 = vpop.f32.mrb[170].mxu0 }
 0x385   :  { %v3369_v50 = vmul.f32 0.2, %v5085_v11  ;;  %v5087_v53 = vadd.f32 %v3034_v39, %v7646_v31  ;;  %v3036_v44 = vpop.f32.mrb[171].mxu0  ;;  %3920 = vmatprep.mubr.bf16.mxu1 %v3588_v28  ;;  %vm3241_vm15 = vcmp.gt.f32.partialorder %v5085_v11, 0.0 }
 0x386   :  { %v3370_v8 = vmul.f32 0.2, %v5086_v37  ;;  %v5088_v26 = vadd.f32 %v3036_v44, %v7653_v20  ;;  %3921 = vmatmul.mubr.bf16.gmra.mrb[228].mxu1 %v3587_v43  ;;  %vm3242_vm1 = vcmp.gt.f32.partialorder %v5086_v37, 0.0 }
 0x387   :  { %vm3243_vm2 = vcmp.gt.f32.partialorder %v5087_v53, 0.0  ;;  %v3371_v38 = vmul.f32 0.2, %v5087_v53  ;;  %v3497_v14 = vsel %vm3241_vm15, %v5085_v11, %v3369_v50 }
 0x388   :  { %vm3244_vm3 = vcmp.gt.f32.partialorder %v5088_v26, 0.0  ;;  %v3372_v13 = vmul.f32 0.2, %v5088_v26  ;;  %v3498_v30 = vsel %vm3242_vm1, %v5086_v37, %v3370_v8 }
 0x389   :  { %v3499_v9 = vsel %vm3243_vm2, %v5087_v53, %v3371_v38 }
 0x38a   :  { %v3040_v6 = vpop.f32.mrb[172].mxu0  ;;  %v3500_v4 = vsel %vm3244_vm3, %v5088_v26, %v3372_v13  ;;  %v3589_v5 = vpack.c.bf16 %v3499_v9, %v3497_v14 }
 0x38b   :  { %v5089_v49 = vadd.f32 %v3040_v6, %v7646_v31  ;;  %v3042_v0 = vpop.f32.mrb[173].mxu0  ;;  %v3590_v60 = vpack.c.bf16 %v3500_v4, %v3498_v30 }
 0x38c   :  { %v5090_v47 = vadd.f32 %v3042_v0, %v7653_v20  ;;  %v3044_v15 = vpop.f32.mrb[174].mxu0 }
 0x38d   :  { %v3373_v22 = vmul.f32 0.2, %v5089_v49  ;;  %v5091_v33 = vadd.f32 %v3044_v15, %v7646_v31  ;;  %v3046_v63 = vpop.f32.mrb[175].mxu0  ;;  %3928 = vmatprep.mubr.bf16.mxu1 %v3590_v60  ;;  %vm3245_vm4 = vcmp.gt.f32.partialorder %v5089_v49, 0.0 }
 0x38e   :  { %v3374_v3 = vmul.f32 0.2, %v5090_v47  ;;  %v5092_v10 = vadd.f32 %v3046_v63, %v7653_v20  ;;  %3929 = vmatmul.mubr.bf16.gmra.mrb[232].mxu1 %v3589_v5  ;;  %vm3246_vm5 = vcmp.gt.f32.partialorder %v5090_v47, 0.0 }
 0x38f   :  { %vm3247_vm6 = vcmp.gt.f32.partialorder %v5091_v33, 0.0  ;;  %v3375_v55 = vmul.f32 0.2, %v5091_v33  ;;  %v3501_v32 = vsel %vm3245_vm4, %v5089_v49, %v3373_v22 }
 0x390   :  { %vm3248_vm7 = vcmp.gt.f32.partialorder %v5092_v10, 0.0  ;;  %v3376_v25 = vmul.f32 0.2, %v5092_v10  ;;  %v3502_v45 = vsel %vm3246_vm5, %v5090_v47, %v3374_v3 }
 0x391   :  { %v3503_v41 = vsel %vm3247_vm6, %v5091_v33, %v3375_v55 }
 0x392   :  { %v3050_v23 = vpop.f32.mrb[176].mxu0  ;;  %v3504_v16 = vsel %vm3248_vm7, %v5092_v10, %v3376_v25  ;;  %v3591_v40 = vpack.c.bf16 %v3503_v41, %v3501_v32 }
 0x393   :  { %v5093_v24 = vadd.f32 %v3050_v23, %v7646_v31  ;;  %v3052_v17 = vpop.f32.mrb[177].mxu0  ;;  %v3592_v12 = vpack.c.bf16 %v3504_v16, %v3502_v45 }
 0x394   :  { %v5094_v19 = vadd.f32 %v3052_v17, %v7653_v20  ;;  %v3054_v18 = vpop.f32.mrb[178].mxu0 }
 0x395   :  { %v3377_v62 = vmul.f32 0.2, %v5093_v24  ;;  %v5095_v42 = vadd.f32 %v3054_v18, %v7646_v31  ;;  %v3056_v1 = vpop.f32.mrb[179].mxu0  ;;  %3936 = vmatprep.mubr.bf16.mxu1 %v3592_v12  ;;  %vm3249_vm8 = vcmp.gt.f32.partialorder %v5093_v24, 0.0 }
 0x396   :  { %v3378_v59 = vmul.f32 0.2, %v5094_v19  ;;  %v5096_v61 = vadd.f32 %v3056_v1, %v7653_v20  ;;  %3937 = vmatmul.mubr.bf16.gmra.mrb[236].mxu1 %v3591_v40  ;;  %vm3250_vm9 = vcmp.gt.f32.partialorder %v5094_v19, 0.0 }
 0x397   :  { %vm3251_vm10 = vcmp.gt.f32.partialorder %v5095_v42, 0.0  ;;  %v3379_v58 = vmul.f32 0.2, %v5095_v42  ;;  %v3505_v34 = vsel %vm3249_vm8, %v5093_v24, %v3377_v62 }
 0x398   :  { %vm3252_vm11 = vcmp.gt.f32.partialorder %v5096_v61, 0.0  ;;  %v3380_v56 = vmul.f32 0.2, %v5096_v61  ;;  %v3506_v36 = vsel %vm3250_vm9, %v5094_v19, %v3378_v59 }
 0x399   :  { %v3507_v21 = vsel %vm3251_vm10, %v5095_v42, %v3379_v58 }
 0x39a   :  { %v3060_v57 = vpop.f32.mrb[180].mxu0  ;;  %v3508_v35 = vsel %vm3252_vm11, %v5096_v61, %v3380_v56  ;;  %v3593_v52 = vpack.c.bf16 %v3507_v21, %v3505_v34 }
 0x39b   :  { %v5097_v51 = vadd.f32 %v3060_v57, %v7646_v31  ;;  %v3062_v29 = vpop.f32.mrb[181].mxu0  ;;  %v3594_v7 = vpack.c.bf16 %v3508_v35, %v3506_v36 }
 0x39c   :  { %v5098_v46 = vadd.f32 %v3062_v29, %v7653_v20  ;;  %v3064_v2 = vpop.f32.mrb[182].mxu0 }
 0x39d   :  { %v3381_v27 = vmul.f32 0.2, %v5097_v51  ;;  %v5099_v48 = vadd.f32 %v3064_v2, %v7646_v31  ;;  %v3066_v43 = vpop.f32.mrb[183].mxu0  ;;  %3944 = vmatprep.mubr.bf16.mxu1 %v3594_v7  ;;  %vm3253_vm12 = vcmp.gt.f32.partialorder %v5097_v51, 0.0 }
 0x39e   :  { %v3382_v11 = vmul.f32 0.2, %v5098_v46  ;;  %v5100_v54 = vadd.f32 %v3066_v43, %v7653_v20  ;;  %3945 = vmatmul.mubr.bf16.gmra.mrb[240].mxu1 %v3593_v52  ;;  %vm3254_vm0 = vcmp.gt.f32.partialorder %v5098_v46, 0.0 }
 0x39f   :  { %vm3255_vm13 = vcmp.gt.f32.partialorder %v5099_v48, 0.0  ;;  %v3383_v28 = vmul.f32 0.2, %v5099_v48  ;;  %v3509_v39 = vsel %vm3253_vm12, %v5097_v51, %v3381_v27 }
 0x3a0   :  { %vm3256_vm14 = vcmp.gt.f32.partialorder %v5100_v54, 0.0  ;;  %v3384_v37 = vmul.f32 0.2, %v5100_v54  ;;  %v3510_v44 = vsel %vm3254_vm0, %v5098_v46, %v3382_v11 }
 0x3a1   :  { %v3511_v50 = vsel %vm3255_vm13, %v5099_v48, %v3383_v28 }
 0x3a2   :  { %v3070_v53 = vpop.f32.mrb[184].mxu0  ;;  %v3512_v8 = vsel %vm3256_vm14, %v5100_v54, %v3384_v37  ;;  %v3595_v26 = vpack.c.bf16 %v3511_v50, %v3509_v39 }
 0x3a3   :  { %v5101_v38 = vadd.f32 %v3070_v53, %v7646_v31  ;;  %v3072_v13 = vpop.f32.mrb[185].mxu0  ;;  %v3596_v14 = vpack.c.bf16 %v3512_v8, %v3510_v44 }
 0x3a4   :  { %v5102_v9 = vadd.f32 %v3072_v13, %v7653_v20  ;;  %v3074_v6 = vpop.f32.mrb[186].mxu0 }
 0x3a5   :  { %v3385_v30 = vmul.f32 0.2, %v5101_v38  ;;  %v5103_v4 = vadd.f32 %v3074_v6, %v7646_v31  ;;  %v3076_v5 = vpop.f32.mrb[187].mxu0  ;;  %3952 = vmatprep.mubr.bf16.mxu1 %v3596_v14  ;;  %vm3257_vm15 = vcmp.gt.f32.partialorder %v5101_v38, 0.0 }
 0x3a6   :  { %v3386_v49 = vmul.f32 0.2, %v5102_v9  ;;  %v5104_v0 = vadd.f32 %v3076_v5, %v7653_v20  ;;  %3953 = vmatmul.mubr.bf16.gmra.mrb[244].mxu1 %v3595_v26  ;;  %vm3258_vm1 = vcmp.gt.f32.partialorder %v5102_v9, 0.0 }
 0x3a7   :  { %vm3259_vm2 = vcmp.gt.f32.partialorder %v5103_v4, 0.0  ;;  %v3387_v60 = vmul.f32 0.2, %v5103_v4  ;;  %v3513_v15 = vsel %vm3257_vm15, %v5101_v38, %v3385_v30 }
 0x3a8   :  { %vm3260_vm3 = vcmp.gt.f32.partialorder %v5104_v0, 0.0  ;;  %v3388_v47 = vmul.f32 0.2, %v5104_v0  ;;  %v3514_v63 = vsel %vm3258_vm1, %v5102_v9, %v3386_v49 }
 0x3a9   :  { %v3515_v22 = vsel %vm3259_vm2, %v5103_v4, %v3387_v60 }
 0x3aa   :  { %v3080_v33 = vpop.f32.mrb[188].mxu0  ;;  %v3516_v3 = vsel %vm3260_vm3, %v5104_v0, %v3388_v47  ;;  %v3597_v10 = vpack.c.bf16 %v3515_v22, %v3513_v15 }
 0x3ab   :  { %v5105_v55 = vadd.f32 %v3080_v33, %v7646_v31  ;;  %v3082_v25 = vpop.f32.mrb[189].mxu0  ;;  %v3598_v32 = vpack.c.bf16 %v3516_v3, %v3514_v63 }
 0x3ac   :  { %v5106_v41 = vadd.f32 %v3082_v25, %v7653_v20  ;;  %v3084_v23 = vpop.f32.mrb[190].mxu0 }
 0x3ad   :  { %v3389_v45 = vmul.f32 0.2, %v5105_v55  ;;  %v5107_v16 = vadd.f32 %v3084_v23, %v7646_v31  ;;  %v3086_v40 = vpop.f32.mrb[191].mxu0  ;;  %3960 = vmatprep.mubr.bf16.mxu1 %v3598_v32  ;;  %vm3261_vm4 = vcmp.gt.f32.partialorder %v5105_v55, 0.0 }
 0x3ae   :  { %v3390_v24 = vmul.f32 0.2, %v5106_v41  ;;  %v5108_v17 = vadd.f32 %v3086_v40, %v7653_v20  ;;  %3961 = vmatmul.mubr.bf16.gmra.mrb[248].mxu1 %v3597_v10  ;;  %vm3262_vm5 = vcmp.gt.f32.partialorder %v5106_v41, 0.0 }
 0x3af   :  { %vm3263_vm6 = vcmp.gt.f32.partialorder %v5107_v16, 0.0  ;;  %v3391_v12 = vmul.f32 0.2, %v5107_v16  ;;  %v3517_v18 = vsel %vm3261_vm4, %v5105_v55, %v3389_v45 }
 0x3b0   :  { %vm3264_vm7 = vcmp.gt.f32.partialorder %v5108_v17, 0.0  ;;  %v3392_v19 = vmul.f32 0.2, %v5108_v17  ;;  %v3518_v1 = vsel %vm3262_vm5, %v5106_v41, %v3390_v24 }
 0x3b1   :  { %v3519_v62 = vsel %vm3263_vm6, %v5107_v16, %v3391_v12 }
 0x3b2   :  { %v3090_v42 = vpop.f32.mrb[192].mxu0  ;;  %v3520_v59 = vsel %vm3264_vm7, %v5108_v17, %v3392_v19  ;;  %v3599_v61 = vpack.c.bf16 %v3519_v62, %v3517_v18 }
 0x3b3   :  { %v5109_v58 = vadd.f32 %v3090_v42, %v7646_v31  ;;  %v3092_v56 = vpop.f32.mrb[193].mxu0  ;;  %v3600_v34 = vpack.c.bf16 %v3520_v59, %v3518_v1 }
 0x3b4   :  { %v5110_v21 = vadd.f32 %v3092_v56, %v7653_v20  ;;  %v3094_v57 = vpop.f32.mrb[194].mxu0 }
 0x3b5   :  { %v3393_v36 = vmul.f32 0.2, %v5109_v58  ;;  %v5111_v35 = vadd.f32 %v3094_v57, %v7646_v31  ;;  %v3096_v52 = vpop.f32.mrb[195].mxu0  ;;  %3968 = vmatprep.mubr.bf16.mxu1 %v3600_v34  ;;  %vm3265_vm8 = vcmp.gt.f32.partialorder %v5109_v58, 0.0 }
 0x3b6   :  { %v3394_v51 = vmul.f32 0.2, %v5110_v21  ;;  %v5112_v29 = vadd.f32 %v3096_v52, %v7653_v20  ;;  %3969 = vmatmul.mubr.bf16.gmra.mrb[252].mxu1 %v3599_v61  ;;  %vm3266_vm9 = vcmp.gt.f32.partialorder %v5110_v21, 0.0 }
 0x3b7   :  { %vm3267_vm10 = vcmp.gt.f32.partialorder %v5111_v35, 0.0  ;;  %v3395_v7 = vmul.f32 0.2, %v5111_v35  ;;  %v3521_v2 = vsel %vm3265_vm8, %v5109_v58, %v3393_v36 }
 0x3b8   :  { %vm3268_vm11 = vcmp.gt.f32.partialorder %v5112_v29, 0.0  ;;  %v3396_v46 = vmul.f32 0.2, %v5112_v29  ;;  %v3522_v11 = vsel %vm3266_vm9, %v5110_v21, %v3394_v51  ;;  %v7797_v21 = vld [vmem:[%s8177_s6] ss:$0 sm:$0xff] }
 0x3b9   :  { %v3523_v27 = vsel %vm3267_vm10, %v5111_v35, %v3395_v7 }
 0x3ba   :  { %v3601_v48 = vpack.c.bf16 %v3523_v27, %v3521_v2  ;;  %v3100_v43 = vpop.f32.mrb[196].mxu0  ;;  %v3524_v54 = vsel %vm3268_vm11, %v5112_v29, %v3396_v46 }
 0x3bb   :  { %v5113_v28 = vadd.f32 %v3100_v43, %v7646_v31  ;;  %v3102_v37 = vpop.f32.mrb[197].mxu0  ;;  %v3602_v39 = vpack.c.bf16 %v3524_v54, %v3522_v11 }
 0x3bc   :  { %v5114_v50 = vadd.f32 %v3102_v37, %v7653_v20  ;;  %v3104_v53 = vpop.f32.mrb[198].mxu0 }
 0x3bd   :  { %v3397_v44 = vmul.f32 0.2, %v5113_v28  ;;  %v5115_v8 = vadd.f32 %v3104_v53, %v7646_v31  ;;  %v3106_v26 = vpop.f32.mrb[199].mxu0  ;;  %3976 = vmatprep.mubr.bf16.mxu1 %v3602_v39  ;;  %vm3269_vm12 = vcmp.gt.f32.partialorder %v5113_v28, 0.0 }
 0x3be   :  { %v3398_v38 = vmul.f32 0.2, %v5114_v50  ;;  %v5116_v13 = vadd.f32 %v3106_v26, %v7653_v20  ;;  %3977 = vmatmul.mubr.bf16.gmra.mrb[0].mxu1 %v3601_v48  ;;  %vm3270_vm0 = vcmp.gt.f32.partialorder %v5114_v50, 0.0 }
 0x3bf   :  { %vm3271_vm13 = vcmp.gt.f32.partialorder %v5115_v8, 0.0  ;;  %v3399_v14 = vmul.f32 0.2, %v5115_v8  ;;  %v3525_v6 = vsel %vm3269_vm12, %v5113_v28, %v3397_v44 }
 0x3c0   :  { %vm3272_vm14 = vcmp.gt.f32.partialorder %v5116_v13, 0.0  ;;  %v3400_v9 = vmul.f32 0.2, %v5116_v13  ;;  %v3526_v49 = vsel %vm3270_vm0, %v5114_v50, %v3398_v38 }
 0x3c1   :  { %v3527_v30 = vsel %vm3271_vm13, %v5115_v8, %v3399_v14 }
 0x3c2   :  { %v3603_v4 = vpack.c.bf16 %v3527_v30, %v3525_v6  ;;  %v3110_v5 = vpop.f32.mrb[200].mxu0  ;;  %v3528_v0 = vsel %vm3272_vm14, %v5116_v13, %v3400_v9 }
 0x3c3   :  { %v5117_v60 = vadd.f32 %v3110_v5, %v7646_v31  ;;  %v3112_v47 = vpop.f32.mrb[201].mxu0  ;;  %v3604_v15 = vpack.c.bf16 %v3528_v0, %v3526_v49 }
 0x3c4   :  { %v5118_v22 = vadd.f32 %v3112_v47, %v7653_v20  ;;  %v3114_v33 = vpop.f32.mrb[202].mxu0 }
 0x3c5   :  { %v3401_v63 = vmul.f32 0.2, %v5117_v60  ;;  %v5119_v3 = vadd.f32 %v3114_v33, %v7646_v31  ;;  %v3116_v10 = vpop.f32.mrb[203].mxu0  ;;  %3984 = vmatprep.mubr.bf16.mxu1 %v3604_v15  ;;  %vm3273_vm15 = vcmp.gt.f32.partialorder %v5117_v60, 0.0 }
 0x3c6   :  { %v3402_v55 = vmul.f32 0.2, %v5118_v22  ;;  %v5120_v25 = vadd.f32 %v3116_v10, %v7653_v20  ;;  %3985 = vmatmul.mubr.bf16.gmra.mrb[4].mxu1 %v3603_v4  ;;  %vm3274_vm1 = vcmp.gt.f32.partialorder %v5118_v22, 0.0 }
 0x3c7   :  { %vm3275_vm2 = vcmp.gt.f32.partialorder %v5119_v3, 0.0  ;;  %v3403_v32 = vmul.f32 0.2, %v5119_v3  ;;  %v3529_v23 = vsel %vm3273_vm15, %v5117_v60, %v3401_v63 }
 0x3c8   :  { %vm3276_vm3 = vcmp.gt.f32.partialorder %v5120_v25, 0.0  ;;  %v3404_v41 = vmul.f32 0.2, %v5120_v25  ;;  %v3530_v24 = vsel %vm3274_vm1, %v5118_v22, %v3402_v55 }
 0x3c9   :  { %v3531_v45 = vsel %vm3275_vm2, %v5119_v3, %v3403_v32 }
 0x3ca   :  { %v3605_v16 = vpack.c.bf16 %v3531_v45, %v3529_v23  ;;  %v3120_v40 = vpop.f32.mrb[204].mxu0  ;;  %v3532_v17 = vsel %vm3276_vm3, %v5120_v25, %v3404_v41 }
 0x3cb   :  { %v5121_v12 = vadd.f32 %v3120_v40, %v7646_v31  ;;  %v3122_v19 = vpop.f32.mrb[205].mxu0  ;;  %v3606_v18 = vpack.c.bf16 %v3532_v17, %v3530_v24 }
 0x3cc   :  { %v5122_v62 = vadd.f32 %v3122_v19, %v7653_v20  ;;  %v3124_v42 = vpop.f32.mrb[206].mxu0 }
 0x3cd   :  { %v3405_v1 = vmul.f32 0.2, %v5121_v12  ;;  %v5123_v59 = vadd.f32 %v3124_v42, %v7646_v31  ;;  %v3126_v61 = vpop.f32.mrb[207].mxu0  ;;  %3992 = vmatprep.mubr.bf16.mxu1 %v3606_v18  ;;  %vm3277_vm4 = vcmp.gt.f32.partialorder %v5121_v12, 0.0 }
 0x3ce   :  { %v3406_v58 = vmul.f32 0.2, %v5122_v62  ;;  %v5124_v56 = vadd.f32 %v3126_v61, %v7653_v20  ;;  %3993 = vmatmul.mubr.bf16.gmra.mrb[8].mxu1 %v3605_v16  ;;  %vm3278_vm5 = vcmp.gt.f32.partialorder %v5122_v62, 0.0 }
 0x3cf   :  { %vm3279_vm6 = vcmp.gt.f32.partialorder %v5123_v59, 0.0  ;;  %v3407_v34 = vmul.f32 0.2, %v5123_v59  ;;  %v3533_v36 = vsel %vm3277_vm4, %v5121_v12, %v3405_v1 }
 0x3d0   :  { %vm3280_vm7 = vcmp.gt.f32.partialorder %v5124_v56, 0.0  ;;  %v3408_v57 = vmul.f32 0.2, %v5124_v56  ;;  %v3534_v2 = vsel %vm3278_vm5, %v5122_v62, %v3406_v58 }
 0x3d1   :  { %v3535_v35 = vsel %vm3279_vm6, %v5123_v59, %v3407_v34  ;;  %v3786_v52 = vpop.f32.mrb[160].mxu1 }
 0x3d2   :  { %v3607_v51 = vpack.c.bf16 %v3535_v35, %v3533_v36  ;;  %v3787_v29 = vadd.f32 %v7797_v21, %v3786_v52  ;;  %v3130_v7 = vpop.f32.mrb[208].mxu0  ;;  %v3788_v46 = vpop.f32.mrb[161].mxu1  ;;  %v3536_v27 = vsel %vm3280_vm7, %v5124_v56, %v3408_v57 }
 0x3d3   :  { %v5125_v48 = vadd.f32 %v3130_v7, %v7646_v31  ;;  %v3132_v43 = vpop.f32.mrb[209].mxu0  ;;  %v3789_v11 = vpop.f32.mrb[162].mxu1  ;;  %v3608_v54 = vpack.c.bf16 %v3536_v27, %v3534_v2 }
 0x3d4   :  { %v4105_v28 = vmul.f32 0.2, %v3787_v29  ;;  %v5126_v37 = vadd.f32 %v3132_v43, %v7653_v20  ;;  %v3790_v39 = vadd.f32 %v7797_v21, %v3789_v11  ;;  %v3134_v50 = vpop.f32.mrb[210].mxu0  ;;  %v3791_v53 = vpop.f32.mrb[163].mxu1  ;;  %vm4041_vm8 = vcmp.gt.f32.partialorder %v3787_v29, 0.0 }
 0x3d5   :  { %vm3281_vm9 = vcmp.gt.f32.partialorder %v5125_v48, 0.0  ;;  %v3409_v44 = vmul.f32 0.2, %v5125_v48  ;;  %v5127_v8 = vadd.f32 %v3134_v50, %v7646_v31  ;;  %v3136_v26 = vpop.f32.mrb[211].mxu0  ;;  %4000 = vmatprep.mubr.bf16.mxu1 %v3608_v54 }
 0x3d6   :  { %vm4042_vm10 = vcmp.gt.f32.partialorder %v3790_v39, 0.0  ;;  %v4106_v38 = vmul.f32 0.2, %v3790_v39  ;;  %4001 = vmatmul.mubr.bf16.gmra.mrb[12].mxu1 %v3607_v51  ;;  %vm3282_vm11 = vcmp.gt.f32.partialorder %v5126_v37, 0.0  ;;  %v5128_v14 = vadd.f32 %v3136_v26, %v7653_v20 }
 0x3d7   :  { %vm3283_vm12 = vcmp.gt.f32.partialorder %v5127_v8, 0.0  ;;  %v3411_v13 = vmul.f32 0.2, %v5127_v8  ;;  %v3537_v9 = vsel %vm3281_vm9, %v5125_v48, %v3409_v44  ;;  %v3410_v6 = vmul.f32 0.2, %v5126_v37 }
 0x3d8   :  { %v7805_v30 = vsel %vm4041_vm8, %v3787_v29, %v4105_v28  ;;  %v7807_v4 = vsel %vm4042_vm10, %v3790_v39, %v4106_v38  ;;  %vm3284_vm0 = vcmp.gt.f32.partialorder %v5128_v14, 0.0  ;;  %v3412_v49 = vmul.f32 0.2, %v5128_v14 }
 0x3d9   :  { %v3539_v5 = vsel %vm3283_vm12, %v5127_v8, %v3411_v13  ;;  %v3794_v0 = vpop.f32.mrb[164].mxu1  ;;  %v4233_v60 = vpack.c.bf16 %v7807_v4, %v7805_v30  ;;  %v3538_v45 = vsel %vm3282_vm11, %v5126_v37, %v3410_v6 }
 0x3da   :  { %v3609_v47 = vpack.c.bf16 %v3539_v5, %v3537_v9  ;;  %v3795_v15 = vadd.f32 %v7797_v21, %v3794_v0  ;;  %v3140_v22 = vpop.f32.mrb[212].mxu0  ;;  %v3796_v33 = vpop.f32.mrb[165].mxu1  ;;  %v3540_v55 = vsel %vm3284_vm0, %v5128_v14, %v3412_v49 }
 0x3db   :  { %v5129_v63 = vadd.f32 %v3140_v22, %v7646_v31  ;;  %v3142_v3 = vpop.f32.mrb[213].mxu0  ;;  %v3797_v10 = vpop.f32.mrb[166].mxu1  ;;  %v3610_v12 = vpack.c.bf16 %v3540_v55, %v3538_v45 }
 0x3dc   :  { %vm4043_vm13 = vcmp.gt.f32.partialorder %v3795_v15, 0.0  ;;  %v4107_v25 = vmul.f32 0.2, %v3795_v15  ;;  %v3798_v32 = vadd.f32 %v7797_v21, %v3797_v10  ;;  %v3144_v41 = vpop.f32.mrb[214].mxu0  ;;  %v3799_v23 = vpop.f32.mrb[167].mxu1  ;;  %v5130_v40 = vadd.f32 %v3142_v3, %v7653_v20 }
 0x3dd   :  { %v3413_v16 = vmul.f32 0.2, %v5129_v63  ;;  %v5131_v24 = vadd.f32 %v3144_v41, %v7646_v31  ;;  %v3146_v17 = vpop.f32.mrb[215].mxu0  ;;  %vm3285_vm14 = vcmp.gt.f32.partialorder %v5129_v63, 0.0  ;;  %4008 = vmatprep.mubr.bf16.mxu1 %v3610_v12 }
 0x3de   :  { %vm4044_vm15 = vcmp.gt.f32.partialorder %v3798_v32, 0.0  ;;  %v4108_v19 = vmul.f32 0.2, %v3798_v32  ;;  %v7818_v62 = vsel %vm4043_vm13, %v3795_v15, %v4107_v25  ;;  %v5132_v42 = vadd.f32 %v3146_v17, %v7653_v20  ;;  %4009 = vmatmul.mubr.bf16.gmra.mrb[16].mxu1 %v3609_v47 }
 0x3df   :  { %vm3287_vm1 = vcmp.gt.f32.partialorder %v5131_v24, 0.0  ;;  %v3415_v18 = vmul.f32 0.2, %v5131_v24  ;;  %v3541_v1 = vsel %vm3285_vm14, %v5129_v63, %v3413_v16  ;;  %v3414_v59 = vmul.f32 0.2, %v5130_v40 }
 0x3e0   :  { %v7821_v61 = vsel %vm4044_vm15, %v3798_v32, %v4108_v19  ;;  %vm3288_vm2 = vcmp.gt.f32.partialorder %v5132_v42, 0.0  ;;  %v3416_v36 = vmul.f32 0.2, %v5132_v42  ;;  %vm3286_vm3 = vcmp.gt.f32.partialorder %v5130_v40, 0.0 }
 0x3e1   :  { %v3543_v58 = vsel %vm3287_vm1, %v5131_v24, %v3415_v18  ;;  %v3802_v56 = vpop.f32.mrb[168].mxu1  ;;  %v4234_v34 = vpack.c.bf16 %v7821_v61, %v7818_v62  ;;  %v3542_v39 = vsel %vm3286_vm3, %v5130_v40, %v3414_v59 }
 0x3e2   :  { %v3611_v57 = vpack.c.bf16 %v3543_v58, %v3541_v1  ;;  %v3150_v35 = vpop.f32.mrb[216].mxu0  ;;  %v3804_v52 = vpop.f32.mrb[169].mxu1  ;;  %v3803_v51 = vadd.f32 %v7797_v21, %v3802_v56  ;;  %v3544_v11 = vsel %vm3288_vm2, %v5132_v42, %v3416_v36 }
 0x3e3   :  { %v5133_v29 = vadd.f32 %v3150_v35, %v7646_v31  ;;  %v3152_v7 = vpop.f32.mrb[217].mxu0  ;;  %v3805_v46 = vpop.f32.mrb[170].mxu1  ;;  %v3612_v8 = vpack.c.bf16 %v3544_v11, %v3542_v39 }
 0x3e4   :  { %v5134_v2 = vadd.f32 %v3152_v7, %v7653_v20  ;;  %v3806_v27 = vadd.f32 %v7797_v21, %v3805_v46  ;;  %v3154_v48 = vpop.f32.mrb[218].mxu0  ;;  %v3807_v43 = vpop.f32.mrb[171].mxu1  ;;  %vm4045_vm4 = vcmp.gt.f32.partialorder %v3803_v51, 0.0  ;;  %v4109_v54 = vmul.f32 0.2, %v3803_v51 }
 0x3e5   :  { %v3417_v28 = vmul.f32 0.2, %v5133_v29  ;;  %vm3289_vm6 = vcmp.gt.f32.partialorder %v5133_v29, 0.0  ;;  %v5135_v53 = vadd.f32 %v3154_v48, %v7646_v31  ;;  %v3156_v44 = vpop.f32.mrb[219].mxu0  ;;  %4016 = vmatprep.mubr.bf16.mxu1 %v3612_v8 }
 0x3e6   :  { %vm4046_vm5 = vcmp.gt.f32.partialorder %v3806_v27, 0.0  ;;  %v4110_v37 = vmul.f32 0.2, %v3806_v27  ;;  %v3418_v50 = vmul.f32 0.2, %v5134_v2  ;;  %vm3290_vm7 = vcmp.gt.f32.partialorder %v5134_v2, 0.0  ;;  %4017 = vmatmul.mubr.bf16.gmra.mrb[20].mxu1 %v3611_v57 }
 0x3e7   :  { %v5136_v26 = vadd.f32 %v3156_v44, %v7653_v20  ;;  %v7831_v38 = vsel %vm4045_vm4, %v3803_v51, %v4109_v54  ;;  %vm3291_vm8 = vcmp.gt.f32.partialorder %v5135_v53, 0.0  ;;  %v3419_v14 = vmul.f32 0.2, %v5135_v53 }
 0x3e8   :  { %v7833_v13 = vsel %vm4046_vm5, %v3806_v27, %v4110_v37  ;;  %v3545_v5 = vsel %vm3289_vm6, %v5133_v29, %v3417_v28  ;;  %v3546_v10 = vsel %vm3290_vm7, %v5134_v2, %v3418_v50 }
 0x3e9   :  { %v3810_v9 = vpop.f32.mrb[172].mxu1  ;;  %v4235_v6 = vpack.c.bf16 %v7833_v13, %v7831_v38  ;;  %v3547_v15 = vsel %vm3291_vm8, %v5135_v53, %v3419_v14  ;;  %v3420_v22 = vmul.f32 0.2, %v5136_v26  ;;  %vm3292_vm10 = vcmp.gt.f32.partialorder %v5136_v26, 0.0 }
 0x3ea   :  { %v3811_v49 = vadd.f32 %v7797_v21, %v3810_v9  ;;  %v3160_v0 = vpop.f32.mrb[220].mxu0  ;;  %v3812_v47 = vpop.f32.mrb[173].mxu1  ;;  %v3613_v55 = vpack.c.bf16 %v3547_v15, %v3545_v5 }
 0x3eb   :  { %v5137_v33 = vadd.f32 %v3160_v0, %v7646_v31  ;;  %v3162_v63 = vpop.f32.mrb[221].mxu0  ;;  %v3813_v3 = vpop.f32.mrb[174].mxu1  ;;  %v3548_v59 = vsel %vm3292_vm10, %v5136_v26, %v3420_v22 }
 0x3ec   :  { %vm4047_vm9 = vcmp.gt.f32.partialorder %v3811_v49, 0.0  ;;  %v4111_v25 = vmul.f32 0.2, %v3811_v49  ;;  %v5138_v32 = vadd.f32 %v3162_v63, %v7653_v20  ;;  %v3164_v41 = vpop.f32.mrb[222].mxu0  ;;  %v3815_v23 = vpop.f32.mrb[175].mxu1  ;;  %v3814_v16 = vadd.f32 %v7797_v21, %v3813_v3 }
 0x3ed   :  { %v3421_v45 = vmul.f32 0.2, %v5137_v33  ;;  %v5139_v40 = vadd.f32 %v3164_v41, %v7646_v31  ;;  %v3166_v24 = vpop.f32.mrb[223].mxu0  ;;  %vm3293_vm11 = vcmp.gt.f32.partialorder %v5137_v33, 0.0  ;;  %v3614_v57 = vpack.c.bf16 %v3548_v59, %v3546_v10 }
 0x3ee   :  { %vm3294_vm12 = vcmp.gt.f32.partialorder %v5138_v32, 0.0  ;;  %v3422_v17 = vmul.f32 0.2, %v5138_v32  ;;  %v5140_v12 = vadd.f32 %v3166_v24, %v7653_v20  ;;  %v7844_v19 = vsel %vm4047_vm9, %v3811_v49, %v4111_v25 }
 0x3ef   :  { %vm4048_vm0 = vcmp.gt.f32.partialorder %v3814_v16, 0.0  ;;  %v4112_v18 = vmul.f32 0.2, %v3814_v16  ;;  %vm3295_vm13 = vcmp.gt.f32.partialorder %v5139_v40, 0.0  ;;  %v3423_v42 = vmul.f32 0.2, %v5139_v40  ;;  %4024 = vmatprep.mubr.bf16.mxu1 %v3614_v57 }
 0x3f0   :  { %vm3296_vm14 = vcmp.gt.f32.partialorder %v5140_v12, 0.0  ;;  %v3424_v1 = vmul.f32 0.2, %v5140_v12  ;;  %v3549_v58 = vsel %vm3293_vm11, %v5137_v33, %v3421_v45  ;;  %v3550_v36 = vsel %vm3294_vm12, %v5138_v32, %v3422_v17  ;;  %4025 = vmatmul.mubr.bf16.gmra.mrb[24].mxu1 %v3613_v55 }
 0x3f1   :  { %v4176_v56 = vsel %vm4048_vm0, %v3814_v16, %v4112_v18  ;;  %v3818_v31 = vpop.f32.mrb[176].mxu1  ;;  %v3551_v52 = vsel %vm3295_vm13, %v5139_v40, %v3423_v42 }
 0x3f2   :  { %v4236_v35 = vpack.c.bf16 %v4176_v56, %v7844_v19  ;;  %v3819_v20 = vadd.f32 %v7797_v21, %v3818_v31  ;;  %v3820_v51 = vpop.f32.mrb[177].mxu1  ;;  %v3552_v29 = vsel %vm3296_vm14, %v5140_v12, %v3424_v1  ;;  %v3615_v7 = vpack.c.bf16 %v3551_v52, %v3549_v58 }
 0x3f3   :  { %v3821_v46 = vpop.f32.mrb[178].mxu1  ;;  %v3616_v2 = vpack.c.bf16 %v3552_v29, %v3550_v36 }
 0x3f4   :  { %v4113_v27 = vmul.f32 0.2, %v3819_v20  ;;  %v3822_v48 = vadd.f32 %v7797_v21, %v3821_v46  ;;  %v3823_v43 = vpop.f32.mrb[179].mxu1  ;;  %vm4049_vm15 = vcmp.gt.f32.partialorder %v3819_v20, 0.0 }
 0x3f5   :  { %4032 = vmatprep.mubr.bf16.mxu1 %v3616_v2 }
 0x3f6   :  { %vm4050_vm1 = vcmp.gt.f32.partialorder %v3822_v48, 0.0  ;;  %v4114_v11 = vmul.f32 0.2, %v3822_v48  ;;  %v4177_v54 = vsel %vm4049_vm15, %v3819_v20, %v4113_v27 }
 0x3f8   :  { %v4178_v28 = vsel %vm4050_vm1, %v3822_v48, %v4114_v11  ;;  %4033 = vmatmul.mubr.bf16.gmra.mrb[28].mxu1 %v3615_v7 }
 0x3f9   :  { %v3826_v37 = vpop.f32.mrb[180].mxu1  ;;  %v4237_v39 = vpack.c.bf16 %v4178_v28, %v4177_v54  ;;  %4945 = vmatprep.mubr.bf16.mxu1 %v4233_v60 }
 0x3fa   :  { %v3827_v50 = vadd.f32 %v7797_v21, %v3826_v37  ;;  %v3828_v53 = vpop.f32.mrb[181].mxu1 }
 0x3fb   :  { %v3829_v44 = vpop.f32.mrb[182].mxu1 }
 0x3fc   :  { %v4115_v8 = vmul.f32 0.2, %v3827_v50  ;;  %v3830_v26 = vadd.f32 %v7797_v21, %v3829_v44  ;;  %v3831_v14 = vpop.f32.mrb[183].mxu1  ;;  %vm4051_vm2 = vcmp.gt.f32.partialorder %v3827_v50, 0.0 }
 0x3fe   :  { %vm4052_vm3 = vcmp.gt.f32.partialorder %v3830_v26, 0.0  ;;  %v4116_v9 = vmul.f32 0.2, %v3830_v26  ;;  %v4179_v5 = vsel %vm4051_vm2, %v3827_v50, %v4115_v8 }
 0x400   :  { %v4180_v49 = vsel %vm4052_vm3, %v3830_v26, %v4116_v9  ;;  %4946 = vmatmul.mubr.bf16.vlgmr.msra.gmra.mrb[32].mxu1 %v4234_v34 }
 0x401   :  { %v4238_v0 = vpack.c.bf16 %v4180_v49, %v4179_v5  ;;  %v3834_v47 = vpop.f32.mrb[184].mxu1  ;;  %4949 = vmatprep.mubr.bf16.mxu1 %v4235_v6 }
 0x402   :  { %v3835_v15 = vadd.f32 %v7797_v21, %v3834_v47  ;;  %v3836_v22 = vpop.f32.mrb[185].mxu1 }
 0x403   :  { %v3837_v33 = vpop.f32.mrb[186].mxu1 }
 0x404   :  { %v4117_v63 = vmul.f32 0.2, %v3835_v15  ;;  %v3838_v3 = vadd.f32 %v7797_v21, %v3837_v33  ;;  %v3839_v30 = vpop.f32.mrb[187].mxu1  ;;  %vm4053_vm4 = vcmp.gt.f32.partialorder %v3835_v15, 0.0 }
 0x406   :  { %vm4054_vm5 = vcmp.gt.f32.partialorder %v3838_v3, 0.0  ;;  %v4118_v4 = vmul.f32 0.2, %v3838_v3  ;;  %v4181_v60 = vsel %vm4053_vm4, %v3835_v15, %v4117_v63 }
 0x408   :  { %v4182_v10 = vsel %vm4054_vm5, %v3838_v3, %v4118_v4  ;;  %4950 = vmatmul.mubr.bf16.gmra.mrb[36].mxu1 %v4236_v35 }
 0x409   :  { %v3842_v55 = vpop.f32.mrb[188].mxu1  ;;  %v4239_v25 = vpack.c.bf16 %v4182_v10, %v4181_v60  ;;  %4953 = vmatprep.mubr.bf16.mxu1 %v4237_v39 }
 0x40a   :  { %v3843_v32 = vadd.f32 %v7797_v21, %v3842_v55  ;;  %v3844_v41 = vpop.f32.mrb[189].mxu1 }
 0x40b   :  { %v3845_v62 = vpop.f32.mrb[190].mxu1 }
 0x40c   :  { %v4119_v61 = vmul.f32 0.2, %v3843_v32  ;;  %v3846_v34 = vadd.f32 %v7797_v21, %v3845_v62  ;;  %v3847_v23 = vpop.f32.mrb[191].mxu1  ;;  %vm4055_vm6 = vcmp.gt.f32.partialorder %v3843_v32, 0.0 }
 0x40e   :  { %vm4056_vm7 = vcmp.gt.f32.partialorder %v3846_v34, 0.0  ;;  %v4120_v38 = vmul.f32 0.2, %v3846_v34  ;;  %v4183_v13 = vsel %vm4055_vm6, %v3843_v32, %v4119_v61 }
 0x410   :  { %v4184_v6 = vsel %vm4056_vm7, %v3846_v34, %v4120_v38  ;;  %4954 = vmatmul.mubr.bf16.gmra.mrb[40].mxu1 %v4238_v0 }
 0x411   :  { %v4240_v45 = vpack.c.bf16 %v4184_v6, %v4183_v13  ;;  %v3850_v16 = vpop.f32.mrb[192].mxu1  ;;  %4957 = vmatprep.mubr.bf16.mxu1 %v4239_v25 }
 0x412   :  { %v3851_v40 = vadd.f32 %v7797_v21, %v3850_v16  ;;  %v3852_v24 = vpop.f32.mrb[193].mxu1 }
 0x413   :  { %v3853_v17 = vpop.f32.mrb[194].mxu1 }
 0x414   :  { %v4121_v12 = vmul.f32 0.2, %v3851_v40  ;;  %v3854_v19 = vadd.f32 %v7797_v21, %v3853_v17  ;;  %v3855_v18 = vpop.f32.mrb[195].mxu1  ;;  %vm4057_vm8 = vcmp.gt.f32.partialorder %v3851_v40, 0.0 }
 0x416   :  { %vm4058_vm9 = vcmp.gt.f32.partialorder %v3854_v19, 0.0  ;;  %v4122_v42 = vmul.f32 0.2, %v3854_v19  ;;  %v4185_v1 = vsel %vm4057_vm8, %v3851_v40, %v4121_v12 }
 0x418   :  { %v4186_v59 = vsel %vm4058_vm9, %v3854_v19, %v4122_v42  ;;  %4958 = vmatmul.mubr.bf16.gmra.mrb[44].mxu1 %v4240_v45 }
 0x419   :  { %v3858_v58 = vpop.f32.mrb[196].mxu1  ;;  %v4241_v56 = vpack.c.bf16 %v4186_v59, %v4185_v1 }
 0x41a   :  { %v3859_v57 = vadd.f32 %v7797_v21, %v3858_v58  ;;  %v3860_v31 = vpop.f32.mrb[197].mxu1 }
 0x41b   :  { %v3861_v36 = vpop.f32.mrb[198].mxu1  ;;  %4961 = vmatprep.mubr.bf16.mxu1 %v4241_v56 }
 0x41c   :  { %v4123_v35 = vmul.f32 0.2, %v3859_v57  ;;  %v3862_v52 = vadd.f32 %v7797_v21, %v3861_v36  ;;  %v3863_v20 = vpop.f32.mrb[199].mxu1  ;;  %vm4059_vm10 = vcmp.gt.f32.partialorder %v3859_v57, 0.0 }
 0x41e   :  { %vm4060_vm11 = vcmp.gt.f32.partialorder %v3862_v52, 0.0  ;;  %v4124_v51 = vmul.f32 0.2, %v3862_v52  ;;  %v4187_v29 = vsel %vm4059_vm10, %v3859_v57, %v4123_v35 }
 0x420   :  { %v4188_v7 = vsel %vm4060_vm11, %v3862_v52, %v4124_v51 }
 0x421   :  { %v4242_v46 = vpack.c.bf16 %v4188_v7, %v4187_v29  ;;  %v3866_v2 = vpop.f32.mrb[200].mxu1 }
 0x422   :  { %v3867_v27 = vadd.f32 %v7797_v21, %v3866_v2  ;;  %v3868_v48 = vpop.f32.mrb[201].mxu1 }
 0x423   :  { %v3869_v43 = vpop.f32.mrb[202].mxu1  ;;  %4962 = vmatmul.mubr.bf16.gmra.mrb[48].mxu1 %v4242_v46 }
 0x424   :  { %v4125_v11 = vmul.f32 0.2, %v3867_v27  ;;  %v3870_v54 = vadd.f32 %v7797_v21, %v3869_v43  ;;  %v3871_v28 = vpop.f32.mrb[203].mxu1  ;;  %vm4061_vm12 = vcmp.gt.f32.partialorder %v3867_v27, 0.0 }
 0x426   :  { %vm4062_vm0 = vcmp.gt.f32.partialorder %v3870_v54, 0.0  ;;  %v4126_v37 = vmul.f32 0.2, %v3870_v54  ;;  %v4189_v39 = vsel %vm4061_vm12, %v3867_v27, %v4125_v11 }
 0x428   :  { %v4190_v50 = vsel %vm4062_vm0, %v3870_v54, %v4126_v37 }
 0x429   :  { %v3874_v53 = vpop.f32.mrb[204].mxu1  ;;  %v4243_v44 = vpack.c.bf16 %v4190_v50, %v4189_v39 }
 0x42a   :  { %v3875_v8 = vadd.f32 %v7797_v21, %v3874_v53  ;;  %v3876_v26 = vpop.f32.mrb[205].mxu1 }
 0x42b   :  { %v3877_v14 = vpop.f32.mrb[206].mxu1  ;;  %4965 = vmatprep.mubr.bf16.mxu1 %v4243_v44 }
 0x42c   :  { %v4127_v9 = vmul.f32 0.2, %v3875_v8  ;;  %v3878_v5 = vadd.f32 %v7797_v21, %v3877_v14  ;;  %v3879_v49 = vpop.f32.mrb[207].mxu1  ;;  %vm4063_vm13 = vcmp.gt.f32.partialorder %v3875_v8, 0.0 }
 0x42e   :  { %vm4064_vm14 = vcmp.gt.f32.partialorder %v3878_v5, 0.0  ;;  %v4128_v0 = vmul.f32 0.2, %v3878_v5  ;;  %v4191_v47 = vsel %vm4063_vm13, %v3875_v8, %v4127_v9 }
 0x430   :  { %v4192_v15 = vsel %vm4064_vm14, %v3878_v5, %v4128_v0 }
 0x431   :  { %v4244_v22 = vpack.c.bf16 %v4192_v15, %v4191_v47  ;;  %v3882_v33 = vpop.f32.mrb[208].mxu1 }
 0x432   :  { %v3883_v63 = vadd.f32 %v7797_v21, %v3882_v33  ;;  %v3884_v3 = vpop.f32.mrb[209].mxu1 }
 0x433   :  { %v3885_v30 = vpop.f32.mrb[210].mxu1  ;;  %4966 = vmatmul.mubr.bf16.gmra.mrb[52].mxu1 %v4244_v22 }
 0x434   :  { %v4129_v4 = vmul.f32 0.2, %v3883_v63  ;;  %v3886_v60 = vadd.f32 %v7797_v21, %v3885_v30  ;;  %v3887_v10 = vpop.f32.mrb[211].mxu1  ;;  %vm4065_vm15 = vcmp.gt.f32.partialorder %v3883_v63, 0.0 }
 0x436   :  { %vm4066_vm1 = vcmp.gt.f32.partialorder %v3886_v60, 0.0  ;;  %v4130_v55 = vmul.f32 0.2, %v3886_v60  ;;  %v4193_v25 = vsel %vm4065_vm15, %v3883_v63, %v4129_v4 }
 0x438   :  { %v4194_v32 = vsel %vm4066_vm1, %v3886_v60, %v4130_v55 }
 0x439   :  { %v3890_v41 = vpop.f32.mrb[212].mxu1  ;;  %v4245_v62 = vpack.c.bf16 %v4194_v32, %v4193_v25 }
 0x43a   :  { %v3891_v61 = vadd.f32 %v7797_v21, %v3890_v41  ;;  %v3892_v34 = vpop.f32.mrb[213].mxu1 }
 0x43b   :  { %v3893_v23 = vpop.f32.mrb[214].mxu1  ;;  %4969 = vmatprep.mubr.bf16.mxu1 %v4245_v62 }
 0x43c   :  { %v4131_v38 = vmul.f32 0.2, %v3891_v61  ;;  %v3894_v13 = vadd.f32 %v7797_v21, %v3893_v23  ;;  %v3895_v6 = vpop.f32.mrb[215].mxu1  ;;  %vm4067_vm2 = vcmp.gt.f32.partialorder %v3891_v61, 0.0 }
 0x43e   :  { %vm4068_vm3 = vcmp.gt.f32.partialorder %v3894_v13, 0.0  ;;  %v4132_v45 = vmul.f32 0.2, %v3894_v13  ;;  %v4195_v16 = vsel %vm4067_vm2, %v3891_v61, %v4131_v38 }
 0x440   :  { %v4196_v40 = vsel %vm4068_vm3, %v3894_v13, %v4132_v45 }
 0x441   :  { %v4246_v24 = vpack.c.bf16 %v4196_v40, %v4195_v16  ;;  %v3898_v17 = vpop.f32.mrb[216].mxu1 }
 0x442   :  { %v3899_v12 = vadd.f32 %v7797_v21, %v3898_v17  ;;  %v3900_v19 = vpop.f32.mrb[217].mxu1 }
 0x443   :  { %v3901_v18 = vpop.f32.mrb[218].mxu1  ;;  %4970 = vmatmul.mubr.bf16.gmra.mrb[56].mxu1 %v4246_v24 }
 0x444   :  { %v4133_v42 = vmul.f32 0.2, %v3899_v12  ;;  %v3902_v1 = vadd.f32 %v7797_v21, %v3901_v18  ;;  %v3903_v59 = vpop.f32.mrb[219].mxu1  ;;  %vm4069_vm4 = vcmp.gt.f32.partialorder %v3899_v12, 0.0 }
 0x446   :  { %vm4070_vm5 = vcmp.gt.f32.partialorder %v3902_v1, 0.0  ;;  %v4134_v58 = vmul.f32 0.2, %v3902_v1  ;;  %v4197_v56 = vsel %vm4069_vm4, %v3899_v12, %v4133_v42 }
 0x448   :  { %v4198_v57 = vsel %vm4070_vm5, %v3902_v1, %v4134_v58 }
 0x449   :  { %v3906_v31 = vpop.f32.mrb[220].mxu1  ;;  %v4247_v36 = vpack.c.bf16 %v4198_v57, %v4197_v56 }
 0x44a   :  { %v3907_v35 = vadd.f32 %v7797_v21, %v3906_v31  ;;  %v3908_v52 = vpop.f32.mrb[221].mxu1 }
 0x44b   :  { %v3909_v20 = vpop.f32.mrb[222].mxu1  ;;  %4973 = vmatprep.mubr.bf16.mxu1 %v4247_v36 }
 0x44c   :  { %v4135_v51 = vmul.f32 0.2, %v3907_v35  ;;  %v3910_v29 = vadd.f32 %v7797_v21, %v3909_v20  ;;  %v3911_v7 = vpop.f32.mrb[223].mxu1  ;;  %vm4071_vm6 = vcmp.gt.f32.partialorder %v3907_v35, 0.0 }
 0x44e   :  { %vm4072_vm7 = vcmp.gt.f32.partialorder %v3910_v29, 0.0  ;;  %v4136_v46 = vmul.f32 0.2, %v3910_v29  ;;  %v4199_v2 = vsel %vm4071_vm6, %v3907_v35, %v4135_v51 }
 0x450   :  { %v4200_v27 = vsel %vm4072_vm7, %v3910_v29, %v4136_v46 }
 0x451   :  { %v4248_v48 = vpack.c.bf16 %v4200_v27, %v4199_v2  ;;  %v3914_v43 = vpop.f32.mrb[224].mxu1 }
 0x452   :  { %v3915_v11 = vadd.f32 %v7797_v21, %v3914_v43  ;;  %v3916_v54 = vpop.f32.mrb[225].mxu1 }
 0x453   :  { %v3917_v28 = vpop.f32.mrb[226].mxu1  ;;  %4974 = vmatmul.mubr.bf16.gmra.mrb[60].mxu1 %v4248_v48 }
 0x454   :  { %v4137_v37 = vmul.f32 0.2, %v3915_v11  ;;  %v3918_v39 = vadd.f32 %v7797_v21, %v3917_v28  ;;  %v3919_v50 = vpop.f32.mrb[227].mxu1  ;;  %vm4073_vm8 = vcmp.gt.f32.partialorder %v3915_v11, 0.0 }
 0x456   :  { %vm4074_vm9 = vcmp.gt.f32.partialorder %v3918_v39, 0.0  ;;  %v4138_v53 = vmul.f32 0.2, %v3918_v39  ;;  %v4201_v44 = vsel %vm4073_vm8, %v3915_v11, %v4137_v37 }
 0x458   :  { %v4202_v8 = vsel %vm4074_vm9, %v3918_v39, %v4138_v53 }
 0x459   :  { %v3922_v26 = vpop.f32.mrb[228].mxu1  ;;  %v4249_v14 = vpack.c.bf16 %v4202_v8, %v4201_v44 }
 0x45a   :  { %v3923_v9 = vadd.f32 %v7797_v21, %v3922_v26  ;;  %v3924_v5 = vpop.f32.mrb[229].mxu1 }
 0x45b   :  { %v3925_v49 = vpop.f32.mrb[230].mxu1  ;;  %4977 = vmatprep.mubr.bf16.mxu1 %v4249_v14 }
 0x45c   :  { %v4139_v0 = vmul.f32 0.2, %v3923_v9  ;;  %v3926_v47 = vadd.f32 %v7797_v21, %v3925_v49  ;;  %v3927_v15 = vpop.f32.mrb[231].mxu1  ;;  %vm4075_vm10 = vcmp.gt.f32.partialorder %v3923_v9, 0.0 }
 0x45e   :  { %vm4076_vm11 = vcmp.gt.f32.partialorder %v3926_v47, 0.0  ;;  %v4140_v22 = vmul.f32 0.2, %v3926_v47  ;;  %v4203_v33 = vsel %vm4075_vm10, %v3923_v9, %v4139_v0 }
 0x460   :  { %v4204_v63 = vsel %vm4076_vm11, %v3926_v47, %v4140_v22 }
 0x461   :  { %v4250_v3 = vpack.c.bf16 %v4204_v63, %v4203_v33  ;;  %v3930_v30 = vpop.f32.mrb[232].mxu1 }
 0x462   :  { %v3931_v4 = vadd.f32 %v7797_v21, %v3930_v30  ;;  %v3932_v60 = vpop.f32.mrb[233].mxu1 }
 0x463   :  { %v3933_v10 = vpop.f32.mrb[234].mxu1  ;;  %4978 = vmatmul.mubr.bf16.gmra.mrb[64].mxu1 %v4250_v3 }
 0x464   :  { %v4141_v55 = vmul.f32 0.2, %v3931_v4  ;;  %v3934_v25 = vadd.f32 %v7797_v21, %v3933_v10  ;;  %v3935_v32 = vpop.f32.mrb[235].mxu1  ;;  %vm4077_vm12 = vcmp.gt.f32.partialorder %v3931_v4, 0.0 }
 0x466   :  { %vm4078_vm0 = vcmp.gt.f32.partialorder %v3934_v25, 0.0  ;;  %v4142_v41 = vmul.f32 0.2, %v3934_v25  ;;  %v4205_v62 = vsel %vm4077_vm12, %v3931_v4, %v4141_v55 }
 0x468   :  { %v4206_v61 = vsel %vm4078_vm0, %v3934_v25, %v4142_v41 }
 0x469   :  { %v3938_v34 = vpop.f32.mrb[236].mxu1  ;;  %v4251_v23 = vpack.c.bf16 %v4206_v61, %v4205_v62 }
 0x46a   :  { %v3939_v38 = vadd.f32 %v7797_v21, %v3938_v34  ;;  %v3940_v13 = vpop.f32.mrb[237].mxu1 }
 0x46b   :  { %v3941_v6 = vpop.f32.mrb[238].mxu1  ;;  %4981 = vmatprep.mubr.bf16.mxu1 %v4251_v23 }
 0x46c   :  { %v4143_v45 = vmul.f32 0.2, %v3939_v38  ;;  %v3942_v16 = vadd.f32 %v7797_v21, %v3941_v6  ;;  %v3943_v40 = vpop.f32.mrb[239].mxu1  ;;  %vm4079_vm13 = vcmp.gt.f32.partialorder %v3939_v38, 0.0 }
 0x46e   :  { %vm4080_vm14 = vcmp.gt.f32.partialorder %v3942_v16, 0.0  ;;  %v4144_v24 = vmul.f32 0.2, %v3942_v16  ;;  %v4207_v17 = vsel %vm4079_vm13, %v3939_v38, %v4143_v45 }
 0x470   :  { %v4208_v12 = vsel %vm4080_vm14, %v3942_v16, %v4144_v24 }
 0x471   :  { %v4252_v19 = vpack.c.bf16 %v4208_v12, %v4207_v17  ;;  %v3946_v18 = vpop.f32.mrb[240].mxu1 }
 0x472   :  { %v3947_v42 = vadd.f32 %v7797_v21, %v3946_v18  ;;  %v3948_v1 = vpop.f32.mrb[241].mxu1 }
 0x473   :  { %v3949_v59 = vpop.f32.mrb[242].mxu1  ;;  %4982 = vmatmul.mubr.bf16.gmra.mrb[68].mxu1 %v4252_v19 }
 0x474   :  { %v4145_v58 = vmul.f32 0.2, %v3947_v42  ;;  %v3950_v56 = vadd.f32 %v7797_v21, %v3949_v59  ;;  %v3951_v57 = vpop.f32.mrb[243].mxu1  ;;  %vm4081_vm15 = vcmp.gt.f32.partialorder %v3947_v42, 0.0 }
 0x476   :  { %vm4082_vm1 = vcmp.gt.f32.partialorder %v3950_v56, 0.0  ;;  %v4146_v31 = vmul.f32 0.2, %v3950_v56  ;;  %v4209_v36 = vsel %vm4081_vm15, %v3947_v42, %v4145_v58 }
 0x478   :  { %v4210_v35 = vsel %vm4082_vm1, %v3950_v56, %v4146_v31 }
 0x479   :  { %v3954_v52 = vpop.f32.mrb[244].mxu1  ;;  %v4253_v20 = vpack.c.bf16 %v4210_v35, %v4209_v36 }
 0x47a   :  { %v3955_v51 = vadd.f32 %v7797_v21, %v3954_v52  ;;  %v3956_v29 = vpop.f32.mrb[245].mxu1 }
 0x47b   :  { %v3957_v7 = vpop.f32.mrb[246].mxu1  ;;  %4985 = vmatprep.mubr.bf16.mxu1 %v4253_v20 }
 0x47c   :  { %v4147_v46 = vmul.f32 0.2, %v3955_v51  ;;  %v3958_v2 = vadd.f32 %v7797_v21, %v3957_v7  ;;  %v3959_v27 = vpop.f32.mrb[247].mxu1  ;;  %vm4083_vm2 = vcmp.gt.f32.partialorder %v3955_v51, 0.0 }
 0x47e   :  { %vm4084_vm3 = vcmp.gt.f32.partialorder %v3958_v2, 0.0  ;;  %v4148_v48 = vmul.f32 0.2, %v3958_v2  ;;  %v4211_v43 = vsel %vm4083_vm2, %v3955_v51, %v4147_v46 }
 0x480   :  { %v4212_v11 = vsel %vm4084_vm3, %v3958_v2, %v4148_v48 }
 0x481   :  { %v4254_v54 = vpack.c.bf16 %v4212_v11, %v4211_v43  ;;  %v3962_v28 = vpop.f32.mrb[248].mxu1 }
 0x482   :  { %v3963_v37 = vadd.f32 %v7797_v21, %v3962_v28  ;;  %v3964_v39 = vpop.f32.mrb[249].mxu1 }
 0x483   :  { %v3965_v50 = vpop.f32.mrb[250].mxu1  ;;  %4986 = vmatmul.mubr.bf16.gmra.mrb[72].mxu1 %v4254_v54 }
 0x484   :  { %v4149_v53 = vmul.f32 0.2, %v3963_v37  ;;  %v3966_v44 = vadd.f32 %v7797_v21, %v3965_v50  ;;  %v3967_v8 = vpop.f32.mrb[251].mxu1  ;;  %vm4085_vm4 = vcmp.gt.f32.partialorder %v3963_v37, 0.0 }
 0x486   :  { %vm4086_vm5 = vcmp.gt.f32.partialorder %v3966_v44, 0.0  ;;  %v4150_v26 = vmul.f32 0.2, %v3966_v44  ;;  %v4213_v14 = vsel %vm4085_vm4, %v3963_v37, %v4149_v53 }
 0x488   :  { %v4214_v9 = vsel %vm4086_vm5, %v3966_v44, %v4150_v26 }
 0x489   :  { %v3970_v5 = vpop.f32.mrb[252].mxu1  ;;  %v4255_v49 = vpack.c.bf16 %v4214_v9, %v4213_v14 }
 0x48a   :  { %v3971_v0 = vadd.f32 %v7797_v21, %v3970_v5  ;;  %v3972_v47 = vpop.f32.mrb[253].mxu1 }
 0x48b   :  { %v3973_v15 = vpop.f32.mrb[254].mxu1  ;;  %4989 = vmatprep.mubr.bf16.mxu1 %v4255_v49 }
 0x48c   :  { %v4151_v22 = vmul.f32 0.2, %v3971_v0  ;;  %v3974_v33 = vadd.f32 %v7797_v21, %v3973_v15  ;;  %v3975_v63 = vpop.f32.mrb[255].mxu1  ;;  %vm4087_vm6 = vcmp.gt.f32.partialorder %v3971_v0, 0.0 }
 0x48e   :  { %vm4088_vm7 = vcmp.gt.f32.partialorder %v3974_v33, 0.0  ;;  %v4152_v3 = vmul.f32 0.2, %v3974_v33  ;;  %v4215_v30 = vsel %vm4087_vm6, %v3971_v0, %v4151_v22  ;;  %v5450_v22 = vld [vmem:[%s8177_s6] ss:$0 sm:$0xff] }
 0x490   :  { %v4216_v4 = vsel %vm4088_vm7, %v3974_v33, %v4152_v3 }
 0x491   :  { %v4256_v60 = vpack.c.bf16 %v4216_v4, %v4215_v30  ;;  %v3978_v10 = vpop.f32.mrb[0].mxu1 }
 0x492   :  { %v3979_v55 = vadd.f32 %v7797_v21, %v3978_v10  ;;  %v3980_v25 = vpop.f32.mrb[1].mxu1 }
 0x493   :  { %v3981_v32 = vpop.f32.mrb[2].mxu1  ;;  %4990 = vmatmul.mubr.bf16.gmra.mrb[76].mxu1 %v4256_v60 }
 0x494   :  { %v4153_v41 = vmul.f32 0.2, %v3979_v55  ;;  %v3982_v62 = vadd.f32 %v7797_v21, %v3981_v32  ;;  %v3983_v61 = vpop.f32.mrb[3].mxu1  ;;  %vm4089_vm8 = vcmp.gt.f32.partialorder %v3979_v55, 0.0 }
 0x496   :  { %vm4090_vm9 = vcmp.gt.f32.partialorder %v3982_v62, 0.0  ;;  %v4154_v34 = vmul.f32 0.2, %v3982_v62  ;;  %v4217_v23 = vsel %vm4089_vm8, %v3979_v55, %v4153_v41 }
 0x498   :  { %v4218_v38 = vsel %vm4090_vm9, %v3982_v62, %v4154_v34 }
 0x499   :  { %v3986_v13 = vpop.f32.mrb[4].mxu1  ;;  %v4257_v6 = vpack.c.bf16 %v4218_v38, %v4217_v23 }
 0x49a   :  { %v3987_v45 = vadd.f32 %v7797_v21, %v3986_v13  ;;  %v3988_v16 = vpop.f32.mrb[5].mxu1 }
 0x49b   :  { %v3989_v40 = vpop.f32.mrb[6].mxu1  ;;  %4993 = vmatprep.mubr.bf16.mxu1 %v4257_v6 }
 0x49c   :  { %v4155_v24 = vmul.f32 0.2, %v3987_v45  ;;  %v3990_v17 = vadd.f32 %v7797_v21, %v3989_v40  ;;  %v3991_v12 = vpop.f32.mrb[7].mxu1  ;;  %vm4091_vm10 = vcmp.gt.f32.partialorder %v3987_v45, 0.0 }
 0x49e   :  { %vm4092_vm11 = vcmp.gt.f32.partialorder %v3990_v17, 0.0  ;;  %v4156_v19 = vmul.f32 0.2, %v3990_v17  ;;  %v4219_v18 = vsel %vm4091_vm10, %v3987_v45, %v4155_v24 }
 0x4a0   :  { %v4220_v42 = vsel %vm4092_vm11, %v3990_v17, %v4156_v19 }
 0x4a1   :  { %v4258_v1 = vpack.c.bf16 %v4220_v42, %v4219_v18  ;;  %v3994_v59 = vpop.f32.mrb[8].mxu1 }
 0x4a2   :  { %v3995_v58 = vadd.f32 %v7797_v21, %v3994_v59  ;;  %v3996_v56 = vpop.f32.mrb[9].mxu1  ;;  %v7913_v59 = vld [vmem:[%s8179_s8] ss:$0 sm:$0xff] }
 0x4a3   :  { %v3997_v57 = vpop.f32.mrb[10].mxu1  ;;  %4994 = vmatmul.mubr.bf16.gmra.mrb[80].mxu1 %v4258_v1 }
 0x4a4   :  { %v4157_v31 = vmul.f32 0.2, %v3995_v58  ;;  %v3998_v36 = vadd.f32 %v7797_v21, %v3997_v57  ;;  %v3999_v35 = vpop.f32.mrb[11].mxu1  ;;  %vm4093_vm12 = vcmp.gt.f32.partialorder %v3995_v58, 0.0 }
 0x4a6   :  { %vm4094_vm0 = vcmp.gt.f32.partialorder %v3998_v36, 0.0  ;;  %v4158_v52 = vmul.f32 0.2, %v3998_v36  ;;  %v4221_v20 = vsel %vm4093_vm12, %v3995_v58, %v4157_v31 }
 0x4a8   :  { %v4222_v51 = vsel %vm4094_vm0, %v3998_v36, %v4158_v52 }
 0x4a9   :  { %v4002_v29 = vpop.f32.mrb[12].mxu1  ;;  %v4259_v7 = vpack.c.bf16 %v4222_v51, %v4221_v20 }
 0x4aa   :  { %v4003_v46 = vadd.f32 %v7797_v21, %v4002_v29  ;;  %v4004_v2 = vpop.f32.mrb[13].mxu1 }
 0x4ab   :  { %v4005_v27 = vpop.f32.mrb[14].mxu1  ;;  %4997 = vmatprep.mubr.bf16.mxu1 %v4259_v7 }
 0x4ac   :  { %v4159_v48 = vmul.f32 0.2, %v4003_v46  ;;  %v4006_v43 = vadd.f32 %v7797_v21, %v4005_v27  ;;  %v4007_v11 = vpop.f32.mrb[15].mxu1  ;;  %vm4095_vm13 = vcmp.gt.f32.partialorder %v4003_v46, 0.0 }
 0x4ae   :  { %vm4096_vm14 = vcmp.gt.f32.partialorder %v4006_v43, 0.0  ;;  %v4160_v54 = vmul.f32 0.2, %v4006_v43  ;;  %v4223_v28 = vsel %vm4095_vm13, %v4003_v46, %v4159_v48 }
 0x4b0   :  { %v4224_v37 = vsel %vm4096_vm14, %v4006_v43, %v4160_v54 }
 0x4b1   :  { %v4260_v39 = vpack.c.bf16 %v4224_v37, %v4223_v28  ;;  %v4010_v50 = vpop.f32.mrb[16].mxu1 }
 0x4b2   :  { %v4011_v53 = vadd.f32 %v7797_v21, %v4010_v50  ;;  %v4012_v44 = vpop.f32.mrb[17].mxu1 }
 0x4b3   :  { %4998 = vmatmul.mubr.bf16.gmra.mrb[84].mxu1 %v4260_v39  ;;  %v4013_v8 = vpop.f32.mrb[18].mxu1 }
 0x4b4   :  { %v4161_v26 = vmul.f32 0.2, %v4011_v53  ;;  %v4014_v14 = vadd.f32 %v7797_v21, %v4013_v8  ;;  %v4015_v9 = vpop.f32.mrb[19].mxu1  ;;  %vm4097_vm15 = vcmp.gt.f32.partialorder %v4011_v53, 0.0 }
 0x4b6   :  { %vm4098_vm1 = vcmp.gt.f32.partialorder %v4014_v14, 0.0  ;;  %v4162_v5 = vmul.f32 0.2, %v4014_v14  ;;  %v4225_v49 = vsel %vm4097_vm15, %v4011_v53, %v4161_v26 }
 0x4b8   :  { %v4226_v0 = vsel %vm4098_vm1, %v4014_v14, %v4162_v5 }
 0x4b9   :  { %v4261_v47 = vpack.c.bf16 %v4226_v0, %v4225_v49  ;;  %v4018_v15 = vpop.f32.mrb[20].mxu1 }
 0x4ba   :  { %v4019_v33 = vadd.f32 %v5450_v22, %v4018_v15  ;;  %v4020_v63 = vpop.f32.mrb[21].mxu1 }
 0x4bb   :  { %5001 = vmatprep.mubr.bf16.mxu1 %v4261_v47  ;;  %v4021_v3 = vpop.f32.mrb[22].mxu1 }
 0x4bc   :  { %v4163_v30 = vmul.f32 0.2, %v4019_v33  ;;  %v4022_v4 = vadd.f32 %v5450_v22, %v4021_v3  ;;  %v4023_v60 = vpop.f32.mrb[23].mxu1  ;;  %vm4099_vm2 = vcmp.gt.f32.partialorder %v4019_v33, 0.0 }
 0x4be   :  { %vm4100_vm3 = vcmp.gt.f32.partialorder %v4022_v4, 0.0  ;;  %v4164_v21 = vmul.f32 0.2, %v4022_v4  ;;  %v4227_v10 = vsel %vm4099_vm2, %v4019_v33, %v4163_v30 }
 0x4c0   :  { %v4228_v55 = vsel %vm4100_vm3, %v4022_v4, %v4164_v21 }
 0x4c1   :  { %v4262_v25 = vpack.c.bf16 %v4228_v55, %v4227_v10 }
 0x4c3   :  { %v4026_v32 = vpop.f32.mrb[24].mxu1  ;;  %5002 = vmatmul.mubr.bf16.gmra.mrb[88].mxu1 %v4262_v25 }
 0x4c4   :  { %v4027_v41 = vadd.f32 %v5450_v22, %v4026_v32  ;;  %v4028_v62 = vpop.f32.mrb[25].mxu1 }
 0x4c5   :  { %v4029_v61 = vpop.f32.mrb[26].mxu1 }
 0x4c6   :  { %v4165_v34 = vmul.f32 0.2, %v4027_v41  ;;  %v4030_v23 = vadd.f32 %v5450_v22, %v4029_v61  ;;  %v4031_v38 = vpop.f32.mrb[27].mxu1  ;;  %vm4101_vm4 = vcmp.gt.f32.partialorder %v4027_v41, 0.0 }
 0x4c8   :  { %vm4102_vm5 = vcmp.gt.f32.partialorder %v4030_v23, 0.0  ;;  %v4166_v13 = vmul.f32 0.2, %v4030_v23  ;;  %v4229_v6 = vsel %vm4101_vm4, %v4027_v41, %v4165_v34 }
 0x4ca   :  { %v4230_v45 = vsel %vm4102_vm5, %v4030_v23, %v4166_v13 }
 0x4cb   :  { %v4034_v16 = vpop.f32.mrb[28].mxu1  ;;  %v4263_v40 = vpack.c.bf16 %v4230_v45, %v4229_v6 }
 0x4cc   :  { %v4035_v24 = vadd.f32 %v5450_v22, %v4034_v16  ;;  %v4036_v17 = vpop.f32.mrb[29].mxu1 }
 0x4cd   :  { %v4037_v12 = vpop.f32.mrb[30].mxu1  ;;  %5005 = vmatprep.mubr.bf16.mxu1 %v4263_v40 }
 0x4ce   :  { %v4167_v19 = vmul.f32 0.2, %v4035_v24  ;;  %v4038_v18 = vadd.f32 %v5450_v22, %v4037_v12  ;;  %v4039_v42 = vpop.f32.mrb[31].mxu1  ;;  %vm4103_vm6 = vcmp.gt.f32.partialorder %v4035_v24, 0.0 }
 0x4d0   :  { %vm4104_vm7 = vcmp.gt.f32.partialorder %v4038_v18, 0.0  ;;  %v4168_v1 = vmul.f32 0.2, %v4038_v18  ;;  %v4231_v58 = vsel %vm4103_vm6, %v4035_v24, %v4167_v19 }
 0x4d2   :  { %v4232_v56 = vsel %vm4104_vm7, %v4038_v18, %v4168_v1 }
 0x4d3   :  { %v4264_v57 = vpack.c.bf16 %v4232_v56, %v4231_v58  ;;  %v4947_v31 = vpop.f32.mrb[32].mxu1 }
 0x4d4   :  { %v4379_v36 = vadd.f32 %v4947_v31, %v7913_v59  ;;  %v4370_v35 = vpop.f32.mrb[33].mxu1 }
 0x4d5   :  { %v4371_v52 = vadd.f32 %v7913_v59, %v4370_v35  ;;  %v4948_v20 = vpop.f32.mrb[34].mxu1  ;;  %5006 = vmatmul.mubr.bf16.gmra.mrb[92].mxu1 %v4264_v57 }
 0x4d6   :  { %4627 = vst [vmem:[%s8180_s9 + $0x10] sm:$0xff] %v4379_v36  ;;  %v4382_v51 = vadd.f32 %v4948_v20, %v7913_v59  ;;  %v4373_v29 = vpop.f32.mrb[35].mxu1 }
 0x4d7   :  { %4625 = vst [vmem:[%s8180_s9] sm:$0xff] %v4371_v52  ;;  %v4374_v7 = vadd.f32 %v7913_v59, %v4373_v29 }
 0x4d8   :  { %4628 = vst [vmem:[%s8180_s9 + $0x18] sm:$0xff] %v4382_v51 }
 0x4d9   :  { %4626 = vst [vmem:[%s8180_s9 + $0x8] sm:$0xff] %v4374_v7 }
 0x4db   :  { %v4951_v46 = vpop.f32.mrb[36].mxu1 }
 0x4dc   :  { %v4395_v2 = vadd.f32 %v4951_v46, %v7913_v59  ;;  %v4386_v27 = vpop.f32.mrb[37].mxu1 }
 0x4dd   :  { %v4387_v48 = vadd.f32 %v7913_v59, %v4386_v27  ;;  %v4952_v43 = vpop.f32.mrb[38].mxu1 }
 0x4de   :  { %4631 = vst [vmem:[%s8180_s9 + $0x30] sm:$0xff] %v4395_v2  ;;  %v4398_v11 = vadd.f32 %v4952_v43, %v7913_v59  ;;  %v4389_v54 = vpop.f32.mrb[39].mxu1 }
 0x4df   :  { %4629 = vst [vmem:[%s8180_s9 + $0x20] sm:$0xff] %v4387_v48  ;;  %v4390_v28 = vadd.f32 %v7913_v59, %v4389_v54 }
 0x4e0   :  { %4632 = vst [vmem:[%s8180_s9 + $0x38] sm:$0xff] %v4398_v11 }
 0x4e1   :  { %4630 = vst [vmem:[%s8180_s9 + $0x28] sm:$0xff] %v4390_v28 }
 0x4e3   :  { %v4955_v37 = vpop.f32.mrb[40].mxu1 }
 0x4e4   :  { %v4411_v39 = vadd.f32 %v4955_v37, %v7913_v59  ;;  %v4402_v50 = vpop.f32.mrb[41].mxu1 }
 0x4e5   :  { %v4403_v53 = vadd.f32 %v7913_v59, %v4402_v50  ;;  %v4956_v44 = vpop.f32.mrb[42].mxu1 }
 0x4e6   :  { %4635 = vst [vmem:[%s8180_s9 + $0x50] sm:$0xff] %v4411_v39  ;;  %v4414_v8 = vadd.f32 %v4956_v44, %v7913_v59  ;;  %v4405_v26 = vpop.f32.mrb[43].mxu1 }
 0x4e7   :  { %4633 = vst [vmem:[%s8180_s9 + $0x40] sm:$0xff] %v4403_v53  ;;  %v4406_v14 = vadd.f32 %v7913_v59, %v4405_v26 }
 0x4e8   :  { %4636 = vst [vmem:[%s8180_s9 + $0x58] sm:$0xff] %v4414_v8 }
 0x4e9   :  { %4634 = vst [vmem:[%s8180_s9 + $0x48] sm:$0xff] %v4406_v14 }
 0x4eb   :  { %v4959_v9 = vpop.f32.mrb[44].mxu1 }
 0x4ec   :  { %v4427_v5 = vadd.f32 %v4959_v9, %v7913_v59  ;;  %v4418_v49 = vpop.f32.mrb[45].mxu1 }
 0x4ed   :  { %v4419_v0 = vadd.f32 %v7913_v59, %v4418_v49  ;;  %v4960_v47 = vpop.f32.mrb[46].mxu1 }
 0x4ee   :  { %4639 = vst [vmem:[%s8180_s9 + $0x70] sm:$0xff] %v4427_v5  ;;  %v4430_v15 = vadd.f32 %v4960_v47, %v7913_v59  ;;  %v4421_v22 = vpop.f32.mrb[47].mxu1 }
 0x4ef   :  { %4637 = vst [vmem:[%s8180_s9 + $0x60] sm:$0xff] %v4419_v0  ;;  %v4422_v33 = vadd.f32 %v7913_v59, %v4421_v22 }
 0x4f0   :  { %4640 = vst [vmem:[%s8180_s9 + $0x78] sm:$0xff] %v4430_v15 }
 0x4f1   :  { %4638 = vst [vmem:[%s8180_s9 + $0x68] sm:$0xff] %v4422_v33 }
 0x4f6   :  { %v4963_v63 = vpop.f32.mrb[48].mxu1 }
 0x4f7   :  { %v4443_v3 = vadd.f32 %v4963_v63, %v7913_v59  ;;  %v4434_v30 = vpop.f32.mrb[49].mxu1 }
 0x4f8   :  { %v4435_v4 = vadd.f32 %v7913_v59, %v4434_v30  ;;  %v4964_v60 = vpop.f32.mrb[50].mxu1 }
 0x4f9   :  { %4643 = vst [vmem:[%s8180_s9 + $0x90] sm:$0xff] %v4443_v3  ;;  %v4446_v21 = vadd.f32 %v4964_v60, %v7913_v59  ;;  %v4437_v10 = vpop.f32.mrb[51].mxu1 }
 0x4fa   :  { %4641 = vst [vmem:[%s8180_s9 + $0x80] sm:$0xff] %v4435_v4  ;;  %v4438_v55 = vadd.f32 %v7913_v59, %v4437_v10 }
 0x4fb   :  { %4644 = vst [vmem:[%s8180_s9 + $0x98] sm:$0xff] %v4446_v21 }
 0x4fc   :  { %4642 = vst [vmem:[%s8180_s9 + $0x88] sm:$0xff] %v4438_v55 }
 0x506   :  { %v4967_v25 = vpop.f32.mrb[52].mxu1 }
 0x507   :  { %v4459_v32 = vadd.f32 %v4967_v25, %v7913_v59  ;;  %v4450_v41 = vpop.f32.mrb[53].mxu1 }
 0x508   :  { %v4451_v62 = vadd.f32 %v7913_v59, %v4450_v41  ;;  %v4968_v61 = vpop.f32.mrb[54].mxu1 }
 0x509   :  { %4647 = vst [vmem:[%s8180_s9 + $0xb0] sm:$0xff] %v4459_v32  ;;  %v4462_v34 = vadd.f32 %v4968_v61, %v7913_v59  ;;  %v4453_v23 = vpop.f32.mrb[55].mxu1 }
 0x50a   :  { %4645 = vst [vmem:[%s8180_s9 + $0xa0] sm:$0xff] %v4451_v62  ;;  %v4454_v38 = vadd.f32 %v7913_v59, %v4453_v23 }
 0x50b   :  { %4648 = vst [vmem:[%s8180_s9 + $0xb8] sm:$0xff] %v4462_v34 }
 0x50c   :  { %4646 = vst [vmem:[%s8180_s9 + $0xa8] sm:$0xff] %v4454_v38 }
 0x516   :  { %v4971_v13 = vpop.f32.mrb[56].mxu1 }
 0x517   :  { %v4475_v6 = vadd.f32 %v4971_v13, %v7913_v59  ;;  %v4466_v45 = vpop.f32.mrb[57].mxu1 }
 0x518   :  { %v4467_v16 = vadd.f32 %v7913_v59, %v4466_v45  ;;  %v4972_v40 = vpop.f32.mrb[58].mxu1 }
 0x519   :  { %4651 = vst [vmem:[%s8180_s9 + $0xd0] sm:$0xff] %v4475_v6  ;;  %v4478_v24 = vadd.f32 %v4972_v40, %v7913_v59  ;;  %v4469_v17 = vpop.f32.mrb[59].mxu1 }
 0x51a   :  { %4649 = vst [vmem:[%s8180_s9 + $0xc0] sm:$0xff] %v4467_v16  ;;  %v4470_v12 = vadd.f32 %v7913_v59, %v4469_v17 }
 0x51b   :  { %4652 = vst [vmem:[%s8180_s9 + $0xd8] sm:$0xff] %v4478_v24 }
 0x51c   :  { %4650 = vst [vmem:[%s8180_s9 + $0xc8] sm:$0xff] %v4470_v12 }
 0x526   :  { %v4975_v19 = vpop.f32.mrb[60].mxu1 }
 0x527   :  { %v4491_v18 = vadd.f32 %v4975_v19, %v7913_v59  ;;  %v4482_v42 = vpop.f32.mrb[61].mxu1 }
 0x528   :  { %v4483_v1 = vadd.f32 %v7913_v59, %v4482_v42  ;;  %v4976_v58 = vpop.f32.mrb[62].mxu1 }
 0x529   :  { %4655 = vst [vmem:[%s8180_s9 + $0xf0] sm:$0xff] %v4491_v18  ;;  %v4494_v56 = vadd.f32 %v4976_v58, %v7913_v59  ;;  %v4485_v57 = vpop.f32.mrb[63].mxu1 }
 0x52a   :  { %4653 = vst [vmem:[%s8180_s9 + $0xe0] sm:$0xff] %v4483_v1  ;;  %v4486_v31 = vadd.f32 %v7913_v59, %v4485_v57 }
 0x52b   :  { %4656 = vst [vmem:[%s8180_s9 + $0xf8] sm:$0xff] %v4494_v56 }
 0x52c   :  { %4654 = vst [vmem:[%s8180_s9 + $0xe8] sm:$0xff] %v4486_v31 }
 0x536   :  { %v4979_v36 = vpop.f32.mrb[64].mxu1 }
 0x537   :  { %v4507_v35 = vadd.f32 %v4979_v36, %v7913_v59  ;;  %v4498_v52 = vpop.f32.mrb[65].mxu1 }
 0x538   :  { %v4499_v20 = vadd.f32 %v7913_v59, %v4498_v52  ;;  %v4980_v51 = vpop.f32.mrb[66].mxu1 }
 0x539   :  { %4659 = vst [vmem:[%s8180_s9 + $0x110] sm:$0xff] %v4507_v35  ;;  %v4510_v29 = vadd.f32 %v4980_v51, %v7913_v59  ;;  %v4501_v7 = vpop.f32.mrb[67].mxu1 }
 0x53a   :  { %4657 = vst [vmem:[%s8180_s9 + $0x100] sm:$0xff] %v4499_v20  ;;  %v4502_v46 = vadd.f32 %v7913_v59, %v4501_v7 }
 0x53b   :  { %4660 = vst [vmem:[%s8180_s9 + $0x118] sm:$0xff] %v4510_v29 }
 0x53c   :  { %4658 = vst [vmem:[%s8180_s9 + $0x108] sm:$0xff] %v4502_v46 }
 0x546   :  { %v4983_v2 = vpop.f32.mrb[68].mxu1 }
 0x547   :  { %v4523_v27 = vadd.f32 %v4983_v2, %v7913_v59  ;;  %v4514_v48 = vpop.f32.mrb[69].mxu1 }
 0x548   :  { %v4515_v43 = vadd.f32 %v7913_v59, %v4514_v48  ;;  %v4984_v11 = vpop.f32.mrb[70].mxu1 }
 0x549   :  { %4663 = vst [vmem:[%s8180_s9 + $0x130] sm:$0xff] %v4523_v27  ;;  %v4526_v54 = vadd.f32 %v4984_v11, %v7913_v59  ;;  %v4517_v28 = vpop.f32.mrb[71].mxu1 }
 0x54a   :  { %4661 = vst [vmem:[%s8180_s9 + $0x120] sm:$0xff] %v4515_v43  ;;  %v4518_v37 = vadd.f32 %v7913_v59, %v4517_v28 }
 0x54b   :  { %4664 = vst [vmem:[%s8180_s9 + $0x138] sm:$0xff] %v4526_v54 }
 0x54c   :  { %4662 = vst [vmem:[%s8180_s9 + $0x128] sm:$0xff] %v4518_v37 }
 0x556   :  { %v4987_v39 = vpop.f32.mrb[72].mxu1 }
 0x557   :  { %v4539_v50 = vadd.f32 %v4987_v39, %v7913_v59  ;;  %v4530_v53 = vpop.f32.mrb[73].mxu1 }
 0x558   :  { %v4531_v44 = vadd.f32 %v7913_v59, %v4530_v53  ;;  %v4988_v8 = vpop.f32.mrb[74].mxu1 }
 0x559   :  { %4667 = vst [vmem:[%s8180_s9 + $0x150] sm:$0xff] %v4539_v50  ;;  %v4542_v26 = vadd.f32 %v4988_v8, %v7913_v59  ;;  %v4533_v14 = vpop.f32.mrb[75].mxu1 }
 0x55a   :  { %4665 = vst [vmem:[%s8180_s9 + $0x140] sm:$0xff] %v4531_v44  ;;  %v4534_v9 = vadd.f32 %v7913_v59, %v4533_v14 }
 0x55b   :  { %4668 = vst [vmem:[%s8180_s9 + $0x158] sm:$0xff] %v4542_v26 }
 0x55c   :  { %4666 = vst [vmem:[%s8180_s9 + $0x148] sm:$0xff] %v4534_v9 }
 0x566   :  { %v4991_v5 = vpop.f32.mrb[76].mxu1 }
 0x567   :  { %v4555_v49 = vadd.f32 %v4991_v5, %v7913_v59  ;;  %v4546_v0 = vpop.f32.mrb[77].mxu1 }
 0x568   :  { %v4547_v47 = vadd.f32 %v7913_v59, %v4546_v0  ;;  %v4992_v15 = vpop.f32.mrb[78].mxu1 }
 0x569   :  { %4671 = vst [vmem:[%s8180_s9 + $0x170] sm:$0xff] %v4555_v49  ;;  %v4558_v22 = vadd.f32 %v4992_v15, %v7913_v59  ;;  %v4549_v33 = vpop.f32.mrb[79].mxu1 }
 0x56a   :  { %4669 = vst [vmem:[%s8180_s9 + $0x160] sm:$0xff] %v4547_v47  ;;  %v4550_v63 = vadd.f32 %v7913_v59, %v4549_v33 }
 0x56b   :  { %4672 = vst [vmem:[%s8180_s9 + $0x178] sm:$0xff] %v4558_v22 }
 0x56c   :  { %4670 = vst [vmem:[%s8180_s9 + $0x168] sm:$0xff] %v4550_v63 }
 0x576   :  { %v4995_v3 = vpop.f32.mrb[80].mxu1 }
 0x577   :  { %v4571_v30 = vadd.f32 %v4995_v3, %v7913_v59  ;;  %v4562_v4 = vpop.f32.mrb[81].mxu1 }
 0x578   :  { %v4563_v60 = vadd.f32 %v7913_v59, %v4562_v4  ;;  %v4996_v21 = vpop.f32.mrb[82].mxu1 }
 0x579   :  { %4675 = vst [vmem:[%s8180_s9 + $0x190] sm:$0xff] %v4571_v30  ;;  %v4574_v10 = vadd.f32 %v4996_v21, %v7913_v59  ;;  %v4565_v55 = vpop.f32.mrb[83].mxu1 }
 0x57a   :  { %4673 = vst [vmem:[%s8180_s9 + $0x180] sm:$0xff] %v4563_v60  ;;  %v4566_v25 = vadd.f32 %v7913_v59, %v4565_v55 }
 0x57b   :  { %4676 = vst [vmem:[%s8180_s9 + $0x198] sm:$0xff] %v4574_v10 }
 0x57c   :  { %4674 = vst [vmem:[%s8180_s9 + $0x188] sm:$0xff] %v4566_v25 }
 0x586   :  { %v4999_v32 = vpop.f32.mrb[84].mxu1 }
 0x587   :  { %v4587_v41 = vadd.f32 %v4999_v32, %v7913_v59  ;;  %v4578_v62 = vpop.f32.mrb[85].mxu1 }
 0x588   :  { %v4579_v61 = vadd.f32 %v7913_v59, %v4578_v62  ;;  %v5000_v34 = vpop.f32.mrb[86].mxu1 }
 0x589   :  { %4679 = vst [vmem:[%s8180_s9 + $0x1b0] sm:$0xff] %v4587_v41  ;;  %v4590_v23 = vadd.f32 %v5000_v34, %v7913_v59  ;;  %v4581_v38 = vpop.f32.mrb[87].mxu1 }
 0x58a   :  { %4677 = vst [vmem:[%s8180_s9 + $0x1a0] sm:$0xff] %v4579_v61  ;;  %v4582_v13 = vadd.f32 %v7913_v59, %v4581_v38 }
 0x58b   :  { %4680 = vst [vmem:[%s8180_s9 + $0x1b8] sm:$0xff] %v4590_v23 }
 0x58c   :  { %4678 = vst [vmem:[%s8180_s9 + $0x1a8] sm:$0xff] %v4582_v13 }
 0x596   :  { %v5003_v6 = vpop.f32.mrb[88].mxu1 }
 0x597   :  { %v4603_v45 = vadd.f32 %v5003_v6, %v7913_v59  ;;  %v4594_v16 = vpop.f32.mrb[89].mxu1 }
 0x598   :  { %v4595_v40 = vadd.f32 %v7913_v59, %v4594_v16  ;;  %v5004_v24 = vpop.f32.mrb[90].mxu1 }
 0x599   :  { %4683 = vst [vmem:[%s8180_s9 + $0x1d0] sm:$0xff] %v4603_v45  ;;  %v4606_v17 = vadd.f32 %v5004_v24, %v7913_v59  ;;  %v4597_v12 = vpop.f32.mrb[91].mxu1 }
 0x59a   :  { %4681 = vst [vmem:[%s8180_s9 + $0x1c0] sm:$0xff] %v4595_v40  ;;  %v4598_v19 = vadd.f32 %v7913_v59, %v4597_v12 }
 0x59b   :  { %4684 = vst [vmem:[%s8180_s9 + $0x1d8] sm:$0xff] %v4606_v17 }
 0x59c   :  { %4682 = vst [vmem:[%s8180_s9 + $0x1c8] sm:$0xff] %v4598_v19 }
 0x5a8   :  { %v5007_v18 = vpop.f32.mrb[92].mxu1 }
 0x5a9   :  { %v4619_v42 = vadd.f32 %v5007_v18, %v7913_v59  ;;  %v4610_v1 = vpop.f32.mrb[93].mxu1 }
 0x5aa   :  { %v4611_v58 = vadd.f32 %v7913_v59, %v4610_v1  ;;  %v5008_v56 = vpop.f32.mrb[94].mxu1 }
 0x5ab   :  { %4687 = vst [vmem:[%s8180_s9 + $0x1f0] sm:$0xff] %v4619_v42  ;;  %v4622_v57 = vadd.f32 %v5008_v56, %v7913_v59  ;;  %v4613_v31 = vpop.f32.mrb[95].mxu1 }
 0x5ac   :  { %4685 = vst [vmem:[%s8180_s9 + $0x1e0] sm:$0xff] %v4611_v58  ;;  %v4614_v36 = vadd.f32 %v7913_v59, %v4613_v31 }
 0x5ad   :  { %4688 = vst [vmem:[%s8180_s9 + $0x1f8] sm:$0xff] %v4622_v57 }
 0x5ae   :  { %4686 = vst [vmem:[%s8180_s9 + $0x1e8] sm:$0xff] %v4614_v36 }
 0x5af   :  { %4693 = vsyncpa [#allocation3], 1 }
 0x5b0   :  { %4694 = vsyncpa [#allocation5], 1 }

</bundles_post_ra>
